<compile_context>
chip_gen: v5e
topology: v5e:2x2
jax: 0.10.0
libtpu: 0.0.40
codegen_flags: <defaults>
</compile_context>

<pallas_src>
import functools

import jax
import jax.numpy as jnp
from jax import lax
from jax.experimental import pallas as pl
from jax.experimental.pallas import tpu as pltpu

EPS = 1e-5  # nn.BatchNorm2d default


# ---------------------------------------------------------------------------
# Pallas kernel: one grid step = (batch element, output row tile).
# x block is a (TH+4, W+4, Cin) window of the zero-padded input (2-row/col halo).
# ---------------------------------------------------------------------------
def _double_conv_kernel(x_ref, w1_ref, b1_ref, w2_ref, b2_ref, out_ref,
                        *, H, W, TH, cmid, cout):
    t = pl.program_id(1)                      # row-tile index
    x = x_ref[0, 0]                           # (TH+4, W+4, Cin)
    cin = x.shape[-1]

    # ---- conv1 + BN + ReLU on the (TH+2, W+2) halo region -----------------
    hs, ws = TH + 2, W + 2
    taps1 = [x[dy:dy + hs, dx:dx + ws, :] for dy in range(3) for dx in range(3)]
    slab1 = jnp.concatenate(taps1, axis=-1).reshape(hs * ws, 9 * cin)  # im2col
    y1 = jnp.dot(slab1, w1_ref[...], preferred_element_type=jnp.float32)
    y1 = jnp.maximum(y1 + b1_ref[...], 0.0).reshape(hs, ws, cmid)

    # Halo rows/cols that lie outside the valid image must be ZERO (they are the
    # zero padding of conv2, not conv1 applied to padded input).
    row_img = t * TH - 1 + lax.broadcasted_iota(jnp.int32, (hs, ws, 1), 0)
    col_img = -1 + lax.broadcasted_iota(jnp.int32, (hs, ws, 1), 1)
    valid = (row_img >= 0) & (row_img < H) & (col_img >= 0) & (col_img < W)
    y1 = jnp.where(valid, y1, 0.0)

    # ---- conv2 + BN + ReLU producing the (TH, W) output tile --------------
    taps2 = [y1[dy:dy + TH, dx:dx + W, :] for dy in range(3) for dx in range(3)]
    slab2 = jnp.concatenate(taps2, axis=-1).reshape(TH * W, 9 * cmid)
    y2 = jnp.dot(slab2, w2_ref[...], preferred_element_type=jnp.float32)
    y2 = jnp.maximum(y2 + b2_ref[...], 0.0)

    out_ref[0] = y2.reshape(TH, W, cout).astype(out_ref.dtype)


# ---------------------------------------------------------------------------
# Parameter construction / BN folding (glue, plain JAX)
# ---------------------------------------------------------------------------
def make_params(key, cin, cout):
    """Deterministic synthetic params, PyTorch-style shapes (OIHW + BN stats)."""
    def layer(key, ci, co):
        ks = jax.random.split(key, 6)
        return dict(
            w=jax.random.normal(ks[0], (co, ci, 3, 3), jnp.float32) * 0.1,
            b=jax.random.normal(ks[1], (co,), jnp.float32) * 0.1,
            gamma=1.0 + 0.1 * jax.random.normal(ks[2], (co,), jnp.float32),
            beta=0.1 * jax.random.normal(ks[3], (co,), jnp.float32),
            mean=0.1 * jax.random.normal(ks[4], (co,), jnp.float32),
            var=jax.random.uniform(ks[5], (co,), jnp.float32, 0.5, 1.5),
        )
    k1, k2 = jax.random.split(key)
    return dict(conv1=layer(k1, cin, cout), conv2=layer(k2, cout, cout))


def _fold(p):
    """Fold eval-mode BN into conv weight/bias. Returns (w OIHW, b)."""
    scale = p["gamma"] / jnp.sqrt(p["var"] + EPS)
    w_f = p["w"] * scale[:, None, None, None]
    b_f = (p["b"] - p["mean"]) * scale + p["beta"]
    return w_f, b_f


def _im2col_weight(w_oihw):
    """OIHW -> (9*Cin, Cout), tap order (dy major, dx minor) matching the kernel."""
    return jnp.transpose(w_oihw, (2, 3, 1, 0)).reshape(-1, w_oihw.shape[0])


def _pick_row_tile(H, target=8):
    for th in range(min(H, target), 0, -1):
        if H % th == 0:
            return th
    return H


# ---------------------------------------------------------------------------
# Wrapper: NCHW in, NCHW out (matches the PyTorch module)
# ---------------------------------------------------------------------------
def unet_double_conv_forward(x_nchw, params, *, row_tile=None):
    N, Cin, H, W = x_nchw.shape
    Cout = params["conv1"]["w"].shape[0]

    TH = row_tile if row_tile is not None else _pick_row_tile(H)
    assert H % TH == 0
    T = H // TH

    # NCHW -> NHWC, zero-pad spatially by 2 (1 halo row/col per conv), then build
    # overlapping row windows so every grid step gets a plain blocked tile.
    x_nhwc = jnp.transpose(x_nchw, (0, 2, 3, 1))
    xpad = jnp.pad(x_nhwc, ((0, 0), (2, 2), (2, 2), (0, 0)))
    xwin = jnp.stack([xpad[:, t * TH: t * TH + TH + 4] for t in range(T)],
                     axis=1)                       # (N, T, TH+4, W+4, Cin)

    # Fold BN and rearrange weights for the im2col matmuls.
    w1f, b1f = _fold(params["conv1"])
    w2f, b2f = _fold(params["conv2"])
    w1 = _im2col_weight(w1f)                       # (9*Cin,  Cout)
    w2 = _im2col_weight(w2f)                       # (9*Cout, Cout)
    b1 = b1f[None, :]                              # (1, Cout)
    b2 = b2f[None, :]                              # (1, Cout)

    kernel = functools.partial(_double_conv_kernel, H=H, W=W, TH=TH,
                               cmid=Cout, cout=Cout)

    out_nhwc = pl.pallas_call(
        kernel,
        out_shape=jax.ShapeDtypeStruct((N, H, W, Cout), x_nchw.dtype),
        grid=(N, T),
        in_specs=[
            pl.BlockSpec((1, 1, TH + 4, W + 4, Cin), lambda n, t: (n, t, 0, 0, 0)),
            pl.BlockSpec(w1.shape, lambda n, t: (0, 0)),
            pl.BlockSpec(b1.shape, lambda n, t: (0, 0)),
            pl.BlockSpec(w2.shape, lambda n, t: (0, 0)),
            pl.BlockSpec(b2.shape, lambda n, t: (0, 0)),
        ],
        out_specs=pl.BlockSpec((1, TH, W, Cout), lambda n, t: (n, t, 0, 0)),
        compiler_params=pltpu.CompilerParams(
            dimension_semantics=("parallel", "parallel"),
            vmem_limit_bytes=48 * 1024 * 1024,
        ),
    )(xwin, w1, b1, w2, b2)

    return jnp.transpose(out_nhwc, (0, 3, 1, 2))   # back to NCHW


# ---------------------------------------------------------------------------
# Pure-JAX reference (NCHW, lax.conv) for correctness checking
# ---------------------------------------------------------------------------
def _conv_bn_relu_ref(x, p):
    y = lax.conv_general_dilated(
        x, p["w"], window_strides=(1, 1), padding=[(1, 1), (1, 1)],
        dimension_numbers=("NCHW", "OIHW", "NCHW"),
        precision=lax.Precision.HIGHEST)
    y = y + p["b"][None, :, None, None]
    scale = (p["gamma"] / jnp.sqrt(p["var"] + EPS))[None, :, None, None]
    y = (y - p["mean"][None, :, None, None]) * scale + p["beta"][None, :, None, None]
    return jnp.maximum(y, 0.0)


def double_conv_ref(x, params):
    return _conv_bn_relu_ref(_conv_bn_relu_ref(x, params["conv1"]), params["conv2"])


# ---------------------------------------------------------------------------
if __name__ == "__main__":
    key = jax.random.PRNGKey(0)
    kx, kp = jax.random.split(key)

    N, Cin, H, W = 2, 4, 16, 16
    Cout = 2 * Cin                                   # module default out_channels

    x = jax.random.normal(kx, (N, Cin, H, W), jnp.float32)
    params = make_params(kp, Cin, Cout)

    out = unet_double_conv_forward(x, params)
    out = jax.block_until_ready(out)

    ref = jax.block_until_ready(double_conv_ref(x, params))

    assert out.shape == (N, Cout, H, W), out.shape
    assert jnp.allclose(out, ref, rtol=1e-3, atol=1e-3), (
        float(jnp.max(jnp.abs(out - ref))))

    print("KERNEL_OK")
</pallas_src>

<mosaic_0001>
module attributes {stable_mosaic.version = 11 : i64} {
  func.func @_double_conv_kernel(%arg0: i32, %arg1: i32, %arg2: memref<1x1x12x20x4xf32, #tpu.memory_space<vmem>>, %arg3: memref<36x8xf32, #tpu.memory_space<vmem>>, %arg4: memref<1x8xf32, #tpu.memory_space<vmem>>, %arg5: memref<72x8xf32, #tpu.memory_space<vmem>>, %arg6: memref<1x8xf32, #tpu.memory_space<vmem>>, %arg7: memref<1x8x16x8xf32, #tpu.memory_space<vmem>>) attributes {dimension_semantics = [#tpu.dimension_semantics<parallel>, #tpu.dimension_semantics<parallel>], iteration_bounds = array<i64: 2, 2>, scalar_prefetch = 0 : i64, scratch_operands = 0 : i64, tpu.core_type = #tpu.core_type<tc>, window_params = [{transform_indices = @transform_0, window_bounds = array<i64: 1, 1, 12, 20, 4>}, {pipeline_mode = #tpu.pipeline_mode<synchronous>, transform_indices = @transform_1, window_bounds = array<i64: 36, 8>}, {pipeline_mode = #tpu.pipeline_mode<synchronous>, transform_indices = @transform_2, window_bounds = array<i64: 1, 8>}, {pipeline_mode = #tpu.pipeline_mode<synchronous>, transform_indices = @transform_3, window_bounds = array<i64: 72, 8>}, {pipeline_mode = #tpu.pipeline_mode<synchronous>, transform_indices = @transform_4, window_bounds = array<i64: 1, 8>}, {transform_indices = @transform_5, window_bounds = array<i64: 1, 8, 16, 8>}]} {
    %c0 = arith.constant 0 : index
    %c0_0 = arith.constant 0 : index
    %c0_1 = arith.constant 0 : index
    %c0_2 = arith.constant 0 : index
    %c0_3 = arith.constant 0 : index
    %0 = vector.load %arg2[%c0, %c0_0, %c0_1, %c0_2, %c0_3] : memref<1x1x12x20x4xf32, #tpu.memory_space<vmem>>, vector<1x1x12x20x4xf32>
    %1 = vector.shape_cast %0 : vector<1x1x12x20x4xf32> to vector<12x20x4xf32>
    %2 = vector.extract_strided_slice %1 {offsets = [0, 0, 0], sizes = [10, 18, 4], strides = [1, 1, 1]} : vector<12x20x4xf32> to vector<10x18x4xf32>
    %3 = vector.extract_strided_slice %1 {offsets = [0, 1, 0], sizes = [10, 18, 4], strides = [1, 1, 1]} : vector<12x20x4xf32> to vector<10x18x4xf32>
    %4 = vector.extract_strided_slice %1 {offsets = [0, 2, 0], sizes = [10, 18, 4], strides = [1, 1, 1]} : vector<12x20x4xf32> to vector<10x18x4xf32>
    %5 = vector.extract_strided_slice %1 {offsets = [1, 0, 0], sizes = [10, 18, 4], strides = [1, 1, 1]} : vector<12x20x4xf32> to vector<10x18x4xf32>
    %6 = vector.extract_strided_slice %1 {offsets = [1, 1, 0], sizes = [10, 18, 4], strides = [1, 1, 1]} : vector<12x20x4xf32> to vector<10x18x4xf32>
    %7 = vector.extract_strided_slice %1 {offsets = [1, 2, 0], sizes = [10, 18, 4], strides = [1, 1, 1]} : vector<12x20x4xf32> to vector<10x18x4xf32>
    %8 = vector.extract_strided_slice %1 {offsets = [2, 0, 0], sizes = [10, 18, 4], strides = [1, 1, 1]} : vector<12x20x4xf32> to vector<10x18x4xf32>
    %9 = vector.extract_strided_slice %1 {offsets = [2, 1, 0], sizes = [10, 18, 4], strides = [1, 1, 1]} : vector<12x20x4xf32> to vector<10x18x4xf32>
    %10 = vector.extract_strided_slice %1 {offsets = [2, 2, 0], sizes = [10, 18, 4], strides = [1, 1, 1]} : vector<12x20x4xf32> to vector<10x18x4xf32>
    %11 = tpu.concatenate %2, %3, %4, %5, %6, %7, %8, %9, %10 in 2 : vector<10x18x4xf32>, vector<10x18x4xf32>, vector<10x18x4xf32>, vector<10x18x4xf32>, vector<10x18x4xf32>, vector<10x18x4xf32>, vector<10x18x4xf32>, vector<10x18x4xf32>, vector<10x18x4xf32> -> vector<10x18x36xf32>
    %12 = vector.shape_cast %11 : vector<10x18x36xf32> to vector<180x36xf32>
    %c0_4 = arith.constant 0 : index
    %c0_5 = arith.constant 0 : index
    %13 = vector.load %arg3[%c0_4, %c0_5] : memref<36x8xf32, #tpu.memory_space<vmem>>, vector<36x8xf32>
    %cst = arith.constant dense<0.000000e+00> : vector<180x8xf32>
    %14 = tpu.matmul %12, %13, %cst {dimension_numbers = #tpu.dot_dimension_numbers<[1], [0], [0], [1], [0, 0, 1, 1], [], []>} : vector<180x36xf32>, vector<36x8xf32>, vector<180x8xf32> -> vector<180x8xf32>
    %c0_6 = arith.constant 0 : index
    %c0_7 = arith.constant 0 : index
    %15 = vector.load %arg4[%c0_6, %c0_7] : memref<1x8xf32, #tpu.memory_space<vmem>>, vector<1x8xf32>
    %16 = vector.broadcast %15 : vector<1x8xf32> to vector<180x8xf32>
    %17 = arith.addf %14, %16 : vector<180x8xf32>
    %cst_8 = arith.constant 0.000000e+00 : f32
    %18 = vector.broadcast %cst_8 : f32 to vector<180x8xf32>
    %19 = arith.maximumf %17, %18 : vector<180x8xf32>
    %20 = vector.shape_cast %19 : vector<180x8xf32> to vector<10x18x8xf32>
    %c8_i32 = arith.constant 8 : i32
    %21 = arith.muli %arg1, %c8_i32 : i32
    %c1_i32 = arith.constant 1 : i32
    %22 = arith.subi %21, %c1_i32 : i32
    %23 = tpu.iota {dimensions = array<i32: 0>} : vector<10x18x1xi32>
    %24 = vector.broadcast %22 : i32 to vector<10x18x1xi32>
    %25 = arith.addi %24, %23 : vector<10x18x1xi32>
    %26 = tpu.iota {dimensions = array<i32: 1>} : vector<10x18x1xi32>
    %c-1_i32 = arith.constant -1 : i32
    %27 = vector.broadcast %c-1_i32 : i32 to vector<10x18x1xi32>
    %28 = arith.addi %27, %26 : vector<10x18x1xi32>
    %c0_i32 = arith.constant 0 : i32
    %29 = vector.broadcast %c0_i32 : i32 to vector<10x18x1xi32>
    %30 = arith.cmpi sge, %25, %29 : vector<10x18x1xi32>
    %c16_i32 = arith.constant 16 : i32
    %31 = vector.broadcast %c16_i32 : i32 to vector<10x18x1xi32>
    %32 = arith.cmpi slt, %25, %31 : vector<10x18x1xi32>
    %33 = arith.andi %30, %32 : vector<10x18x1xi1>
    %c0_i32_9 = arith.constant 0 : i32
    %34 = vector.broadcast %c0_i32_9 : i32 to vector<10x18x1xi32>
    %35 = arith.cmpi sge, %28, %34 : vector<10x18x1xi32>
    %36 = arith.andi %33, %35 : vector<10x18x1xi1>
    %c16_i32_10 = arith.constant 16 : i32
    %37 = vector.broadcast %c16_i32_10 : i32 to vector<10x18x1xi32>
    %38 = arith.cmpi slt, %28, %37 : vector<10x18x1xi32>
    %39 = arith.andi %36, %38 : vector<10x18x1xi1>
    %cst_11 = arith.constant 0.000000e+00 : f32
    %40 = vector.shape_cast %39 : vector<10x18x1xi1> to vector<10x18x1xi1>
    %41 = vector.broadcast %40 : vector<10x18x1xi1> to vector<10x18x8xi1>
    %42 = vector.broadcast %cst_11 : f32 to vector<10x18x8xf32>
    %43 = arith.select %41, %20, %42 : vector<10x18x8xi1>, vector<10x18x8xf32>
    %44 = vector.extract_strided_slice %43 {offsets = [0, 0, 0], sizes = [8, 16, 8], strides = [1, 1, 1]} : vector<10x18x8xf32> to vector<8x16x8xf32>
    %45 = vector.extract_strided_slice %43 {offsets = [0, 1, 0], sizes = [8, 16, 8], strides = [1, 1, 1]} : vector<10x18x8xf32> to vector<8x16x8xf32>
    %46 = vector.extract_strided_slice %43 {offsets = [0, 2, 0], sizes = [8, 16, 8], strides = [1, 1, 1]} : vector<10x18x8xf32> to vector<8x16x8xf32>
    %47 = vector.extract_strided_slice %43 {offsets = [1, 0, 0], sizes = [8, 16, 8], strides = [1, 1, 1]} : vector<10x18x8xf32> to vector<8x16x8xf32>
    %48 = vector.extract_strided_slice %43 {offsets = [1, 1, 0], sizes = [8, 16, 8], strides = [1, 1, 1]} : vector<10x18x8xf32> to vector<8x16x8xf32>
    %49 = vector.extract_strided_slice %43 {offsets = [1, 2, 0], sizes = [8, 16, 8], strides = [1, 1, 1]} : vector<10x18x8xf32> to vector<8x16x8xf32>
    %50 = vector.extract_strided_slice %43 {offsets = [2, 0, 0], sizes = [8, 16, 8], strides = [1, 1, 1]} : vector<10x18x8xf32> to vector<8x16x8xf32>
    %51 = vector.extract_strided_slice %43 {offsets = [2, 1, 0], sizes = [8, 16, 8], strides = [1, 1, 1]} : vector<10x18x8xf32> to vector<8x16x8xf32>
    %52 = vector.extract_strided_slice %43 {offsets = [2, 2, 0], sizes = [8, 16, 8], strides = [1, 1, 1]} : vector<10x18x8xf32> to vector<8x16x8xf32>
    %53 = tpu.concatenate %44, %45, %46, %47, %48, %49, %50, %51, %52 in 2 : vector<8x16x8xf32>, vector<8x16x8xf32>, vector<8x16x8xf32>, vector<8x16x8xf32>, vector<8x16x8xf32>, vector<8x16x8xf32>, vector<8x16x8xf32>, vector<8x16x8xf32>, vector<8x16x8xf32> -> vector<8x16x72xf32>
    %54 = vector.shape_cast %53 : vector<8x16x72xf32> to vector<128x72xf32>
    %c0_12 = arith.constant 0 : index
    %c0_13 = arith.constant 0 : index
    %55 = vector.load %arg5[%c0_12, %c0_13] : memref<72x8xf32, #tpu.memory_space<vmem>>, vector<72x8xf32>
    %cst_14 = arith.constant dense<0.000000e+00> : vector<128x8xf32>
    %56 = tpu.matmul %54, %55, %cst_14 {dimension_numbers = #tpu.dot_dimension_numbers<[1], [0], [0], [1], [0, 0, 1, 1], [], []>} : vector<128x72xf32>, vector<72x8xf32>, vector<128x8xf32> -> vector<128x8xf32>
    %c0_15 = arith.constant 0 : index
    %c0_16 = arith.constant 0 : index
    %57 = vector.load %arg6[%c0_15, %c0_16] : memref<1x8xf32, #tpu.memory_space<vmem>>, vector<1x8xf32>
    %58 = vector.broadcast %57 : vector<1x8xf32> to vector<128x8xf32>
    %59 = arith.addf %56, %58 : vector<128x8xf32>
    %cst_17 = arith.constant 0.000000e+00 : f32
    %60 = vector.broadcast %cst_17 : f32 to vector<128x8xf32>
    %61 = arith.maximumf %59, %60 : vector<128x8xf32>
    %62 = vector.shape_cast %61 : vector<128x8xf32> to vector<8x16x8xf32>
    %c0_18 = arith.constant 0 : index
    %c0_19 = arith.constant 0 : index
    %c0_20 = arith.constant 0 : index
    %c0_21 = arith.constant 0 : index
    %63 = vector.load %arg7[%c0_18, %c0_19, %c0_20, %c0_21] : memref<1x8x16x8xf32, #tpu.memory_space<vmem>>, vector<1x8x16x8xf32>
    %64 = vector.shape_cast %63 : vector<1x8x16x8xf32> to vector<8x16x8xf32>
    %65 = vector.shape_cast %62 : vector<8x16x8xf32> to vector<1x8x16x8xf32>
    tpu.vector_store %arg7[%c0_18, %c0_19, %c0_20, %c0_21], %65 {strides = array<i32>} : memref<1x8x16x8xf32, #tpu.memory_space<vmem>>, vector<1x8x16x8xf32>,
    return
  }
  func.func @transform_0(%arg0: i32, %arg1: i32) -> (i32, i32, i32, i32, i32) {
    %c0_i32 = arith.constant 0 : i32
    %c0_i32_0 = arith.constant 0 : i32
    %c0_i32_1 = arith.constant 0 : i32
    %c0_i32_2 = arith.constant 0 : i32
    return %arg0, %arg1, %c0_i32, %c0_i32_0, %c0_i32_1 : i32, i32, i32, i32, i32
  }
  func.func @transform_1(%arg0: i32, %arg1: i32) -> (i32, i32) {
    %c0_i32 = arith.constant 0 : i32
    %c0_i32_0 = arith.constant 0 : i32
    %c0_i32_1 = arith.constant 0 : i32
    return %c0_i32, %c0_i32_0 : i32, i32
  }
  func.func @transform_2(%arg0: i32, %arg1: i32) -> (i32, i32) {
    %c0_i32 = arith.constant 0 : i32
    %c0_i32_0 = arith.constant 0 : i32
    %c0_i32_1 = arith.constant 0 : i32
    return %c0_i32, %c0_i32_0 : i32, i32
  }
  func.func @transform_3(%arg0: i32, %arg1: i32) -> (i32, i32) {
    %c0_i32 = arith.constant 0 : i32
    %c0_i32_0 = arith.constant 0 : i32
    %c0_i32_1 = arith.constant 0 : i32
    return %c0_i32, %c0_i32_0 : i32, i32
  }
  func.func @transform_4(%arg0: i32, %arg1: i32) -> (i32, i32) {
    %c0_i32 = arith.constant 0 : i32
    %c0_i32_0 = arith.constant 0 : i32
    %c0_i32_1 = arith.constant 0 : i32
    return %c0_i32, %c0_i32_0 : i32, i32
  }
  func.func @transform_5(%arg0: i32, %arg1: i32) -> (i32, i32, i32, i32) {
    %c0_i32 = arith.constant 0 : i32
    %c0_i32_0 = arith.constant 0 : i32
    %c0_i32_1 = arith.constant 0 : i32
    return %arg0, %arg1, %c0_i32, %c0_i32_0 : i32, i32, i32, i32
  }
}

</mosaic_0001>

<bundles_post_ra>
// kernel: tpu_custom_call.1
= control target key start
LH: loop header
LB: loop body
LE: loop exit
PB: predicated region body
PF: predicated region fallthrough
CT: control target
= control target key end

     0   :  { %s3402_s18 = smov 0   ;;  %s3404_s19 = smov 0   ;;  %s6236_s0 = inlined_call_operand.vmem [shape: f32[2,2,12,20,4], index: 0, kind: input, shape index: {}]   ;;  %s6237_s1 = inlined_call_operand.vmem [shape: f32[36,8], index: 1, kind: input, shape index: {}]   ;;  %s6238_s2 = inlined_call_operand.vmem [shape: f32[1,8], index: 2, kind: input, shape index: {}]   ;;  %s6239_s3 = inlined_call_operand.vmem [shape: f32[72,8], index: 3, kind: input, shape index: {}]   ;;  %s6240_s4 = inlined_call_operand.vmem [shape: f32[1,8], index: 4, kind: input, shape index: {}]   ;;  %s6241_s5 = inlined_call_operand.vmem [shape: f32[2,16,16,8], index: 5, kind: output, shape index: {}]  }
   0x1   :  { %s3406_s20 = smov 0   ;;  %s3408_s21 = smov 0  }
   0x2   :  { %s3410_s22 = smov 0  }
   0x3 LB: > { %s24_s23 = sadd.s32 1, %s3350_s20  ;;  %s27_s24 = sadd.s32 1, %s3354_s21  ;;  %s3358_s22 = sphi %s3410_s22, %s15_s22   ;;  %s3354_s21 = sphi %s3408_s21, %s6702_s21   ;;  %s3350_s20 = sphi %s3406_s20, %s6701_s20   ;;  %s3346_s19 = sphi %s3404_s19, %s6700_s19   ;;  %s3342_s18 = sphi %s3402_s18, %s6699_s18  }
   0x4   : > { %p25_p0 = scmp.ge.s32.totalorder %s24_s23, 2  ;;  %p3165_p1 = scmp.ge.s32.totalorder %s3358_s22, 1 }
   0x5   : > { %p207_p2 = scmp.lt.s32.totalorder %s3358_s22, 5 }
   0x6   : > { %s6704_s23 = smov (%p25_p0, %s24_s23), 0  ;;  %s6706_s24 = smov (!%p25_p0, %s27_s24), %s3354_s21 }
   0x7   : > { %p208_p3 = pnand %p3165_p1, %p207_p2  ;;  %p29_p4 = scmp.ge.s32.totalorder %s6706_s24, 2 }
   0x9   : > { %s6708_s24 = smov (%p29_p4, %s6706_s24), 0  ;;  %211 = sbr.rel (%p208_p3) target bundleno = 1492 (0x5d4), region = 40 }
   0xe   : > { %p244_p5 = scmp.lt.s32.totalorder %s3346_s19, 1  ;;  %p246_p6 = scmp.lt.s32.totalorder %s3342_s18, 1  ;;  %vm330_vm0 = vcmask 1046528   ;;  %vm471_vm1 = vcmask 1045504   ;;  %vm1692_vm2 = vcmask 1043456   ;;  %vm1178_vm3 = vcmask 31744  }
   0xf   : > { %s3360_s8 = smov 4   ;;  %s3361_s9 = smov 8   ;;  %vm1209_vm4 = vcmask 64512   ;;  %vm1240_vm5 = vcmask 97280   ;;  %vm1271_vm6 = vcmask 130048   ;;  %vm1302_vm7 = vcmask 162816  }
  0x10   : > { %s6710_s19 = smov (!%p244_p5, %s3346_s19), 1  ;;  %s3362_s10 = smov 12   ;;  %vm1333_vm8 = vcmask 195584   ;;  %vm1395_vm9 = vcmask 261120   ;;  %vm1364_vm10 = vcmask 228352   ;;  %vm1645_vm11 = vcmask 293888  }
  0x11   : > { %s247_s25 = scalar_select %p246_p6, %s3342_s18, 1 }
  0x12   : > { %s3235_s26 = smul.u32 72, %s6710_s19  ;;  %s3363_s11 = smov 16  }
  0x13   : > { %s3234_s27 = smul.u32 36, %s247_s25  ;;  %s3364_s12 = smov 20  }
  0x14   : > { %s3365_s13 = smov 24   ;;  %s3366_s14 = smov 28  }
  0x15   : > { %s250_s28 = sadd.s32 %s3235_s26, %s3234_s27  ;;  %s3367_s15 = smov 32  }
  0x16   : > { %s3166_s29 = sshll.u32 %s250_s28, 3 }
  0x17   : > { %s3442_s7 = scalar_lea.vmem %s6236_s0, %s3166_s29 }
  0x18   : > { %v3445_v0 = vld [vmem:[%s3442_s7 + $0x28] sm:$0xf]  ;;  %v3448_v1 = vld [vmem:[%s3442_s7 + $0x10] sm:$0xf]  ;;  %v3451_v2 = vld [vmem:[%s3442_s7] sm:$0xff] }
  0x19   : > { %v3454_v3 = vrot.slane %v3445_v0, 1  ;;  %v334_v4 = vrot.slane %v3448_v1, 1  ;;  %v3458_v5 = vld [vmem:[%s3442_s7 + $0x8] sm:$0xff]  ;;  %v331_v6 = vrot.slane %v3451_v2, 1  ;;  %v3462_v7 = vld [vmem:[%s3442_s7 + $0x20] sm:$0xff]  ;;  %v3465_v8 = vld [vmem:[%s3442_s7 + $0x18] sm:$0xff] }
  0x1a   : > { %v332_v9 = vrot.slane %v3458_v5, 1  ;;  %v337_v11 = vrot.slane %v3462_v7, 1  ;;  %v336_v12 = vrot.slane %v3465_v8, 1  ;;  %v3483_v15 = vld [vmem:[%s3442_s7 + $0x40] sm:$0xf]  ;;  %v3486_v16 = vld [vmem:[%s3442_s7 + $0x38] sm:$0xff] }
  0x1b   : > { %391 = vrot.lane.b32.xlu2 %v3454_v3, %s3360_s8  ;;  %385 = vrot.lane.b32.xlu1 %v334_v4, %s3360_s8  ;;  %v3494_v18 = vld [vmem:[%s3442_s7 + $0x30] sm:$0xff]  ;;  %v3497_v19 = vrot.slane %v3483_v15, 1  ;;  %v342_v20 = vrot.slane %v3486_v16, 1  ;;  %v3507_v23 = vld [vmem:[%s3442_s7 + $0x58] sm:$0xf] }
  0x1c   : > { %v333_v10 = vsel %vm330_vm0, %v331_v6, %v332_v9  ;;  %v3477_v13 = vsel %vm330_vm0, %v337_v11, %v3454_v3  ;;  %v3480_v14 = vsel %vm330_vm0, %v336_v12, %v337_v11  ;;  %v335_v17 = vsel %vm330_vm0, %v332_v9, %v334_v4  ;;  %v3510_v24 = vld [vmem:[%s3442_s7 + $0x50] sm:$0xff]  ;;  %v3520_v26 = vld [vmem:[%s3442_s7 + $0x48] sm:$0xff]  ;;  %v3547_v34 = vld [vmem:[%s3442_s7 + $0x60] sm:$0xff] }
  0x1d   : > { %381 = vrot.lane.b32.xlu0 %v333_v10, %s3360_s8  ;;  %v341_v21 = vrot.slane %v3494_v18, 1  ;;  %v3504_v22 = vsel %vm330_vm0, %v342_v20, %v3497_v19  ;;  %v3523_v27 = vrot.slane %v3507_v23, 1  ;;  %v347_v28 = vrot.slane %v3510_v24, 1  ;;  %v3534_v31 = vld [vmem:[%s3442_s7 + $0x70] sm:$0xf]  ;;  %v3537_v32 = vld [vmem:[%s3442_s7 + $0x68] sm:$0xff] }
  0x1e   : > { %v346_v29 = vrot.slane %v3520_v26, 1  ;;  %v3550_v35 = vrot.slane %v3534_v31, 1  ;;  %v352_v36 = vrot.slane %v3537_v32, 1  ;;  %v351_v37 = vrot.slane %v3547_v34, 1  ;;  %v3561_v39 = vld [vmem:[%s3442_s7 + $0x88] sm:$0xf] }
  0x1f   : > { %v3513_v25 = vsel %vm330_vm0, %v341_v21, %v342_v20  ;;  %v3531_v30 = vsel %vm330_vm0, %v347_v28, %v3523_v27  ;;  %v3564_v40 = vld [vmem:[%s3442_s7 + $0x80] sm:$0xff]  ;;  %v3574_v42 = vld [vmem:[%s3442_s7 + $0x78] sm:$0xff]  ;;  %v3577_v43 = vrot.slane %v3561_v39, 1  ;;  %v3601_v50 = vld [vmem:[%s3442_s7 + $0x90] sm:$0xff] }
  0x20   : > { %v3540_v33 = vsel %vm330_vm0, %v346_v29, %v347_v28  ;;  %v3558_v38 = vsel %vm330_vm0, %v352_v36, %v3550_v35  ;;  %v3567_v41 = vsel %vm330_vm0, %v351_v37, %v352_v36  ;;  %v357_v44 = vrot.slane %v3564_v40, 1  ;;  %v3588_v47 = vld [vmem:[%s3442_s7 + $0xa0] sm:$0xf]  ;;  %v3591_v48 = vld [vmem:[%s3442_s7 + $0x98] sm:$0xff]  ;;  %v3618_v56 = vld [vmem:[%s3442_s7 + $0xb0] sm:$0xff] }
  0x21   : > { %v356_v45 = vrot.slane %v3574_v42, 1  ;;  %v3604_v51 = vrot.slane %v3588_v47, 1  ;;  %v362_v52 = vrot.slane %v3591_v48, 1  ;;  %v361_v53 = vrot.slane %v3601_v50, 1  ;;  %v3615_v55 = vld [vmem:[%s3442_s7 + $0xb8] sm:$0xf] }
  0x22   : > { %v3585_v46 = vsel %vm330_vm0, %v357_v44, %v3577_v43  ;;  %v3628_v58 = vld [vmem:[%s3442_s7 + $0xa8] sm:$0xff]  ;;  %v3631_v59 = vrot.slane %v3615_v55, 1  ;;  %v367_v60 = vrot.slane %v3618_v56, 1  ;;  %v3642_v63 = vld [vmem:[%s3442_s7 + $0xd0] sm:$0xf]  ;;  %v3655_v9 = vld [vmem:[%s3442_s7 + $0xc0] sm:$0xff] }
  0x23   : > { %389 = vrot.lane.b32.xlu2 %v3477_v13, %s3360_s8  ;;  %387 = vrot.lane.b32.xlu1 %v3480_v14, %s3360_s8  ;;  %v3594_v49 = vsel %vm330_vm0, %v356_v45, %v357_v44  ;;  %v3612_v54 = vsel %vm330_vm0, %v362_v52, %v3604_v51  ;;  %v3621_v57 = vsel %vm330_vm0, %v361_v53, %v362_v52  ;;  %v366_v61 = vrot.slane %v3628_v58, 1  ;;  %v3645_v4 = vld [vmem:[%s3442_s7 + $0xc8] sm:$0xff]  ;;  %v3672_v21 = vld [vmem:[%s3442_s7 + $0xe0] sm:$0xff] }
  0x24   : > { %v3639_v62 = vsel %vm330_vm0, %v367_v60, %v3631_v59  ;;  %v3658_v10 = vrot.slane %v3642_v63, 1  ;;  %v372_v11 = vrot.slane %v3645_v4, 1  ;;  %v371_v12 = vrot.slane %v3655_v9, 1  ;;  %v3669_v20 = vld [vmem:[%s3442_s7 + $0xe8] sm:$0xf]  ;;  %v3682_v29 = vld [vmem:[%s3442_s7 + $0xd8] sm:$0xff] }
  0x25   : > { %383 = vrot.lane.b32.xlu0 %v335_v17, %s3360_s8  ;;  %v3648_v6 = vsel %vm330_vm0, %v366_v61, %v367_v60  ;;  %v3685_v36 = vrot.slane %v3669_v20, 1  ;;  %v377_v37 = vrot.slane %v3672_v21, 1  ;;  %v376_v44 = vrot.slane %v3682_v29, 1 }
  0x26   : > { %6306 = vst [vmem:[#allocation2_spill] sm:$0xff] %v3658_v10  ;;  %v3666_v17 = vsel %vm330_vm0, %v372_v11, %v3658_v10  ;;  %v3675_v28 = vsel %vm330_vm0, %v371_v12, %v372_v11  ;;  %v475_v53 = vrot.slane %v3448_v1, 2  ;;  %v473_v60 = vrot.slane %v3458_v5, 2 }
  0x27   : > { %6307 = vst [vmem:[#allocation3_spill] sm:$0xff] %v3666_v17  ;;  %v3693_v45 = vsel %vm330_vm0, %v377_v37, %v3685_v36  ;;  %v3696_v52 = vsel %vm330_vm0, %v376_v44, %v377_v37  ;;  %v472_v61 = vrot.slane %v3451_v2, 2  ;;  %v3712_v37 = vrot.slane %v3445_v0, 2 }
  0x28   : > { %6308 = vst [vmem:[#allocation4_spill] sm:$0xff] %v3675_v28  ;;  %v476_v11 = vsel %vm471_vm1, %v473_v60, %v475_v53  ;;  %v478_v1 = vrot.slane %v3462_v7, 2  ;;  %v477_v5 = vrot.slane %v3465_v8, 2 }
  0x29   : > { %6309 = vst [vmem:[#allocation5_spill] sm:$0xff] %v3685_v36  ;;  %v474_v12 = vsel %vm471_vm1, %v472_v61, %v473_v60  ;;  %v483_v60 = vrot.slane %v3486_v16, 2 }
  0x2a   : > { %6310 = vst [vmem:[#allocation6_spill] sm:$0xff] %v3693_v45  ;;  %v3719_v2 = vsel %vm471_vm1, %v478_v1, %v3712_v37  ;;  %v3722_v44 = vsel %vm471_vm1, %v477_v5, %v478_v1  ;;  %v3749_v5 = vrot.slane %v3507_v23, 2 }
  0x2b   : > { %397 = vrot.lane.b32.xlu2 %v3497_v19, %s3360_s8  ;;  %395 = vrot.lane.b32.xlu1 %v3504_v22, %s3360_s8  ;;  %6311 = vst [vmem:[#allocation7_spill] sm:$0xff] %v3696_v52 }
  0x2c   : > { %6312 = vst [vmem:[#allocation8_spill] sm:$0xff] %v3719_v2 }
  0x2d   : > { %393 = vrot.lane.b32.xlu0 %v3513_v25, %s3360_s8  ;;  %6313 = vst [vmem:[#allocation9_spill] sm:$0xff] %v3722_v44 }
  0x2e   : > { %6318 = vst [vmem:[#allocation14_spill] sm:$0xff] %v3749_v5 }
  0x33   : > { %403 = vrot.lane.b32.xlu2 %v3523_v27, %s3360_s8  ;;  %401 = vrot.lane.b32.xlu1 %v3531_v30, %s3360_s8 }
  0x35   : > { %399 = vrot.lane.b32.xlu0 %v3540_v33, %s3360_s8 }
  0x3b   : > { %409 = vrot.lane.b32.xlu2 %v3550_v35, %s3360_s8  ;;  %407 = vrot.lane.b32.xlu1 %v3558_v38, %s3360_s8 }
  0x3d   : > { %405 = vrot.lane.b32.xlu0 %v3567_v41, %s3360_s8 }
  0x43   : > { %415 = vrot.lane.b32.xlu2 %v3577_v43, %s3360_s8  ;;  %413 = vrot.lane.b32.xlu1 %v3585_v46, %s3360_s8 }
  0x45   : > { %411 = vrot.lane.b32.xlu0 %v3594_v49, %s3360_s8 }
  0x4b   : > { %421 = vrot.lane.b32.xlu2 %v3604_v51, %s3360_s8  ;;  %419 = vrot.lane.b32.xlu1 %v3612_v54, %s3360_s8 }
  0x4d   : > { %417 = vrot.lane.b32.xlu0 %v3621_v57, %s3360_s8 }
  0x53   : > { %427 = vrot.lane.b32.xlu2 %v3631_v59, %s3360_s8  ;;  %425 = vrot.lane.b32.xlu1 %v3639_v62, %s3360_s8 }
  0x55   : > { %423 = vrot.lane.b32.xlu0 %v3648_v6, %s3360_s8 }
  0x5b   : > { %433 = vrot.lane.b32.xlu2 %v3658_v10, %s3360_s8  ;;  %431 = vrot.lane.b32.xlu1 %v3666_v17, %s3360_s8 }
  0x5d   : > { %429 = vrot.lane.b32.xlu0 %v3675_v28, %s3360_s8 }
  0x63   : > { %439 = vrot.lane.b32.xlu2 %v3685_v36, %s3360_s8  ;;  %437 = vrot.lane.b32.xlu1 %v3693_v45, %s3360_s8 }
  0x65   : > { %435 = vrot.lane.b32.xlu0 %v3696_v52, %s3360_s8 }
  0x6b   : > { %526 = vrot.lane.b32.xlu2 %v475_v53, %s3361_s9  ;;  %524 = vrot.lane.b32.xlu1 %v476_v11, %s3361_s9  ;;  %v3729_v53 = vrot.slane %v3483_v15, 2  ;;  %v482_v11 = vrot.slane %v3494_v18, 2 }
  0x6d   : > { %522 = vrot.lane.b32.xlu0 %v474_v12, %s3361_s9  ;;  %6314 = vst [vmem:[#allocation10_spill] sm:$0xff] %v3729_v53  ;;  %v3739_v12 = vsel %vm471_vm1, %v483_v60, %v3729_v53  ;;  %v3742_v1 = vsel %vm471_vm1, %v482_v11, %v483_v60 }
  0x6e   : > { %6316 = vst [vmem:[#allocation12_spill] sm:$0xff] %v3739_v12 }
  0x6f   : > { %6317 = vst [vmem:[#allocation13_spill] sm:$0xff] %v3742_v1 }
  0x73   : > { %532 = vrot.lane.b32.xlu2 %v3712_v37, %s3361_s9  ;;  %530 = vrot.lane.b32.xlu1 %v3719_v2, %s3361_s9  ;;  %v487_v2 = vrot.slane %v3520_v26, 2 }
  0x75   : > { %528 = vrot.lane.b32.xlu0 %v3722_v44, %s3361_s9  ;;  %v3734_v61 = vpop.permute.xlu2 %391 }
  0x76   : > { %6315 = vst [vmem:[#allocation11_spill] sm:$0xff] %v3734_v61  ;;  %v488_v61 = vrot.slane %v3510_v24, 2 }
  0x78   : > { %v3759_v60 = vsel %vm471_vm1, %v488_v61, %v3749_v5  ;;  %v3762_v11 = vsel %vm471_vm1, %v487_v2, %v488_v61 }
  0x79   : > { %6320 = vst [vmem:[#allocation16_spill] sm:$0xff] %v3759_v60 }
  0x7a   : > { %6321 = vst [vmem:[#allocation17_spill] sm:$0xff] %v3762_v11 }
  0x7b   : > { %538 = vrot.lane.b32.xlu2 %v3729_v53, %s3361_s9  ;;  %536 = vrot.lane.b32.xlu1 %v3739_v12, %s3361_s9  ;;  %v3769_v12 = vrot.slane %v3534_v31, 2  ;;  %v492_v53 = vrot.slane %v3547_v34, 2 }
  0x7d   : > { %534 = vrot.lane.b32.xlu0 %v3742_v1, %s3361_s9  ;;  %v3754_v44 = vpop.permute.xlu2 %389  ;;  %6322 = vst [vmem:[#allocation18_spill] sm:$0xff] %v3769_v12 }
  0x7e   : > { %6319 = vst [vmem:[#allocation15_spill] sm:$0xff] %v3754_v44  ;;  %v493_v44 = vrot.slane %v3537_v32, 2 }
  0x80   : > { %v3779_v2 = vsel %vm471_vm1, %v493_v44, %v3769_v12  ;;  %v3782_v61 = vsel %vm471_vm1, %v492_v53, %v493_v44  ;;  %v497_v44 = vrot.slane %v3574_v42, 2 }
  0x81   : > { %6324 = vst [vmem:[#allocation20_spill] sm:$0xff] %v3779_v2 }
  0x82   : > { %6325 = vst [vmem:[#allocation21_spill] sm:$0xff] %v3782_v61 }
  0x83   : > { %544 = vrot.lane.b32.xlu2 %v3749_v5, %s3361_s9  ;;  %542 = vrot.lane.b32.xlu1 %v3759_v60, %s3361_s9  ;;  %v3789_v60 = vrot.slane %v3561_v39, 2 }
  0x85   : > { %540 = vrot.lane.b32.xlu0 %v3762_v11, %s3361_s9  ;;  %v3774_v1 = vpop.permute.xlu2 %397  ;;  %6326 = vst [vmem:[#allocation22_spill] sm:$0xff] %v3789_v60 }
  0x86   : > { %6323 = vst [vmem:[#allocation19_spill] sm:$0xff] %v3774_v1  ;;  %v498_v1 = vrot.slane %v3564_v40, 2 }
  0x8b   : > { %550 = vrot.lane.b32.xlu2 %v3769_v12, %s3361_s9  ;;  %548 = vrot.lane.b32.xlu1 %v3779_v2, %s3361_s9  ;;  %v3803_v12 = vsel %vm471_vm1, %v498_v1, %v3789_v60  ;;  %v3806_v2 = vsel %vm471_vm1, %v497_v44, %v498_v1  ;;  %v502_v1 = vrot.slane %v3601_v50, 2 }
  0x8c   : > { %6330 = vst [vmem:[#allocation26_spill] sm:$0xff] %v3803_v12 }
  0x8d   : > { %546 = vrot.lane.b32.xlu0 %v3782_v61, %s3361_s9  ;;  %v3794_v11 = vpop.permute.xlu2 %403  ;;  %v3796_v5 = vpop.permute.xlu1 %385  ;;  %6331 = vst [vmem:[#allocation27_spill] sm:$0xff] %v3806_v2 }
  0x8e   : > { %6327 = vst [vmem:[#allocation23_spill] sm:$0xff] %v3794_v11  ;;  %v3813_v11 = vrot.slane %v3588_v47, 2 }
  0x8f   : > { %6328 = vst [vmem:[#allocation24_spill] sm:$0xff] %v3796_v5  ;;  %v3799_v53 = vpop.permute.xlu0 %381  ;;  %v503_v5 = vrot.slane %v3591_v48, 2 }
  0x90   : > { %6329 = vst [vmem:[#allocation25_spill] sm:$0xff] %v3799_v53 }
  0x91   : > { %6332 = vst [vmem:[#allocation28_spill] sm:$0xff] %v3813_v11 }
  0x93   : > { %556 = vrot.lane.b32.xlu2 %v3789_v60, %s3361_s9  ;;  %554 = vrot.lane.b32.xlu1 %v3803_v12, %s3361_s9  ;;  %v3827_v60 = vsel %vm471_vm1, %v503_v5, %v3813_v11  ;;  %v3830_v12 = vsel %vm471_vm1, %v502_v1, %v503_v5  ;;  %v507_v5 = vrot.slane %v3628_v58, 2 }
  0x94   : > { %6336 = vst [vmem:[#allocation32_spill] sm:$0xff] %v3827_v60 }
  0x95   : > { %552 = vrot.lane.b32.xlu0 %v3806_v2, %s3361_s9  ;;  %v3818_v53 = vpop.permute.xlu2 %409  ;;  %v3820_v61 = vpop.permute.xlu1 %387  ;;  %6337 = vst [vmem:[#allocation33_spill] sm:$0xff] %v3830_v12 }
  0x96   : > { %6333 = vst [vmem:[#allocation29_spill] sm:$0xff] %v3818_v53  ;;  %v3837_v53 = vrot.slane %v3615_v55, 2 }
  0x97   : > { %6334 = vst [vmem:[#allocation30_spill] sm:$0xff] %v3820_v61  ;;  %v3823_v44 = vpop.permute.xlu0 %383  ;;  %v508_v61 = vrot.slane %v3618_v56, 2 }
  0x98   : > { %6335 = vst [vmem:[#allocation31_spill] sm:$0xff] %v3823_v44 }
  0x99   : > { %6338 = vst [vmem:[#allocation34_spill] sm:$0xff] %v3837_v53 }
  0x9b   : > { %562 = vrot.lane.b32.xlu2 %v3813_v11, %s3361_s9  ;;  %560 = vrot.lane.b32.xlu1 %v3827_v60, %s3361_s9  ;;  %v3851_v11 = vsel %vm471_vm1, %v508_v61, %v3837_v53  ;;  %v3854_v60 = vsel %vm471_vm1, %v507_v5, %v508_v61  ;;  %v512_v61 = vrot.slane %v3655_v9, 2 }
  0x9c   : > { %6342 = vst [vmem:[#allocation38_spill] sm:$0xff] %v3851_v11 }
  0x9d   : > { %558 = vrot.lane.b32.xlu0 %v3830_v12, %s3361_s9  ;;  %v3842_v44 = vpop.permute.xlu2 %415  ;;  %v3844_v2 = vpop.permute.xlu1 %395  ;;  %6343 = vst [vmem:[#allocation39_spill] sm:$0xff] %v3854_v60 }
  0x9e   : > { %6339 = vst [vmem:[#allocation35_spill] sm:$0xff] %v3842_v44  ;;  %v3861_v44 = vrot.slane %v3642_v63, 2 }
  0x9f   : > { %6340 = vst [vmem:[#allocation36_spill] sm:$0xff] %v3844_v2  ;;  %v3847_v1 = vpop.permute.xlu0 %393  ;;  %v513_v2 = vrot.slane %v3645_v4, 2 }
  0xa0   : > { %6341 = vst [vmem:[#allocation37_spill] sm:$0xff] %v3847_v1 }
  0xa1   : > { %6344 = vst [vmem:[#allocation40_spill] sm:$0xff] %v3861_v44 }
  0xa3   : > { %568 = vrot.lane.b32.xlu2 %v3837_v53, %s3361_s9  ;;  %566 = vrot.lane.b32.xlu1 %v3851_v11, %s3361_s9  ;;  %v3875_v53 = vsel %vm471_vm1, %v513_v2, %v3861_v44  ;;  %v3878_v11 = vsel %vm471_vm1, %v512_v61, %v513_v2  ;;  %v517_v2 = vrot.slane %v3682_v29, 2 }
  0xa4   : > { %6348 = vst [vmem:[#allocation44_spill] sm:$0xff] %v3875_v53 }
  0xa5   : > { %564 = vrot.lane.b32.xlu0 %v3854_v60, %s3361_s9  ;;  %v3866_v1 = vpop.permute.xlu2 %421  ;;  %v3868_v12 = vpop.permute.xlu1 %401 }
  0xa6   : > { %6345 = vst [vmem:[#allocation41_spill] sm:$0xff] %v3866_v1  ;;  %v3885_v1 = vrot.slane %v3669_v20, 2 }
  0xa7   : > { %6346 = vst [vmem:[#allocation42_spill] sm:$0xff] %v3868_v12  ;;  %v3871_v5 = vpop.permute.xlu0 %399  ;;  %v518_v12 = vrot.slane %v3672_v21, 2 }
  0xa8   : > { %6347 = vst [vmem:[#allocation43_spill] sm:$0xff] %v3871_v5 }
  0xa9   : > { %6349 = vst [vmem:[#allocation45_spill] sm:$0xff] %v3885_v1 }
  0xab   : > { %574 = vrot.lane.b32.xlu2 %v3861_v44, %s3361_s9  ;;  %572 = vrot.lane.b32.xlu1 %v3875_v53, %s3361_s9  ;;  %v3899_v44 = vsel %vm471_vm1, %v518_v12, %v3885_v1  ;;  %v3902_v53 = vsel %vm471_vm1, %v517_v2, %v518_v12 }
  0xac   : > { %6353 = vst [vmem:[#allocation49_spill] sm:$0xff] %v3899_v44 }
  0xad   : > { %570 = vrot.lane.b32.xlu0 %v3878_v11, %s3361_s9  ;;  %v3890_v5 = vpop.permute.xlu2 %427  ;;  %v3892_v60 = vpop.permute.xlu1 %407  ;;  %6354 = vst [vmem:[#allocation50_spill] sm:$0xff] %v3902_v53 }
  0xae   : > { %6350 = vst [vmem:[#allocation46_spill] sm:$0xff] %v3890_v5 }
  0xaf   : > { %6351 = vst [vmem:[#allocation47_spill] sm:$0xff] %v3892_v60  ;;  %v3895_v61 = vpop.permute.xlu0 %405 }
  0xb0   : > { %6352 = vst [vmem:[#allocation48_spill] sm:$0xff] %v3895_v61 }
  0xb3   : > { %580 = vrot.lane.b32.xlu2 %v3885_v1, %s3361_s9  ;;  %578 = vrot.lane.b32.xlu1 %v3899_v44, %s3361_s9 }
  0xb5   : > { %576 = vrot.lane.b32.xlu0 %v3902_v53, %s3361_s9  ;;  %v3910_v5 = vpop.permute.xlu2 %433  ;;  %v3912_v60 = vpop.permute.xlu1 %413 }
  0xb6   : > { %6355 = vst [vmem:[#allocation51_spill] sm:$0xff] %v3910_v5 }
  0xb7   : > { %6356 = vst [vmem:[#allocation52_spill] sm:$0xff] %v3912_v60  ;;  %v3914_v61 = vpop.permute.xlu0 %411 }
  0xb8   : > { %6357 = vst [vmem:[#allocation53_spill] sm:$0xff] %v3914_v61 }
  0xbb   : > { %619 = vrot.lane.b32.xlu2 %v3445_v0, %s3362_s10  ;;  %617 = vrot.lane.b32.xlu1 %v3462_v7, %s3362_s10 }
  0xbd   : > { %615 = vrot.lane.b32.xlu0 %v3465_v8, %s3362_s10  ;;  %v3922_v12 = vpop.permute.xlu2 %439  ;;  %v3924_v2 = vpop.permute.xlu1 %419 }
  0xbe   : > { %6358 = vst [vmem:[#allocation54_spill] sm:$0xff] %v3922_v12 }
  0xbf   : > { %6359 = vst [vmem:[#allocation55_spill] sm:$0xff] %v3924_v2  ;;  %v3926_v53 = vpop.permute.xlu0 %417 }
  0xc0   : > { %6360 = vst [vmem:[#allocation56_spill] sm:$0xff] %v3926_v53 }
  0xc3   : > { %625 = vrot.lane.b32.xlu2 %v3483_v15, %s3362_s10  ;;  %623 = vrot.lane.b32.xlu1 %v3486_v16, %s3362_s10 }
  0xc5   : > { %621 = vrot.lane.b32.xlu0 %v3494_v18, %s3362_s10  ;;  %v3934_v0 = vpop.permute.xlu2 %526  ;;  %v3936_v7 = vpop.permute.xlu1 %425 }
  0xc6   : > { %6361 = vst [vmem:[#allocation57_spill] sm:$0xff] %v3934_v0 }
  0xc7   : > { %6362 = vst [vmem:[#allocation58_spill] sm:$0xff] %v3936_v7  ;;  %v3938_v8 = vpop.permute.xlu0 %423 }
  0xc8   : > { %6363 = vst [vmem:[#allocation59_spill] sm:$0xff] %v3938_v8 }
  0xcb   : > { %631 = vrot.lane.b32.xlu2 %v3507_v23, %s3362_s10  ;;  %629 = vrot.lane.b32.xlu1 %v3510_v24, %s3362_s10 }
  0xcd   : > { %627 = vrot.lane.b32.xlu0 %v3520_v26, %s3362_s10  ;;  %v3946_v12 = vpop.permute.xlu2 %532  ;;  %v3948_v5 = vpop.permute.xlu1 %431 }
  0xce   : > { %6364 = vst [vmem:[#allocation60_spill] sm:$0xff] %v3946_v12 }
  0xcf   : > { %6365 = vst [vmem:[#allocation61_spill] sm:$0xff] %v3948_v5  ;;  %v3950_v2 = vpop.permute.xlu0 %429 }
  0xd0   : > { %6366 = vst [vmem:[#allocation62_spill] sm:$0xff] %v3950_v2 }
  0xd3   : > { %637 = vrot.lane.b32.xlu2 %v3534_v31, %s3362_s10  ;;  %635 = vrot.lane.b32.xlu1 %v3537_v32, %s3362_s10 }
  0xd5   : > { %633 = vrot.lane.b32.xlu0 %v3547_v34, %s3362_s10  ;;  %v3958_v7 = vpop.permute.xlu2 %538  ;;  %v3960_v8 = vpop.permute.xlu1 %437 }
  0xd6   : > { %6367 = vst [vmem:[#allocation63_spill] sm:$0xff] %v3958_v7 }
  0xd7   : > { %6368 = vst [vmem:[#allocation64_spill] sm:$0xff] %v3960_v8  ;;  %v3962_v53 = vpop.permute.xlu0 %435 }
  0xd8   : > { %6369 = vst [vmem:[#allocation65_spill] sm:$0xff] %v3962_v53 }
  0xdb   : > { %643 = vrot.lane.b32.xlu2 %v3561_v39, %s3362_s10  ;;  %641 = vrot.lane.b32.xlu1 %v3564_v40, %s3362_s10 }
  0xdd   : > { %639 = vrot.lane.b32.xlu0 %v3574_v42, %s3362_s10  ;;  %v3970_v5 = vpop.permute.xlu2 %544  ;;  %v3972_v2 = vpop.permute.xlu1 %524 }
  0xde   : > { %6370 = vst [vmem:[#allocation66_spill] sm:$0xff] %v3970_v5 }
  0xdf   : > { %6371 = vst [vmem:[#allocation67_spill] sm:$0xff] %v3972_v2  ;;  %v3974_v60 = vpop.permute.xlu0 %522 }
  0xe0   : > { %6372 = vst [vmem:[#allocation68_spill] sm:$0xff] %v3974_v60 }
  0xe3   : > { %649 = vrot.lane.b32.xlu2 %v3588_v47, %s3362_s10  ;;  %647 = vrot.lane.b32.xlu1 %v3591_v48, %s3362_s10 }
  0xe5   : > { %645 = vrot.lane.b32.xlu0 %v3601_v50, %s3362_s10  ;;  %v3982_v8 = vpop.permute.xlu2 %550  ;;  %v3984_v53 = vpop.permute.xlu1 %530 }
  0xe6   : > { %6373 = vst [vmem:[#allocation69_spill] sm:$0xff] %v3982_v8 }
  0xe7   : > { %6374 = vst [vmem:[#allocation70_spill] sm:$0xff] %v3984_v53  ;;  %v3986_v61 = vpop.permute.xlu0 %528 }
  0xe8   : > { %6375 = vst [vmem:[#allocation71_spill] sm:$0xff] %v3986_v61 }
  0xeb   : > { %655 = vrot.lane.b32.xlu2 %v3615_v55, %s3362_s10  ;;  %653 = vrot.lane.b32.xlu1 %v3618_v56, %s3362_s10 }
  0xed   : > { %651 = vrot.lane.b32.xlu0 %v3628_v58, %s3362_s10  ;;  %v3994_v5 = vpop.permute.xlu2 %556  ;;  %v3996_v7 = vpop.permute.xlu1 %536 }
  0xee   : > { %6376 = vst [vmem:[#allocation72_spill] sm:$0xff] %v3994_v5 }
  0xef   : > { %6377 = vst [vmem:[#allocation73_spill] sm:$0xff] %v3996_v7  ;;  %v3998_v8 = vpop.permute.xlu0 %534 }
  0xf0   : > { %6378 = vst [vmem:[#allocation74_spill] sm:$0xff] %v3998_v8 }
  0xf3   : > { %661 = vrot.lane.b32.xlu2 %v3642_v63, %s3362_s10  ;;  %659 = vrot.lane.b32.xlu1 %v3645_v4, %s3362_s10 }
  0xf5   : > { %657 = vrot.lane.b32.xlu0 %v3655_v9, %s3362_s10  ;;  %v4006_v12 = vpop.permute.xlu2 %562  ;;  %v4008_v53 = vpop.permute.xlu1 %542 }
  0xf6   : > { %6379 = vst [vmem:[#allocation75_spill] sm:$0xff] %v4006_v12  ;;  %v4025_v12 = vld [vmem:[%s3442_s7 + $0x100] sm:$0xf] }
  0xf7   : > { %6380 = vst [vmem:[#allocation76_spill] sm:$0xff] %v4008_v53  ;;  %v4010_v5 = vpop.permute.xlu0 %540  ;;  %v4028_v53 = vld [vmem:[%s3442_s7 + $0xf8] sm:$0xff] }
  0xf8   : > { %6381 = vst [vmem:[#allocation77_spill] sm:$0xff] %v4010_v5  ;;  %v4031_v5 = vld [vmem:[%s3442_s7 + $0xf0] sm:$0xff] }
  0xfb   : > { %667 = vrot.lane.b32.xlu2 %v3669_v20, %s3362_s10  ;;  %665 = vrot.lane.b32.xlu1 %v3672_v21, %s3362_s10 }
  0xfd   : > { %663 = vrot.lane.b32.xlu0 %v3682_v29, %s3362_s10  ;;  %v4018_v7 = vpop.permute.xlu2 %568  ;;  %v4020_v8 = vpop.permute.xlu1 %548 }
  0xfe   : > { %6382 = vst [vmem:[#allocation78_spill] sm:$0xff] %v4018_v7 }
  0xff   : > { %6383 = vst [vmem:[#allocation79_spill] sm:$0xff] %v4020_v8  ;;  %v4022_v61 = vpop.permute.xlu0 %546 }
 0x100   : > { %6384 = vst [vmem:[#allocation80_spill] sm:$0xff] %v4022_v61 }
 0x103   : > { %673 = vrot.lane.b32.xlu2 %v4025_v12, %s3362_s10  ;;  %671 = vrot.lane.b32.xlu1 %v4028_v53, %s3362_s10 }
 0x105   : > { %669 = vrot.lane.b32.xlu0 %v4031_v5, %s3362_s10  ;;  %v4039_v7 = vpop.permute.xlu2 %574  ;;  %v4041_v8 = vpop.permute.xlu1 %554 }
 0x106   : > { %6385 = vst [vmem:[#allocation81_spill] sm:$0xff] %v4039_v7 }
 0x107   : > { %6386 = vst [vmem:[#allocation82_spill] sm:$0xff] %v4041_v8  ;;  %v4043_v61 = vpop.permute.xlu0 %552 }
 0x108   : > { %6387 = vst [vmem:[#allocation83_spill] sm:$0xff] %v4043_v61 }
 0x10b   : > { %714 = vrot.lane.b32.xlu2 %v3454_v3, %s3363_s11  ;;  %712 = vrot.lane.b32.xlu1 %v3477_v13, %s3363_s11 }
 0x10d   : > { %710 = vrot.lane.b32.xlu0 %v3480_v14, %s3363_s11  ;;  %v4051_v0 = vpop.permute.xlu2 %580  ;;  %v4053_v2 = vpop.permute.xlu1 %560 }
 0x10e   : > { %6388 = vst [vmem:[#allocation84_spill] sm:$0xff] %v4051_v0 }
 0x10f   : > { %6389 = vst [vmem:[#allocation85_spill] sm:$0xff] %v4053_v2  ;;  %v4055_v60 = vpop.permute.xlu0 %558 }
 0x110   : > { %6390 = vst [vmem:[#allocation86_spill] sm:$0xff] %v4055_v60 }
 0x113   : > { %720 = vrot.lane.b32.xlu2 %v3497_v19, %s3363_s11  ;;  %718 = vrot.lane.b32.xlu1 %v3504_v22, %s3363_s11 }
 0x115   : > { %716 = vrot.lane.b32.xlu0 %v3513_v25, %s3363_s11  ;;  %v4063_v3 = vpop.permute.xlu2 %619  ;;  %v4065_v13 = vpop.permute.xlu1 %566 }
 0x116   : > { %6391 = vst [vmem:[#allocation87_spill] sm:$0xff] %v4063_v3 }
 0x117   : > { %6392 = vst [vmem:[#allocation88_spill] sm:$0xff] %v4065_v13  ;;  %v4067_v14 = vpop.permute.xlu0 %564 }
 0x118   : > { %6393 = vst [vmem:[#allocation89_spill] sm:$0xff] %v4067_v14 }
 0x11b   : > { %726 = vrot.lane.b32.xlu2 %v3523_v27, %s3363_s11  ;;  %724 = vrot.lane.b32.xlu1 %v3531_v30, %s3363_s11 }
 0x11d   : > { %722 = vrot.lane.b32.xlu0 %v3540_v33, %s3363_s11  ;;  %v4075_v0 = vpop.permute.xlu2 %625  ;;  %v4077_v7 = vpop.permute.xlu1 %572 }
 0x11e   : > { %6394 = vst [vmem:[#allocation90_spill] sm:$0xff] %v4075_v0 }
 0x11f   : > { %6395 = vst [vmem:[#allocation91_spill] sm:$0xff] %v4077_v7  ;;  %v4079_v2 = vpop.permute.xlu0 %570 }
 0x120   : > { %6396 = vst [vmem:[#allocation92_spill] sm:$0xff] %v4079_v2 }
 0x123   : > { %732 = vrot.lane.b32.xlu2 %v3550_v35, %s3363_s11  ;;  %730 = vrot.lane.b32.xlu1 %v3558_v38, %s3363_s11 }
 0x125   : > { %728 = vrot.lane.b32.xlu0 %v3567_v41, %s3363_s11  ;;  %v4087_v13 = vpop.permute.xlu2 %631  ;;  %v4089_v14 = vpop.permute.xlu1 %578 }
 0x126   : > { %6397 = vst [vmem:[#allocation93_spill] sm:$0xff] %v4087_v13 }
 0x127   : > { %6398 = vst [vmem:[#allocation94_spill] sm:$0xff] %v4089_v14  ;;  %v4091_v60 = vpop.permute.xlu0 %576 }
 0x128   : > { %6399 = vst [vmem:[#allocation95_spill] sm:$0xff] %v4091_v60 }
 0x12b   : > { %738 = vrot.lane.b32.xlu2 %v3577_v43, %s3363_s11  ;;  %736 = vrot.lane.b32.xlu1 %v3585_v46, %s3363_s11 }
 0x12d   : > { %734 = vrot.lane.b32.xlu0 %v3594_v49, %s3363_s11  ;;  %v4099_v7 = vpop.permute.xlu2 %637  ;;  %v4101_v2 = vpop.permute.xlu1 %617 }
 0x12e   : > { %6400 = vst [vmem:[#allocation96_spill] sm:$0xff] %v4099_v7 }
 0x12f   : > { %6401 = vst [vmem:[#allocation97_spill] sm:$0xff] %v4101_v2  ;;  %v4103_v8 = vpop.permute.xlu0 %615 }
 0x130   : > { %6402 = vst [vmem:[#allocation98_spill] sm:$0xff] %v4103_v8 }
 0x133   : > { %744 = vrot.lane.b32.xlu2 %v3604_v51, %s3363_s11  ;;  %742 = vrot.lane.b32.xlu1 %v3612_v54, %s3363_s11 }
 0x135   : > { %740 = vrot.lane.b32.xlu0 %v3621_v57, %s3363_s11  ;;  %v4111_v14 = vpop.permute.xlu2 %643  ;;  %v4113_v60 = vpop.permute.xlu1 %623 }
 0x136   : > { %6403 = vst [vmem:[#allocation99_spill] sm:$0xff] %v4111_v14 }
 0x137   : > { %6404 = vst [vmem:[#allocation100_spill] sm:$0xff] %v4113_v60  ;;  %v4115_v61 = vpop.permute.xlu0 %621 }
 0x138   : > { %6405 = vst [vmem:[#allocation101_spill] sm:$0xff] %v4115_v61 }
 0x13b   : > { %750 = vrot.lane.b32.xlu2 %v3631_v59, %s3363_s11  ;;  %748 = vrot.lane.b32.xlu1 %v3639_v62, %s3363_s11 }
 0x13d   : > { %746 = vrot.lane.b32.xlu0 %v3648_v6, %s3363_s11  ;;  %v4123_v7 = vpop.permute.xlu2 %649  ;;  %v4125_v13 = vpop.permute.xlu1 %629 }
 0x13e   : > { %6406 = vst [vmem:[#allocation102_spill] sm:$0xff] %v4123_v7  ;;  %v4146_v7 = vrot.slane %v4025_v12, 1 }
 0x13f   : > { %6407 = vst [vmem:[#allocation103_spill] sm:$0xff] %v4125_v13  ;;  %v4127_v0 = vpop.permute.xlu0 %627  ;;  %v706_v13 = vrot.slane %v4028_v53, 1 }
 0x140   : > { %6408 = vst [vmem:[#allocation104_spill] sm:$0xff] %v4127_v0 }
 0x141   : > { %6412 = vst [vmem:[#allocation108_spill] sm:$0xff] %v4146_v7  ;;  %v4160_v3 = vsel %vm330_vm0, %v706_v13, %v4146_v7 }
 0x142   : > { %6416 = vst [vmem:[#allocation112_spill] sm:$0xff] %v4160_v3 }
 0x143   : > { %756 = vrot.lane.b32.xlu2 %v3658_v10, %s3363_s11  ;;  %754 = vrot.lane.b32.xlu1 %v3666_v17, %s3363_s11 }
 0x145   : > { %752 = vrot.lane.b32.xlu0 %v3675_v28, %s3363_s11  ;;  %v4135_v14 = vpop.permute.xlu2 %655  ;;  %v4137_v60 = vpop.permute.xlu1 %635 }
 0x146   : > { %6409 = vst [vmem:[#allocation105_spill] sm:$0xff] %v4135_v14 }
 0x147   : > { %6410 = vst [vmem:[#allocation106_spill] sm:$0xff] %v4137_v60  ;;  %v4139_v61 = vpop.permute.xlu0 %633  ;;  %v705_v60 = vrot.slane %v4031_v5, 1 }
 0x148   : > { %6411 = vst [vmem:[#allocation107_spill] sm:$0xff] %v4139_v61 }
 0x149   : > { %v4163_v2 = vsel %vm330_vm0, %v705_v60, %v706_v13  ;;  %v6421_v60 = vld [vmem:[#allocation8_spill] sm:$0xff]  ;;  %v6422_v13 = vld [vmem:[#allocation9_spill] sm:$0xff] }
 0x14a   : > { %6417 = vst [vmem:[#allocation113_spill] sm:$0xff] %v4163_v2 }
 0x14b   : > { %762 = vrot.lane.b32.xlu2 %v3685_v36, %s3363_s11  ;;  %760 = vrot.lane.b32.xlu1 %v3693_v45, %s3363_s11 }
 0x14d   : > { %758 = vrot.lane.b32.xlu0 %v3696_v52, %s3363_s11  ;;  %v4151_v0 = vpop.permute.xlu2 %661  ;;  %v4153_v14 = vpop.permute.xlu1 %641 }
 0x14e   : > { %6413 = vst [vmem:[#allocation109_spill] sm:$0xff] %v4151_v0 }
 0x14f   : > { %6414 = vst [vmem:[#allocation110_spill] sm:$0xff] %v4153_v14  ;;  %v4156_v61 = vpop.permute.xlu0 %639 }
 0x150   : > { %6415 = vst [vmem:[#allocation111_spill] sm:$0xff] %v4156_v61 }
 0x153   : > { %768 = vrot.lane.b32.xlu2 %v4146_v7, %s3363_s11  ;;  %766 = vrot.lane.b32.xlu1 %v4160_v3, %s3363_s11 }
 0x155   : > { %764 = vrot.lane.b32.xlu0 %v4163_v2, %s3363_s11  ;;  %v4171_v0 = vpop.permute.xlu2 %667  ;;  %v4173_v14 = vpop.permute.xlu1 %647 }
 0x156   : > { %6418 = vst [vmem:[#allocation114_spill] sm:$0xff] %v4171_v0  ;;  %v6426_v0 = vld [vmem:[#allocation10_spill] sm:$0xff] }
 0x157   : > { %6419 = vst [vmem:[#allocation115_spill] sm:$0xff] %v4173_v14  ;;  %v4175_v61 = vpop.permute.xlu0 %645  ;;  %v6427_v14 = vld [vmem:[#allocation12_spill] sm:$0xff] }
 0x158   : > { %6420 = vst [vmem:[#allocation116_spill] sm:$0xff] %v4175_v61 }
 0x15b   : > { %809 = vrot.lane.b32.xlu2 %v3712_v37, %s3364_s12  ;;  %807 = vrot.lane.b32.xlu1 %v6421_v60, %s3364_s12  ;;  %v6428_v37 = vld [vmem:[#allocation13_spill] sm:$0xff] }
 0x15d   : > { %805 = vrot.lane.b32.xlu0 %v6422_v13, %s3364_s12  ;;  %v4183_v3 = vpop.permute.xlu2 %673  ;;  %v4185_v7 = vpop.permute.xlu1 %653 }
 0x15e   : > { %6423 = vst [vmem:[#allocation8_spill] sm:$0xff] %v4183_v3  ;;  %v6432_v3 = vld [vmem:[#allocation14_spill] sm:$0xff] }
 0x15f   : > { %6424 = vst [vmem:[#allocation9_spill] sm:$0xff] %v4185_v7  ;;  %v4187_v8 = vpop.permute.xlu0 %651  ;;  %v6433_v7 = vld [vmem:[#allocation16_spill] sm:$0xff] }
 0x160   : > { %6425 = vst [vmem:[#allocation117_spill] sm:$0xff] %v4187_v8  ;;  %v6434_v8 = vld [vmem:[#allocation17_spill] sm:$0xff] }
 0x163   : > { %815 = vrot.lane.b32.xlu2 %v6426_v0, %s3364_s12  ;;  %813 = vrot.lane.b32.xlu1 %v6427_v14, %s3364_s12 }
 0x165   : > { %811 = vrot.lane.b32.xlu0 %v6428_v37, %s3364_s12  ;;  %v4195_v61 = vpop.permute.xlu2 %714  ;;  %v4197_v60 = vpop.permute.xlu1 %659 }
 0x166   : > { %6429 = vst [vmem:[#allocation10_spill] sm:$0xff] %v4195_v61  ;;  %v6438_v61 = vld [vmem:[#allocation18_spill] sm:$0xff] }
 0x167   : > { %6430 = vst [vmem:[#allocation12_spill] sm:$0xff] %v4197_v60  ;;  %v4199_v13 = vpop.permute.xlu0 %657  ;;  %v6439_v60 = vld [vmem:[#allocation20_spill] sm:$0xff] }
 0x168   : > { %6431 = vst [vmem:[#allocation13_spill] sm:$0xff] %v4199_v13  ;;  %v6440_v13 = vld [vmem:[#allocation21_spill] sm:$0xff] }
 0x16b   : > { %821 = vrot.lane.b32.xlu2 %v6432_v3, %s3364_s12  ;;  %819 = vrot.lane.b32.xlu1 %v6433_v7, %s3364_s12 }
 0x16d   : > { %817 = vrot.lane.b32.xlu0 %v6434_v8, %s3364_s12  ;;  %v4207_v45 = vpop.permute.xlu2 %720  ;;  %v4209_v36 = vpop.permute.xlu1 %665 }
 0x16e   : > { %6435 = vst [vmem:[#allocation16_spill] sm:$0xff] %v4207_v45  ;;  %v6444_v45 = vld [vmem:[#allocation22_spill] sm:$0xff] }
 0x16f   : > { %6436 = vst [vmem:[#allocation17_spill] sm:$0xff] %v4209_v36  ;;  %v4211_v2 = vpop.permute.xlu0 %663  ;;  %v6445_v36 = vld [vmem:[#allocation26_spill] sm:$0xff] }
 0x170   : > { %6437 = vst [vmem:[#allocation118_spill] sm:$0xff] %v4211_v2  ;;  %v6446_v2 = vld [vmem:[#allocation27_spill] sm:$0xff] }
 0x173   : > { %827 = vrot.lane.b32.xlu2 %v6438_v61, %s3364_s12  ;;  %825 = vrot.lane.b32.xlu1 %v6439_v60, %s3364_s12 }
 0x175   : > { %823 = vrot.lane.b32.xlu0 %v6440_v13, %s3364_s12  ;;  %v4219_v10 = vpop.permute.xlu2 %726  ;;  %v4221_v52 = vpop.permute.xlu1 %671 }
 0x176   : > { %6441 = vst [vmem:[#allocation18_spill] sm:$0xff] %v4219_v10  ;;  %v6450_v10 = vld [vmem:[#allocation28_spill] sm:$0xff] }
 0x177   : > { %6442 = vst [vmem:[#allocation21_spill] sm:$0xff] %v4221_v52  ;;  %v4223_v17 = vpop.permute.xlu0 %669  ;;  %v6451_v52 = vld [vmem:[#allocation32_spill] sm:$0xff] }
 0x178   : > { %6443 = vst [vmem:[#allocation119_spill] sm:$0xff] %v4223_v17  ;;  %v6452_v17 = vld [vmem:[#allocation33_spill] sm:$0xff] }
 0x17b   : > { %833 = vrot.lane.b32.xlu2 %v6444_v45, %s3364_s12  ;;  %831 = vrot.lane.b32.xlu1 %v6445_v36, %s3364_s12 }
 0x17d   : > { %829 = vrot.lane.b32.xlu0 %v6446_v2, %s3364_s12  ;;  %v4231_v28 = vpop.permute.xlu2 %732  ;;  %v4233_v3 = vpop.permute.xlu1 %712 }
 0x17e   : > { %6447 = vst [vmem:[#allocation120_spill] sm:$0xff] %v4231_v28  ;;  %v6456_v28 = vld [vmem:[#allocation34_spill] sm:$0xff] }
 0x17f   : > { %6448 = vst [vmem:[#allocation121_spill] sm:$0xff] %v4233_v3  ;;  %v4235_v60 = vpop.permute.xlu0 %710  ;;  %v6457_v3 = vld [vmem:[#allocation38_spill] sm:$0xff] }
 0x180   : > { %6449 = vst [vmem:[#allocation122_spill] sm:$0xff] %v4235_v60  ;;  %v6458_v60 = vld [vmem:[#allocation39_spill] sm:$0xff] }
 0x183   : > { %839 = vrot.lane.b32.xlu2 %v6450_v10, %s3364_s12  ;;  %837 = vrot.lane.b32.xlu1 %v6451_v52, %s3364_s12 }
 0x185   : > { %835 = vrot.lane.b32.xlu0 %v6452_v17, %s3364_s12  ;;  %v4243_v45 = vpop.permute.xlu2 %738  ;;  %v4245_v36 = vpop.permute.xlu1 %718 }
 0x186   : > { %6453 = vst [vmem:[#allocation123_spill] sm:$0xff] %v4243_v45  ;;  %v6462_v45 = vld [vmem:[#allocation40_spill] sm:$0xff] }
 0x187   : > { %6454 = vst [vmem:[#allocation124_spill] sm:$0xff] %v4245_v36  ;;  %v4247_v2 = vpop.permute.xlu0 %716  ;;  %v6463_v36 = vld [vmem:[#allocation44_spill] sm:$0xff] }
 0x188   : > { %6455 = vst [vmem:[#allocation125_spill] sm:$0xff] %v4247_v2 }
 0x18b   : > { %845 = vrot.lane.b32.xlu2 %v6456_v28, %s3364_s12  ;;  %843 = vrot.lane.b32.xlu1 %v6457_v3, %s3364_s12 }
 0x18d   : > { %841 = vrot.lane.b32.xlu0 %v6458_v60, %s3364_s12  ;;  %v4255_v10 = vpop.permute.xlu2 %744  ;;  %v4257_v52 = vpop.permute.xlu1 %724 }
 0x18e   : > { %6459 = vst [vmem:[#allocation39_spill] sm:$0xff] %v4255_v10  ;;  %v801_v10 = vrot.slane %v4028_v53, 2 }
 0x18f   : > { %6460 = vst [vmem:[#allocation126_spill] sm:$0xff] %v4257_v52  ;;  %v4259_v17 = vpop.permute.xlu0 %722  ;;  %v4279_v52 = vrot.slane %v4025_v12, 2 }
 0x190   : > { %6461 = vst [vmem:[#allocation127_spill] sm:$0xff] %v4259_v17  ;;  %v6468_v17 = vld [vmem:[#allocation50_spill] sm:$0xff] }
 0x191   : > { %6467 = vst [vmem:[#allocation130_spill] sm:$0xff] %v4279_v52 }
 0x193   : > { %851 = vrot.lane.b32.xlu2 %v6462_v45, %s3364_s12  ;;  %849 = vrot.lane.b32.xlu1 %v6463_v36, %s3364_s12 }
 0x195   : > { %847 = vrot.lane.b32.xlu0 %v3878_v11, %s3364_s12  ;;  %v4267_v2 = vpop.permute.xlu2 %750  ;;  %v4269_v28 = vpop.permute.xlu1 %730 }
 0x196   : > { %6464 = vst [vmem:[#allocation44_spill] sm:$0xff] %v4267_v2 }
 0x197   : > { %6465 = vst [vmem:[#allocation128_spill] sm:$0xff] %v4269_v28  ;;  %v4271_v3 = vpop.permute.xlu0 %728  ;;  %v800_v28 = vrot.slane %v4031_v5, 2 }
 0x198   : > { %6466 = vst [vmem:[#allocation129_spill] sm:$0xff] %v4271_v3 }
 0x19b   : > { %857 = vrot.lane.b32.xlu2 %v3885_v1, %s3364_s12  ;;  %855 = vrot.lane.b32.xlu1 %v3899_v44, %s3364_s12  ;;  %v4292_v1 = vsel %vm471_vm1, %v801_v10, %v4279_v52  ;;  %v4295_v44 = vsel %vm471_vm1, %v800_v28, %v801_v10 }
 0x19d   : > { %853 = vrot.lane.b32.xlu0 %v6468_v17, %s3364_s12  ;;  %v4283_v45 = vpop.permute.xlu2 %756  ;;  %v4285_v2 = vpop.permute.xlu1 %736 }
 0x19e   : > { %6469 = vst [vmem:[#allocation50_spill] sm:$0xff] %v4283_v45 }
 0x19f   : > { %6470 = vst [vmem:[#allocation131_spill] sm:$0xff] %v4285_v2  ;;  %v4288_v3 = vpop.permute.xlu0 %734 }
 0x1a0   : > { %6471 = vst [vmem:[#allocation132_spill] sm:$0xff] %v4288_v3 }
 0x1a3   : > { %863 = vrot.lane.b32.xlu2 %v4279_v52, %s3364_s12  ;;  %861 = vrot.lane.b32.xlu1 %v4292_v1, %s3364_s12 }
 0x1a5   : > { %859 = vrot.lane.b32.xlu0 %v4295_v44, %s3364_s12  ;;  %v4303_v45 = vpop.permute.xlu2 %762  ;;  %v4305_v2 = vpop.permute.xlu1 %742  ;;  %s5245_s12 = sshll.u32 %s3342_s18, 3  ;;  %s3368_s18 = smov 40  }
 0x1a6   : > { %6472 = vst [vmem:[#allocation133_spill] sm:$0xff] %v4303_v45  ;;  %v4421_v45 = vld [vmem:[%s3442_s7 + $0x110] sm:$0xff]  ;;  %p256_p7 = scmp.lt.s32.totalorder %s5245_s12, 15 }
 0x1a7   : > { %v4307_v3 = vpop.permute.xlu0 %740 }
 0x1ab   : > { %902 = vrot.lane.b32.xlu2 %v3483_v15, %s3365_s13  ;;  %900 = vrot.lane.b32.xlu1 %v3486_v16, %s3365_s13 }
 0x1ad   : > { %898 = vrot.lane.b32.xlu0 %v3494_v18, %s3365_s13  ;;  %v4315_v10 = vpop.permute.xlu2 %768  ;;  %v4317_v28 = vpop.permute.xlu1 %748 }
 0x1ae   : > { %6473 = vst [vmem:[#allocation134_spill] sm:$0xff] %v4315_v10  ;;  %v4418_v10 = vld [vmem:[%s3442_s7 + $0x118] sm:$0xf] }
 0x1af   : > { %6474 = vst [vmem:[#allocation135_spill] sm:$0xff] %v4317_v28  ;;  %v4319_v52 = vpop.permute.xlu0 %746  ;;  %v6526_v28 = vld [vmem:[#allocation98_spill] sm:$0xff] }
 0x1b3   : > { %908 = vrot.lane.b32.xlu2 %v3507_v23, %s3365_s13  ;;  %906 = vrot.lane.b32.xlu1 %v3510_v24, %s3365_s13 }
 0x1b5   : > { %904 = vrot.lane.b32.xlu0 %v3520_v26, %s3365_s13  ;;  %v4327_v15 = vpop.permute.xlu2 %809  ;;  %v4329_v16 = vpop.permute.xlu1 %754 }
 0x1b6   : > { %6475 = vst [vmem:[#allocation136_spill] sm:$0xff] %v4329_v16 }
 0x1b7   : > { %v4331_v18 = vpop.permute.xlu0 %752 }
 0x1b8   : > { %6476 = vst [vmem:[#allocation137_spill] sm:$0xff] %v4331_v18 }
 0x1bb   : > { %914 = vrot.lane.b32.xlu2 %v3534_v31, %s3365_s13  ;;  %912 = vrot.lane.b32.xlu1 %v3537_v32, %s3365_s13 }
 0x1bd   : > { %910 = vrot.lane.b32.xlu0 %v3547_v34, %s3365_s13  ;;  %v4339_v23 = vpop.permute.xlu2 %815  ;;  %v4341_v24 = vpop.permute.xlu1 %760 }
 0x1be   : > { %6477 = vst [vmem:[#allocation138_spill] sm:$0xff] %v4341_v24 }
 0x1bf   : > { %v4343_v26 = vpop.permute.xlu0 %758 }
 0x1c0   : > { %6478 = vst [vmem:[#allocation139_spill] sm:$0xff] %v4343_v26 }
 0x1c3   : > { %920 = vrot.lane.b32.xlu2 %v3561_v39, %s3365_s13  ;;  %918 = vrot.lane.b32.xlu1 %v3564_v40, %s3365_s13 }
 0x1c5   : > { %916 = vrot.lane.b32.xlu0 %v3574_v42, %s3365_s13  ;;  %v4351_v31 = vpop.permute.xlu2 %821  ;;  %v4353_v32 = vpop.permute.xlu1 %766 }
 0x1c6   : > { %6479 = vst [vmem:[#allocation140_spill] sm:$0xff] %v4353_v32  ;;  %v4424_v32 = vld [vmem:[%s3442_s7 + $0x108] sm:$0xff] }
 0x1c7   : > { %v4355_v34 = vpop.permute.xlu0 %764 }
 0x1c8   : > { %6480 = vst [vmem:[#allocation141_spill] sm:$0xff] %v4355_v34 }
 0x1cb   : > { %926 = vrot.lane.b32.xlu2 %v3588_v47, %s3365_s13  ;;  %924 = vrot.lane.b32.xlu1 %v3591_v48, %s3365_s13 }
 0x1cd   : > { %922 = vrot.lane.b32.xlu0 %v3601_v50, %s3365_s13  ;;  %v4363_v39 = vpop.permute.xlu2 %827  ;;  %v4365_v40 = vpop.permute.xlu1 %807 }
 0x1cf   : > { %v4367_v42 = vpop.permute.xlu0 %805 }
 0x1d3   : > { %932 = vrot.lane.b32.xlu2 %v3615_v55, %s3365_s13  ;;  %930 = vrot.lane.b32.xlu1 %v3618_v56, %s3365_s13 }
 0x1d5   : > { %928 = vrot.lane.b32.xlu0 %v3628_v58, %s3365_s13  ;;  %v4375_v47 = vpop.permute.xlu2 %833  ;;  %v4377_v48 = vpop.permute.xlu1 %813 }
 0x1d7   : > { %v4379_v50 = vpop.permute.xlu0 %811 }
 0x1db   : > { %938 = vrot.lane.b32.xlu2 %v3642_v63, %s3365_s13  ;;  %936 = vrot.lane.b32.xlu1 %v3645_v4, %s3365_s13 }
 0x1dd   : > { %934 = vrot.lane.b32.xlu0 %v3655_v9, %s3365_s13  ;;  %v4387_v55 = vpop.permute.xlu2 %839  ;;  %v4389_v56 = vpop.permute.xlu1 %819 }
 0x1de   : > { %6481 = vst [vmem:[#allocation142_spill] sm:$0xff] %v4387_v55 }
 0x1df   : > { %v4391_v58 = vpop.permute.xlu0 %817 }
 0x1e3   : > { %944 = vrot.lane.b32.xlu2 %v3669_v20, %s3365_s13  ;;  %942 = vrot.lane.b32.xlu1 %v3672_v21, %s3365_s13 }
 0x1e5   : > { %940 = vrot.lane.b32.xlu0 %v3682_v29, %s3365_s13  ;;  %v4399_v63 = vpop.permute.xlu2 %845  ;;  %v4401_v4 = vpop.permute.xlu1 %825 }
 0x1e6   : > { %6482 = vst [vmem:[#allocation143_spill] sm:$0xff] %v4399_v63  ;;  %v1517_v63 = vld [vmem:[%s6237_s1 + $0x8] sm:$0xff] }
 0x1e7   : > { %v4403_v9 = vpop.permute.xlu0 %823 }
 0x1eb   : > { %950 = vrot.lane.b32.xlu2 %v4025_v12, %s3365_s13  ;;  %948 = vrot.lane.b32.xlu1 %v4028_v53, %s3365_s13 }
 0x1ed   : > { %946 = vrot.lane.b32.xlu0 %v4031_v5, %s3365_s13  ;;  %v4411_v20 = vpop.permute.xlu2 %851  ;;  %v4413_v21 = vpop.permute.xlu1 %831 }
 0x1ee   : > { %6483 = vst [vmem:[#allocation144_spill] sm:$0xff] %v4411_v20 }
 0x1ef   : > { %v4415_v29 = vpop.permute.xlu0 %829 }
 0x1f3   : > { %956 = vrot.lane.b32.xlu2 %v4418_v10, %s3365_s13  ;;  %954 = vrot.lane.b32.xlu1 %v4421_v45, %s3365_s13 }
 0x1f5   : > { %952 = vrot.lane.b32.xlu0 %v4424_v32, %s3365_s13  ;;  %v4432_v53 = vpop.permute.xlu2 %857  ;;  %v4434_v5 = vpop.permute.xlu1 %837 }
 0x1f6   : > { %6484 = vst [vmem:[#allocation145_spill] sm:$0xff] %v4432_v53 }
 0x1f7   : > { %v4436_v12 = vpop.permute.xlu0 %835 }
 0x1fb   : > { %997 = vrot.lane.b32.xlu2 %v3497_v19, %s3366_s14  ;;  %995 = vrot.lane.b32.xlu1 %v3504_v22, %s3366_s14 }
 0x1fd   : > { %993 = vrot.lane.b32.xlu0 %v3513_v25, %s3366_s14  ;;  %v4444_v34 = vpop.permute.xlu2 %863  ;;  %v4446_v24 = vpop.permute.xlu1 %843 }
 0x1fe   : > { %6485 = vst [vmem:[#allocation146_spill] sm:$0xff] %v4444_v34  ;;  %v6496_v34 = vld [vmem:[#allocation20_spill] sm:$0xff] }
 0x1ff   : > { %6486 = vst [vmem:[#allocation147_spill] sm:$0xff] %v4446_v24  ;;  %v4448_v20 = vpop.permute.xlu0 %841  ;;  %v6525_v24 = vld [vmem:[#allocation68_spill] sm:$0xff] }
 0x200   : > { %6487 = vst [vmem:[#allocation148_spill] sm:$0xff] %v4448_v20 }
 0x203   : > { %1003 = vrot.lane.b32.xlu2 %v3523_v27, %s3366_s14  ;;  %1001 = vrot.lane.b32.xlu1 %v3531_v30, %s3366_s14 }
 0x205   : > { %999 = vrot.lane.b32.xlu0 %v3540_v33, %s3366_s14  ;;  %v4456_v19 = vpop.permute.xlu2 %902  ;;  %v4458_v22 = vpop.permute.xlu1 %849 }
 0x206   : > { %6488 = vst [vmem:[#allocation149_spill] sm:$0xff] %v4458_v22 }
 0x207   : > { %v4460_v25 = vpop.permute.xlu0 %847 }
 0x208   : > { %6489 = vst [vmem:[#allocation150_spill] sm:$0xff] %v4460_v25  ;;  %v989_v25 = vrot.slane %v4421_v45, 1 }
 0x20b   : > { %1009 = vrot.lane.b32.xlu2 %v3550_v35, %s3366_s14  ;;  %1007 = vrot.lane.b32.xlu1 %v3558_v38, %s3366_s14 }
 0x20d   : > { %1005 = vrot.lane.b32.xlu0 %v3567_v41, %s3366_s14  ;;  %v4468_v27 = vpop.permute.xlu2 %908  ;;  %v4470_v30 = vpop.permute.xlu1 %855 }
 0x20e   : > { %6490 = vst [vmem:[#allocation151_spill] sm:$0xff] %v4470_v30 }
 0x20f   : > { %v4472_v33 = vpop.permute.xlu0 %853 }
 0x210   : > { %6491 = vst [vmem:[#allocation152_spill] sm:$0xff] %v4472_v33  ;;  %v6504_v33 = vld [vmem:[#allocation33_spill] sm:$0xff] }
 0x213   : > { %1015 = vrot.lane.b32.xlu2 %v3577_v43, %s3366_s14  ;;  %1013 = vrot.lane.b32.xlu1 %v3585_v46, %s3366_s14 }
 0x215   : > { %1011 = vrot.lane.b32.xlu0 %v3594_v49, %s3366_s14  ;;  %v4480_v35 = vpop.permute.xlu2 %914  ;;  %v4482_v38 = vpop.permute.xlu1 %861 }
 0x216   : > { %6492 = vst [vmem:[#allocation153_spill] sm:$0xff] %v4482_v38  ;;  %v6499_v38 = vld [vmem:[#allocation22_spill] sm:$0xff] }
 0x217   : > { %v4484_v41 = vpop.permute.xlu0 %859 }
 0x218   : > { %6493 = vst [vmem:[#allocation154_spill] sm:$0xff] %v4484_v41  ;;  %v6500_v41 = vld [vmem:[#allocation26_spill] sm:$0xff] }
 0x21b   : > { %1088 = vrot.lane.b32.xlu2 %v6428_v37, %s3367_s15  ;;  %1019 = vrot.lane.b32.xlu1 %v3612_v54, %s3366_s14 }
 0x21d   : > { %1017 = vrot.lane.b32.xlu0 %v3621_v57, %s3366_s14  ;;  %v4492_v43 = vpop.permute.xlu2 %920  ;;  %v4494_v46 = vpop.permute.xlu1 %900 }
 0x21f   : > { %v4496_v49 = vpop.permute.xlu0 %898 }
 0x223   : > { %1090 = vrot.lane.b32.xlu2 %v6427_v14, %s3367_s15  ;;  %1023 = vrot.lane.b32.xlu1 %v3648_v6, %s3366_s14 }
 0x225   : > { %1021 = vrot.lane.b32.xlu0 %v3604_v51, %s3366_s14  ;;  %v4504_v37 = vpop.permute.xlu2 %926  ;;  %v4506_v54 = vpop.permute.xlu1 %906 }
 0x227   : > { %v4508_v57 = vpop.permute.xlu0 %904 }
 0x22b   : > { %1092 = vrot.lane.b32.xlu2 %v6426_v0, %s3367_s15  ;;  %1094 = vrot.lane.b32.xlu1 %v6434_v8, %s3367_s15 }
 0x22d   : > { %1025 = vrot.lane.b32.xlu0 %v3639_v62, %s3366_s14  ;;  %v4516_v14 = vpop.permute.xlu2 %932  ;;  %v4518_v6 = vpop.permute.xlu1 %912 }
 0x22e   : > { %6494 = vst [vmem:[#allocation155_spill] sm:$0xff] %v4516_v14  ;;  %v6527_v14 = vld [vmem:[#allocation122_spill] sm:$0xff] }
 0x22f   : > { %v4520_v51 = vpop.permute.xlu0 %910 }
 0x233   : > { %1100 = vrot.lane.b32.xlu2 %v6440_v13, %s3367_s15  ;;  %1096 = vrot.lane.b32.xlu1 %v6433_v7, %s3367_s15  ;;  %v6497_v13 = vld [vmem:[#allocation14_spill] sm:$0xff] }
 0x235   : > { %1027 = vrot.lane.b32.xlu0 %v3631_v59, %s3366_s14  ;;  %v4528_v0 = vpop.permute.xlu2 %938  ;;  %v4530_v8 = vpop.permute.xlu1 %918 }
 0x236   : > { %6495 = vst [vmem:[#allocation156_spill] sm:$0xff] %v4528_v0  ;;  %v6510_v0 = vld [vmem:[#allocation28_spill] sm:$0xff] }
 0x237   : > { %v4532_v62 = vpop.permute.xlu0 %916 }
 0x23b   : > { %1104 = vrot.lane.b32.xlu2 %v6438_v61, %s3367_s15  ;;  %1102 = vrot.lane.b32.xlu1 %v6496_v34, %s3367_s15  ;;  %v6501_v61 = vld [vmem:[#allocation27_spill] sm:$0xff] }
 0x23d   : > { %1098 = vrot.lane.b32.xlu0 %v6497_v13, %s3367_s15  ;;  %v4540_v53 = vpop.permute.xlu2 %944  ;;  %v4542_v7 = vpop.permute.xlu1 %924 }
 0x23e   : > { %6498 = vst [vmem:[#allocation20_spill] sm:$0xff] %v4540_v53  ;;  %v6503_v53 = vld [vmem:[#allocation32_spill] sm:$0xff] }
 0x23f   : > { %v4544_v59 = vpop.permute.xlu0 %922 }
 0x243   : > { %1110 = vrot.lane.b32.xlu2 %v6499_v38, %s3367_s15  ;;  %1108 = vrot.lane.b32.xlu1 %v6500_v41, %s3367_s15  ;;  %v6505_v38 = vld [vmem:[#allocation4_spill] sm:$0xff] }
 0x245   : > { %1106 = vrot.lane.b32.xlu0 %v6501_v61, %s3367_s15  ;;  %v4552_v30 = vpop.permute.xlu2 %950  ;;  %v4554_v34 = vpop.permute.xlu1 %930 }
 0x246   : > { %6502 = vst [vmem:[#allocation14_spill] sm:$0xff] %v4552_v30  ;;  %v6509_v30 = vld [vmem:[#allocation3_spill] sm:$0xff] }
 0x247   : > { %v4556_v13 = vpop.permute.xlu0 %928 }
 0x24b   : > { %1114 = vrot.lane.b32.xlu2 %v6503_v53, %s3367_s15  ;;  %1112 = vrot.lane.b32.xlu1 %v6504_v33, %s3367_s15 }
 0x24d   : > { %1029 = vrot.lane.b32.xlu0 %v6505_v38, %s3366_s14  ;;  %v4564_v26 = vpop.permute.xlu2 %956  ;;  %v4566_v41 = vpop.permute.xlu1 %936 }
 0x24e   : > { %6506 = vst [vmem:[#allocation22_spill] sm:$0xff] %v4564_v26  ;;  %v1520_v26 = vld [vmem:[%s6237_s1 + $0x20] sm:$0xf] }
 0x24f   : > { %6507 = vst [vmem:[#allocation26_spill] sm:$0xff] %v4566_v41  ;;  %v4568_v61 = vpop.permute.xlu0 %934  ;;  %3171 = vmatpush.msk.msra.mxu0 %vm1692_vm2, %v1520_v26  ;;  %3215 = vmatpush.msk.msra.mxu2 %vm1692_vm2, %v1520_v26  ;;  %v6523_v41 = vld [vmem:[#allocation6_spill] sm:$0xff] }
 0x250   : > { %6508 = vst [vmem:[#allocation27_spill] sm:$0xff] %v4568_v61  ;;  %3216 = vmatpush.msk.msra.mxu3 %vm1692_vm2, %v1520_v26  ;;  %v1516_v26 = vld [vmem:[%s6237_s1] sm:$0xff] }
 0x253   : > { %1031 = vrot.lane.b32.xlu2 %v6509_v30, %s3366_s14  ;;  %1116 = vrot.lane.b32.xlu1 %v6510_v0, %s3367_s15  ;;  %v6513_v30 = vld [vmem:[#allocation7_spill] sm:$0xff]  ;;  %v6514_v0 = vld [vmem:[#allocation2_spill] sm:$0xff] }
 0x255   : > { %1118 = vrot.lane.b32.xlu0 %v6458_v60, %s3367_s15  ;;  %v4576_v53 = vpop.permute.xlu2 %997  ;;  %v4578_v33 = vpop.permute.xlu1 %942  ;;  %v1519_v60 = vld [vmem:[%s6237_s1 + $0x18] sm:$0xff] }
 0x256   : > { %6511 = vst [vmem:[#allocation32_spill] sm:$0xff] %v4578_v33  ;;  %1708 = vmatpush.msra.mxu0 %v1519_v60  ;;  %3217 = vmatpush.msra.mxu2 %v1519_v60  ;;  %v6515_v33 = vld [vmem:[#allocation38_spill] sm:$0xff] }
 0x257   : > { %v4580_v38 = vpop.permute.xlu0 %940  ;;  %3218 = vmatpush.msra.mxu3 %v1519_v60  ;;  %v6518_v60 = vld [vmem:[#allocation34_spill] sm:$0xff] }
 0x258   : > { %6512 = vst [vmem:[#allocation33_spill] sm:$0xff] %v4580_v38 }
 0x25b   : > { %1035 = vrot.lane.b32.xlu2 %v6513_v30, %s3366_s14  ;;  %1033 = vrot.lane.b32.xlu1 %v6514_v0, %s3366_s14  ;;  %v1518_v30 = vld [vmem:[%s6237_s1 + $0x10] sm:$0xff] }
 0x25c   : > { %1709 = vmatpush.msra.mxu0 %v1518_v30  ;;  %3219 = vmatpush.msra.mxu2 %v1518_v30 }
 0x25d   : > { %1120 = vrot.lane.b32.xlu0 %v6515_v33, %s3367_s15  ;;  %v4594_v38 = vpop.permute.xlu2 %1003  ;;  %v4596_v22 = vpop.permute.xlu1 %948  ;;  %v6298_v33 = vrot.slane %v4418_v10, 1  ;;  %3220 = vmatpush.msra.mxu3 %v1518_v30 }
 0x25e   : > { %6516 = vst [vmem:[#allocation4_spill] sm:$0xff] %v4596_v22  ;;  %1710 = vmatpush.msra.mxu0 %v1517_v63  ;;  %3221 = vmatpush.msra.mxu2 %v1517_v63  ;;  %v988_v22 = vrot.slane %v4424_v32, 1 }
 0x25f   : > { %v4601_v0 = vpop.permute.xlu0 %946  ;;  %3222 = vmatpush.msra.mxu3 %v1517_v63  ;;  %v6299_v63 = vrot.slane %v4418_v10, 2 }
 0x260   : > { %6517 = vst [vmem:[#allocation3_spill] sm:$0xff] %v4601_v0  ;;  %1711 = vmatpush.msra.mxu0 %v1516_v26  ;;  %3223 = vmatpush.msra.mxu2 %v1516_v26  ;;  %v4619_v0 = vsel %vm330_vm0, %v989_v25, %v6298_v33  ;;  %v4628_v18 = vsel %vm330_vm0, %v988_v22, %v989_v25  ;;  %v6522_v33 = vld [vmem:[#allocation5_spill] sm:$0xff] }
 0x261   : > { %3224 = vmatpush.msra.mxu3 %v1516_v26  ;;  %v3290_v25 = vld [vmem:[%s3442_s7] sm:$0xff] }
 0x262   : > { %v6524_v26 = vld [vmem:[#allocation25_spill] sm:$0xff] }
 0x263   : > { %1126 = vrot.lane.b32.xlu2 %v6463_v36, %s3367_s15  ;;  %1122 = vrot.lane.b32.xlu1 %v6518_v60, %s3367_s15  ;;  %v6521_v60 = vld [vmem:[#allocation113_spill] sm:$0xff] }
 0x265   : > { %1124 = vrot.lane.b32.xlu0 %v3878_v11, %s3367_s15  ;;  %v4623_v16 = vpop.permute.xlu2 %1009  ;;  %v4625_v30 = vpop.permute.xlu1 %954  ;;  %v1084_v11 = vrot.slane %v4421_v45, 2 }
 0x266   : > { %6519 = vst [vmem:[#allocation28_spill] sm:$0xff] %v4625_v30 }
 0x267   : > { %v4630_v36 = vpop.permute.xlu0 %952  ;;  %v4650_v45 = vsel %vm471_vm1, %v1084_v11, %v6299_v63 }
 0x268   : > { %6520 = vst [vmem:[#allocation7_spill] sm:$0xff] %v4630_v36  ;;  %v1179_v36 = vsel %vm1178_vm3, %v3290_v25, %v6524_v26  ;;  %v6529_v26 = vld [vmem:[#allocation40_spill] sm:$0xff] }
 0x26b   : > { %1041 = vrot.lane.b32.xlu2 %v6521_v60, %s3366_s14  ;;  %1039 = vrot.lane.b32.xlu1 %v6522_v33, %s3366_s14  ;;  %v1210_v33 = vsel %vm1209_vm4, %v1179_v36, %v6525_v24  ;;  %v6528_v24 = vld [vmem:[#allocation49_spill] sm:$0xff]  ;;  %v1083_v36 = vrot.slane %v4424_v32, 2 }
 0x26d   : > { %1037 = vrot.lane.b32.xlu0 %v6523_v41, %s3366_s14  ;;  %v4640_v30 = vpop.permute.xlu2 %1015  ;;  %v996_v22 = vpop.permute.xlu1 %995  ;;  %v1241_v41 = vsel %vm1240_vm5, %v1210_v33, %v6526_v28 }
 0x26e   : > { %v1272_v55 = vsel %vm1271_vm6, %v1241_v41, %v6527_v14  ;;  %v3291_v41 = vld [vmem:[%s3442_s7 + $0x8] sm:$0xff] }
 0x26f   : > { %v994_v60 = vpop.permute.xlu0 %993  ;;  %v1303_v25 = vsel %vm1302_vm7, %v1272_v55, %v4367_v42 }
 0x270   : > { %v1334_v28 = vsel %vm1333_vm8, %v1303_v25, %v4496_v49  ;;  %v6531_v25 = vld [vmem:[#allocation67_spill] sm:$0xff] }
 0x271   : > { %v1365_v14 = vsel %vm1364_vm10, %v1334_v28, %v994_v60  ;;  %v1085_v28 = vsel %vm471_vm1, %v1083_v36, %v1084_v11 }
 0x273   : > { %1132 = vrot.lane.b32.xlu2 %v6528_v24, %s3367_s15  ;;  %1130 = vrot.lane.b32.xlu1 %v6468_v17, %s3367_s15  ;;  %v6530_v24 = vld [vmem:[#allocation31_spill] sm:$0xff] }
 0x274   : > { %v1180_v17 = vsel %vm1178_vm3, %v3291_v41, %v6530_v24  ;;  %v6535_v24 = vld [vmem:[#allocation108_spill] sm:$0xff] }
 0x275   : > { %1128 = vrot.lane.b32.xlu0 %v6529_v26, %s3367_s15  ;;  %v1089_v42 = vpop.permute.xlu2 %1088  ;;  %v4668_v55 = vpop.permute.xlu1 %1001  ;;  %v1211_v60 = vsel %vm1209_vm4, %v1180_v17, %v6531_v25  ;;  %v6532_v26 = vld [vmem:[#allocation97_spill] sm:$0xff] }
 0x276   : > { %v1396_v33 = vsel %vm1395_vm9, %v1365_v14, %v1089_v42  ;;  %v1242_v20 = vsel %vm1240_vm5, %v1211_v60, %v6532_v26  ;;  %v6533_v14 = vld [vmem:[#allocation121_spill] sm:$0xff] }
 0x277   : > { %v1456_v63 = vrot.slane %v1396_v33, 2  ;;  %v1457_v32 = vrot.slane %v1396_v33, 4  ;;  %v1458_v61 = vrot.slane %v1396_v33, 6  ;;  %1525 = vst [vmem:[#allocation1] ss:$4 sm:$0xff] %v1396_v33  ;;  %v4674_v49 = vpop.permute.xlu0 %999  ;;  %v1273_v42 = vsel %vm1271_vm6, %v1242_v20, %v6533_v14  ;;  %v6534_v33 = vld [vmem:[#allocation45_spill] sm:$0xff] }
 0x278   : > { %v1304_v41 = vsel %vm1302_vm7, %v1273_v42, %v4365_v40 }
 0x279   : > { %1527 = vst [vmem:[#allocation1 + $0x1] ss:$4 sm:$0xff] %v1456_v63  ;;  %v1335_v11 = vsel %vm1333_vm8, %v1304_v41, %v4494_v46  ;;  %v6536_v63 = vld [vmem:[#allocation112_spill] sm:$0xff]  ;;  %v6538_v46 = vld [vmem:[#allocation57_spill] sm:$0xff]  ;;  %v6539_v41 = vld [vmem:[#allocation87_spill] sm:$0xff] }
 0x27a   : > { %1529 = vst [vmem:[#allocation1 + $0x2] ss:$4 sm:$0xff] %v1457_v32  ;;  %v1366_v36 = vsel %vm1364_vm10, %v1335_v11, %v996_v22  ;;  %v6537_v32 = vld [vmem:[#allocation24_spill] sm:$0xff] }
 0x27b   : > { %1531 = vst [vmem:[#allocation1 + $0x3] ss:$4 sm:$0xff] %v1458_v61  ;;  %1134 = vrot.lane.b32.xlu2 %v6534_v33, %s3367_s15  ;;  %1045 = vrot.lane.b32.xlu1 %v6535_v24, %s3366_s14  ;;  %v3292_v61 = vld [vmem:[%s3442_s7 + $0x10] sm:$0xf]  ;;  %v6540_v24 = vld [vmem:[#allocation10_spill] sm:$0xff] }
 0x27c   : > { %v1181_v25 = vsel %vm1178_vm3, %v3292_v61, %v6537_v32 }
 0x27d   : > { %1043 = vrot.lane.b32.xlu0 %v6536_v63, %s3366_s14  ;;  %v1091_v20 = vpop.permute.xlu2 %1090  ;;  %v4694_v17 = vpop.permute.xlu1 %1007  ;;  %v1212_v22 = vsel %vm1209_vm4, %v1181_v25, %v6538_v46 }
 0x27e   : > { %v1397_v40 = vsel %vm1395_vm9, %v1366_v36, %v1091_v20  ;;  %v1243_v33 = vsel %vm1240_vm5, %v1212_v22, %v6539_v41  ;;  %v6545_v41 = vld [vmem:[#allocation71_spill] sm:$0xff] }
 0x27f   : > { %v1459_v60 = vrot.slane %v1397_v40, 2  ;;  %v1460_v26 = vrot.slane %v1397_v40, 4  ;;  %v1461_v14 = vrot.slane %v1397_v40, 6  ;;  %1533 = vst [vmem:[#allocation1 + $0x20] ss:$4 sm:$0xff] %v1397_v40  ;;  %v4700_v42 = vpop.permute.xlu0 %1005  ;;  %v1274_v11 = vsel %vm1271_vm6, %v1243_v33, %v6540_v24  ;;  %v6546_v33 = vld [vmem:[#allocation101_spill] sm:$0xff] }
 0x280   : > { %v1305_v63 = vsel %vm1302_vm7, %v1274_v11, %v4327_v15  ;;  %v6547_v11 = vld [vmem:[#allocation125_spill] sm:$0xff] }
 0x281   : > { %1535 = vst [vmem:[#allocation1 + $0x21] ss:$4 sm:$0xff] %v1459_v60  ;;  %v1336_v20 = vsel %vm1333_vm8, %v1305_v63, %v4456_v19  ;;  %v6542_v60 = vrot.slane %v4418_v10, 2 }
 0x282   : > { %v1540_v36 = vld.sshfl [vmem:[#allocation1] sm:$0xff pattern:$0x73625140]  ;;  %1537 = vst [vmem:[#allocation1 + $0x22] ss:$4 sm:$0xff] %v1460_v26  ;;  %v1367_v40 = vsel %vm1364_vm10, %v1336_v20, %v4576_v53  ;;  %v3293_v26 = vld [vmem:[%s3442_s7 + $0x18] sm:$0xff] }
 0x283   : > { %1539 = vst [vmem:[#allocation1 + $0x23] ss:$4 sm:$0xff] %v1461_v14  ;;  %3172 = vmatmul.msk.f32.vlgmr.msra.gmra.mxu0 %vm1645_vm11, %v1540_v36  ;;  %1049 = vrot.lane.b32.xlu2 %v4619_v0, %s3366_s14  ;;  %v6544_v14 = vld [vmem:[#allocation30_spill] sm:$0xff] }
 0x284   : > { %1136 = vrot.lane.b32.xlu1 %v4295_v44, %s3367_s15  ;;  %v6541_v44 = vrot.slane %v4418_v10, 1  ;;  %v1182_v46 = vsel %vm1178_vm3, %v3293_v26, %v6544_v14 }
 0x285   : > { %1047 = vrot.lane.b32.xlu0 %v4628_v18, %s3366_s14  ;;  %v1093_v61 = vpop.permute.xlu2 %1092  ;;  %v4721_v15 = vpop.permute.xlu1 %1013  ;;  %v1213_v10 = vsel %vm1209_vm4, %v1182_v46, %v6545_v41 }
 0x286   : > { %v1398_v32 = vsel %vm1395_vm9, %v1367_v40, %v1093_v61  ;;  %v1244_v24 = vsel %vm1240_vm5, %v1213_v10, %v6546_v33  ;;  %v6551_v33 = vld [vmem:[#allocation70_spill] sm:$0xff] }
 0x287   : > { %1542 = vst [vmem:[#allocation1] ss:$4 sm:$0xff] %v1398_v32  ;;  %v4724_v0 = vpop.permute.xlu0 %1011  ;;  %v3294_v32 = vld [vmem:[%s3442_s7 + $0x20] sm:$0xff] }
 0x28a   : > { %v1541_v25 = vld.sshfl [vmem:[#allocation1 + $0x20] sm:$0xff pattern:$0x73625140] }
 0x28b   : > { %3173 = vmatmul.msk.f32.gmra.mxu0 %vm1645_vm11, %v1541_v25  ;;  %1142 = vrot.lane.b32.xlu2 %v1085_v28, %s3367_s15  ;;  %v6543_v28 = vld [vmem:[#allocation130_spill] sm:$0xff]  ;;  %v6548_v25 = vld [vmem:[#allocation15_spill] sm:$0xff] }
 0x28c   : > { %1138 = vrot.lane.b32.xlu1 %v4292_v1, %s3367_s15 }
 0x28d   : > { %1051 = vrot.lane.b32.xlu0 %v6541_v44, %s3366_s14  ;;  %v4733_v18 = vpop.permute.xlu1 %1019  ;;  %v1101_v53 = vpop.permute.xlu2 %1100  ;;  %v1183_v44 = vsel %vm1178_vm3, %v3294_v32, %v6548_v25  ;;  %v6554_v32 = vld [vmem:[#allocation127_spill] sm:$0xff]  ;;  %s3196_s14 = sadd.s32 4294967295, %s5245_s12  ;;  %s6712_s12 = smov (!%p256_p7, %s5245_s12), 15 }
 0x28f   : > { %v4735_v19 = vpop.permute.xlu0 %1017 }
 0x293   : > { %1146 = vrot.lane.b32.xlu2 %v6542_v60, %s3367_s15  ;;  %v3295_v60 = vld [vmem:[%s3442_s7 + $0x30] sm:$0xff] }
 0x294   : > { %1144 = vrot.lane.b32.xlu1 %v4650_v45, %s3367_s15  ;;  %v1275_v45 = vsel %vm1271_vm6, %v1244_v24, %v6547_v11  ;;  %v1214_v24 = vsel %vm1209_vm4, %v1183_v44, %v6551_v33  ;;  %v6552_v11 = vld [vmem:[#allocation104_spill] sm:$0xff] }
 0x295   : > { %1140 = vrot.lane.b32.xlu0 %v6543_v28, %s3367_s15  ;;  %v4744_v1 = vpop.permute.xlu1 %1023  ;;  %v1306_v36 = vsel %vm1302_vm7, %v1275_v45, %v4379_v50  ;;  %v4763_v40 = vpop.permute.xlu2 %1104  ;;  %v6549_v28 = vld [vmem:[#allocation37_spill] sm:$0xff]  ;;  %v6550_v50 = vld [vmem:[#allocation74_spill] sm:$0xff] }
 0x296   : > { %v1337_v63 = vsel %vm1333_vm8, %v1306_v36, %v4508_v57  ;;  %v1185_v26 = vsel %vm1178_vm3, %v3295_v60, %v6549_v28  ;;  %v6553_v36 = vld [vmem:[#allocation100_spill] sm:$0xff] }
 0x297   : > { %v4749_v22 = vpop.permute.xlu0 %1021  ;;  %v1368_v20 = vsel %vm1364_vm10, %v1337_v63, %v4674_v49  ;;  %v1216_v46 = vsel %vm1209_vm4, %v1185_v26, %v6550_v50  ;;  %v1245_v63 = vsel %vm1240_vm5, %v1214_v24, %v6553_v36  ;;  %v6556_v24 = vld [vmem:[#allocation11_spill] sm:$0xff] }
 0x298   : > { %v1247_v45 = vsel %vm1240_vm5, %v1216_v46, %v6552_v11  ;;  %v3297_v11 = vld [vmem:[%s3442_s7 + $0x38] sm:$0xff] }
 0x29d   : > { %v1095_v61 = vpop.permute.xlu1 %1094 }
 0x29e   : > { %v1399_v14 = vsel %vm1395_vm9, %v1368_v20, %v1095_v61  ;;  %v1278_v20 = vsel %vm1271_vm6, %v1247_v45, %v6554_v32  ;;  %v6555_v61 = vld [vmem:[#allocation124_spill] sm:$0xff] }
 0x29f   : > { %v1462_v57 = vrot.slane %v1399_v14, 2  ;;  %v1463_v41 = vrot.slane %v1399_v14, 4  ;;  %v1464_v10 = vrot.slane %v1399_v14, 6  ;;  %1543 = vst [vmem:[#allocation1 + $0x1] ss:$4 sm:$0xff] %v1399_v14  ;;  %v4774_v49 = vpop.permute.xlu0 %1025  ;;  %v1276_v25 = vsel %vm1271_vm6, %v1245_v63, %v6555_v61  ;;  %v6557_v45 = vld [vmem:[#allocation36_spill] sm:$0xff] }
 0x2a0   : > { %v1309_v60 = vsel %vm1302_vm7, %v1278_v20, %v4391_v58  ;;  %v1307_v44 = vsel %vm1302_vm7, %v1276_v25, %v4377_v48  ;;  %v4800_v48 = vpop.permute.xlu2 %1110  ;;  %v6558_v63 = vld [vmem:[#allocation60_spill] sm:$0xff]  ;;  %v6559_v20 = vld [vmem:[#allocation73_spill] sm:$0xff]  ;;  %v6560_v25 = vld [vmem:[#allocation90_spill] sm:$0xff] }
 0x2a1   : > { %1544 = vst [vmem:[#allocation1 + $0x2] ss:$4 sm:$0xff] %v1462_v57  ;;  %v1340_v28 = vsel %vm1333_vm8, %v1309_v60, %v4520_v51  ;;  %v1338_v26 = vsel %vm1333_vm8, %v1307_v44, %v4506_v54  ;;  %v3296_v54 = vld [vmem:[%s3442_s7 + $0x28] sm:$0xf]  ;;  %v6561_v44 = vld [vmem:[#allocation103_spill] sm:$0xff] }
 0x2a2   : > { %1545 = vst [vmem:[#allocation1 + $0x3] ss:$4 sm:$0xff] %v1463_v41  ;;  %v1371_v14 = vsel %vm1364_vm10, %v1340_v28, %v4700_v42  ;;  %v1369_v50 = vsel %vm1364_vm10, %v1338_v26, %v4668_v55  ;;  %v1184_v42 = vsel %vm1178_vm3, %v3296_v54, %v6556_v24  ;;  %v1186_v55 = vsel %vm1178_vm3, %v3297_v11, %v6557_v45  ;;  %v6562_v26 = vld [vmem:[#allocation16_spill] sm:$0xff] }
 0x2a3   : > { %1546 = vst [vmem:[#allocation1 + $0x20] ss:$4 sm:$0xff] %v1464_v10  ;;  %v1402_v58 = vsel %vm1395_vm9, %v1371_v14, %v1101_v53  ;;  %v1215_v32 = vsel %vm1209_vm4, %v1184_v42, %v6558_v63  ;;  %v1217_v61 = vsel %vm1209_vm4, %v1186_v55, %v6559_v20  ;;  %v3298_v55 = vld [vmem:[%s3442_s7 + $0x48] sm:$0xff]  ;;  %v6565_v63 = vld [vmem:[#allocation19_spill] sm:$0xff] }
 0x2a4   : > { %v1468_v10 = vrot.slane %v1402_v58, 2  ;;  %v1246_v60 = vsel %vm1240_vm5, %v1215_v32, %v6560_v25  ;;  %v1248_v28 = vsel %vm1240_vm5, %v1217_v61, %v6561_v44  ;;  %v6566_v32 = vld [vmem:[#allocation77_spill] sm:$0xff]  ;;  %v1469_v20 = vrot.slane %v1402_v58, 4 }
 0x2a5   : > { %v1097_v46 = vpop.permute.xlu1 %1096  ;;  %v1277_v14 = vsel %vm1271_vm6, %v1246_v60, %v6562_v26  ;;  %v6567_v60 = vld [vmem:[#allocation63_spill] sm:$0xff] }
 0x2a6   : > { %v1400_v57 = vsel %vm1395_vm9, %v1369_v50, %v1097_v46  ;;  %v6563_v50 = vld [vmem:[#allocation126_spill] sm:$0xff] }
 0x2a7   : > { %v1465_v41 = vrot.slane %v1400_v57, 2  ;;  %1547 = vst [vmem:[#allocation1 + $0x21] ss:$4 sm:$0xff] %v1400_v57  ;;  %v4802_v51 = vpop.permute.xlu0 %1027  ;;  %v1466_v33 = vrot.slane %v1400_v57, 4  ;;  %v1467_v36 = vrot.slane %v1400_v57, 6  ;;  %v1279_v46 = vsel %vm1271_vm6, %v1248_v28, %v6563_v50  ;;  %v6568_v28 = vld [vmem:[#allocation107_spill] sm:$0xff] }
 0x2a8   : > { %v1308_v57 = vsel %vm1302_vm7, %v1277_v14, %v4339_v23  ;;  %v6569_v14 = vld [vmem:[#allocation93_spill] sm:$0xff] }
 0x2a9   : > { %v1550_v53 = vld.sshfl [vmem:[#allocation1] sm:$0xff pattern:$0x73625140]  ;;  %1548 = vst [vmem:[#allocation1 + $0x22] ss:$4 sm:$0xff] %v1465_v41  ;;  %v1310_v41 = vsel %vm1302_vm7, %v1279_v46, %v4389_v56  ;;  %v4837_v56 = vpop.permute.xlu2 %1114 }
 0x2aa   : > { %1554 = vst [vmem:[#allocation1 + $0x2] ss:$4 sm:$0xff] %v1402_v58  ;;  %3174 = vmatmul.msk.f32.gmra.mxu0 %vm1645_vm11, %v1550_v53  ;;  %v1341_v24 = vsel %vm1333_vm8, %v1310_v41, %v4518_v6  ;;  %v6564_v53 = vld [vmem:[#allocation43_spill] sm:$0xff]  ;;  %v3299_v6 = vld [vmem:[%s3442_s7 + $0x40] sm:$0xf] }
 0x2ab   : > { %1555 = vst [vmem:[#allocation1 + $0x3] ss:$4 sm:$0xff] %v1468_v10  ;;  %v1339_v10 = vsel %vm1333_vm8, %v1308_v57, %v4468_v27  ;;  %v1188_v27 = vsel %vm1178_vm3, %v3298_v55, %v6564_v53  ;;  %v6570_v46 = vld [vmem:[#allocation129_spill] sm:$0xff] }
 0x2ac   : > { %1549 = vst [vmem:[#allocation1 + $0x23] ss:$4 sm:$0xff] %v1466_v33  ;;  %v1370_v42 = vsel %vm1364_vm10, %v1339_v10, %v4594_v38  ;;  %v1372_v33 = vsel %vm1364_vm10, %v1341_v24, %v4694_v17  ;;  %v1187_v38 = vsel %vm1178_vm3, %v3299_v6, %v6565_v63  ;;  %v1219_v17 = vsel %vm1209_vm4, %v1188_v27, %v6566_v32  ;;  %v3300_v24 = vld [vmem:[%s3442_s7 + $0x50] sm:$0xff]  ;;  %v6573_v27 = vld [vmem:[#allocation76_spill] sm:$0xff]  ;;  %v6574_v32 = vld [vmem:[#allocation106_spill] sm:$0xff] }
 0x2ad   : > { %1552 = vst [vmem:[#allocation1] ss:$4 sm:$0xff] %v1467_v36  ;;  %v1103_v54 = vpop.permute.xlu1 %1102  ;;  %v1470_v36 = vrot.slane %v1402_v58, 6  ;;  %v1218_v44 = vsel %vm1209_vm4, %v1187_v38, %v6567_v60  ;;  %v1250_v26 = vsel %vm1240_vm5, %v1219_v17, %v6568_v28  ;;  %v6571_v58 = vld [vmem:[#allocation18_spill] sm:$0xff]  ;;  %v3301_v60 = vld [vmem:[%s3442_s7 + $0x60] sm:$0xff] }
 0x2ae   : > { %v1403_v23 = vsel %vm1395_vm9, %v1372_v33, %v1103_v54  ;;  %v1249_v50 = vsel %vm1240_vm5, %v1218_v44, %v6569_v14  ;;  %v1281_v57 = vsel %vm1271_vm6, %v1250_v26, %v6570_v46  ;;  %v6576_v44 = vld [vmem:[#allocation48_spill] sm:$0xff] }
 0x2af   : > { %v1099_v11 = vpop.permute.xlu0 %1098  ;;  %v1471_v25 = vrot.slane %v1403_v23, 2  ;;  %v1280_v54 = vsel %vm1271_vm6, %v1249_v50, %v6571_v58  ;;  %v1312_v10 = vsel %vm1302_vm7, %v1281_v57, %v4403_v9  ;;  %v1473_v55 = vrot.slane %v1403_v23, 6  ;;  %v6577_v14 = vld [vmem:[#allocation80_spill] sm:$0xff] }
 0x2b0   : > { %v1401_v45 = vsel %vm1395_vm9, %v1370_v42, %v1099_v11  ;;  %v6572_v42 = vld [vmem:[#allocation42_spill] sm:$0xff]  ;;  %v1311_v11 = vsel %vm1302_vm7, %v1280_v54, %v4351_v31  ;;  %v1472_v63 = vrot.slane %v1403_v23, 4  ;;  %v1191_v28 = vsel %vm1178_vm3, %v3301_v60, %v6576_v44  ;;  %v3302_v58 = vld [vmem:[%s3442_s7 + $0x58] sm:$0xf]  ;;  %v6578_v54 = vld [vmem:[#allocation23_spill] sm:$0xff] }
 0x2b1   : > { %1553 = vst [vmem:[#allocation1 + $0x1] ss:$4 sm:$0xff] %v1401_v45  ;;  %v1189_v33 = vsel %vm1178_vm3, %v3300_v24, %v6572_v42  ;;  %v1343_v45 = vsel %vm1333_vm8, %v1312_v10, %v4532_v62  ;;  %v1342_v9 = vsel %vm1333_vm8, %v1311_v11, %v4480_v35  ;;  %v1222_v50 = vsel %vm1209_vm4, %v1191_v28, %v6577_v14  ;;  %v6579_v24 = vld [vmem:[#allocation111_spill] sm:$0xff] }
 0x2b2   : > { %v1374_v6 = vsel %vm1364_vm10, %v1343_v45, %v4724_v0  ;;  %v1373_v62 = vsel %vm1364_vm10, %v1342_v9, %v4623_v16  ;;  %v1190_v10 = vsel %vm1178_vm3, %v3302_v58, %v6578_v54  ;;  %v1253_v42 = vsel %vm1240_vm5, %v1222_v50, %v6579_v24  ;;  %v6581_v45 = vld [vmem:[#allocation132_spill] sm:$0xff]  ;;  %v6587_v28 = vld [vmem:[#allocation131_spill] sm:$0xff] }
 0x2b3   : > { %v1551_v61 = vld.sshfl [vmem:[#allocation1 + $0x20] sm:$0xff pattern:$0x73625140]  ;;  %v1404_v35 = vsel %vm1395_vm9, %v1373_v62, %v4763_v40 }
 0x2b4   : > { %1557 = vst [vmem:[#allocation1 + $0x21] ss:$4 sm:$0xff] %v1470_v36  ;;  %3175 = vmatmul.msk.f32.gmra.mxu0 %vm1645_vm11, %v1551_v61  ;;  %v1220_v36 = vsel %vm1209_vm4, %v1189_v33, %v6573_v27 }
 0x2b5   : > { %1556 = vst [vmem:[#allocation1 + $0x20] ss:$4 sm:$0xff] %v1469_v20  ;;  %v1109_v41 = vpop.permute.xlu1 %1108  ;;  %v1251_v31 = vsel %vm1240_vm5, %v1220_v36, %v6574_v32  ;;  %v6575_v20 = vld [vmem:[#allocation128_spill] sm:$0xff]  ;;  %v6584_v32 = vld [vmem:[#allocation47_spill] sm:$0xff] }
 0x2b6   : > { %1558 = vst [vmem:[#allocation1 + $0x22] ss:$4 sm:$0xff] %v1403_v23  ;;  %v1282_v61 = vsel %vm1271_vm6, %v1251_v31, %v6575_v20  ;;  %v4884_v23 = vpop.permute.xlu2 %1031  ;;  %v6583_v36 = vld [vmem:[#allocation120_spill] sm:$0xff] }
 0x2b7   : > { %1559 = vst [vmem:[#allocation1 + $0x23] ss:$4 sm:$0xff] %v1471_v25  ;;  %v1107_v53 = vpop.permute.xlu0 %1106  ;;  %v1313_v0 = vsel %vm1302_vm7, %v1282_v61, %v4401_v4  ;;  %v6585_v61 = vld [vmem:[#allocation79_spill] sm:$0xff] }
 0x2b8   : > { %v1560_v38 = vld.sshfl [vmem:[#allocation1] sm:$0xff pattern:$0x73625140]  ;;  %v1405_v17 = vsel %vm1395_vm9, %v1374_v6, %v1107_v53  ;;  %v1344_v16 = vsel %vm1333_vm8, %v1313_v0, %v4530_v8 }
 0x2b9   : > { %1563 = vst [vmem:[#allocation1 + $0x1] ss:$4 sm:$0xff] %v1473_v55  ;;  %v1474_v25 = vrot.slane %v1405_v17, 2  ;;  %v1375_v40 = vsel %vm1364_vm10, %v1344_v16, %v4721_v15  ;;  %v1475_v26 = vrot.slane %v1405_v17, 4  ;;  %v1476_v8 = vrot.slane %v1405_v17, 6  ;;  %v6580_v15 = vld [vmem:[#allocation66_spill] sm:$0xff] }
 0x2ba   : > { %1562 = vst [vmem:[#allocation1] ss:$4 sm:$0xff] %v1472_v63  ;;  %v1406_v57 = vsel %vm1395_vm9, %v1375_v40, %v1109_v41  ;;  %v1221_v11 = vsel %vm1209_vm4, %v1190_v10, %v6580_v15  ;;  %v1284_v55 = vsel %vm1271_vm6, %v1253_v42, %v6581_v45  ;;  %v6582_v41 = vld [vmem:[#allocation96_spill] sm:$0xff]  ;;  %v6589_v10 = vld [vmem:[#allocation83_spill] sm:$0xff] }
 0x2bb   : > { %1564 = vst [vmem:[#allocation1 + $0x2] ss:$4 sm:$0xff] %v1404_v35  ;;  %v1252_v53 = vsel %vm1240_vm5, %v1221_v11, %v6582_v41  ;;  %v1315_v27 = vsel %vm1302_vm7, %v1284_v55, %v4415_v29  ;;  %v1477_v63 = vrot.slane %v1406_v57, 2  ;;  %v1478_v29 = vrot.slane %v1406_v57, 4  ;;  %v6590_v42 = vld [vmem:[#allocation116_spill] sm:$0xff]  ;;  %v6591_v11 = vld [vmem:[#allocation29_spill] sm:$0xff] }
 0x2bc   : > { %1565 = vst [vmem:[#allocation1 + $0x3] ss:$4 sm:$0xff] %v1405_v17  ;;  %3176 = vmatmul.msk.f32.gmra.mxu0 %vm1645_vm11, %v1560_v38  ;;  %v1283_v9 = vsel %vm1271_vm6, %v1252_v53, %v6583_v36  ;;  %v1346_v6 = vsel %vm1333_vm8, %v1315_v27, %v4544_v59  ;;  %v3303_v38 = vld [vmem:[%s3442_s7 + $0x68] sm:$0xff]  ;;  %v1479_v0 = vrot.slane %v1406_v57, 6  ;;  %v3306_v53 = vld [vmem:[%s3442_s7 + $0x80] sm:$0xff]  ;;  %v6592_v27 = vld [vmem:[#allocation52_spill] sm:$0xff] }
 0x2bd   : > { %v1113_v4 = vpop.permute.xlu1 %1112  ;;  %v1192_v31 = vsel %vm1178_vm3, %v3303_v38, %v6584_v32  ;;  %v1314_v62 = vsel %vm1302_vm7, %v1283_v9, %v4363_v39  ;;  %v1377_v17 = vsel %vm1364_vm10, %v1346_v6, %v4735_v19  ;;  %v1195_v36 = vsel %vm1178_vm3, %v3306_v53, %v6592_v27  ;;  %v6593_v9 = vld [vmem:[#allocation69_spill] sm:$0xff]  ;;  %v6594_v38 = vld [vmem:[#allocation82_spill] sm:$0xff]  ;;  %v6605_v53 = vld [vmem:[#allocation55_spill] sm:$0xff] }
 0x2be   : > { %v1561_v46 = vld.sshfl [vmem:[#allocation1 + $0x20] sm:$0xff pattern:$0x73625140]  ;;  %v1223_v35 = vsel %vm1209_vm4, %v1192_v31, %v6585_v61  ;;  %v1345_v59 = vsel %vm1333_vm8, %v1314_v62, %v4492_v43  ;;  %v1408_v16 = vsel %vm1395_vm9, %v1377_v17, %v1113_v4  ;;  %v4933_v60 = vpop.permute.xlu2 %1035  ;;  %v1226_v32 = vsel %vm1209_vm4, %v1195_v36, %v6594_v38  ;;  %v6596_v61 = vld [vmem:[#allocation115_spill] sm:$0xff] }
 0x2bf   : > { %1569 = vst [vmem:[#allocation1 + $0x23] ss:$4 sm:$0xff] %v1406_v57  ;;  %v4902_v33 = vpop.permute.xlu0 %1029  ;;  %v1376_v19 = vsel %vm1364_vm10, %v1345_v59, %v4640_v30  ;;  %v1480_v4 = vrot.slane %v1408_v16, 2  ;;  %v1481_v50 = vrot.slane %v1408_v16, 4  ;;  %v6588_v57 = vld [vmem:[#allocation53_spill] sm:$0xff]  ;;  %v1482_v54 = vrot.slane %v1408_v16, 6 }
 0x2c0   : > { %1566 = vst [vmem:[#allocation1 + $0x20] ss:$4 sm:$0xff] %v1474_v25  ;;  %v6586_v25 = vld [vmem:[#allocation110_spill] sm:$0xff]  ;;  %v1407_v40 = vsel %vm1395_vm9, %v1376_v19, %v4800_v48  ;;  %v6606_v36 = vld [vmem:[#allocation39_spill] sm:$0xff] }
 0x2c1   : > { %1567 = vst [vmem:[#allocation1 + $0x21] ss:$4 sm:$0xff] %v1475_v26  ;;  %v1254_v39 = vsel %vm1240_vm5, %v1223_v35, %v6586_v25  ;;  %v1257_v35 = vsel %vm1240_vm5, %v1226_v32, %v6596_v61  ;;  %v6609_v32 = vld [vmem:[#allocation142_spill] sm:$0xff] }
 0x2c2   : > { %1568 = vst [vmem:[#allocation1 + $0x22] ss:$4 sm:$0xff] %v1476_v8  ;;  %v1285_v43 = vsel %vm1271_vm6, %v1254_v39, %v6587_v28  ;;  %v1288_v25 = vsel %vm1271_vm6, %v1257_v35, %v4305_v2 }
 0x2c3   : > { %v1570_v20 = vld.sshfl [vmem:[#allocation1] sm:$0xff pattern:$0x73625140]  ;;  %v1316_v26 = vsel %vm1302_vm7, %v1285_v43, %v4413_v21  ;;  %v1319_v39 = vsel %vm1302_vm7, %v1288_v25, %v4434_v5  ;;  %v6613_v25 = vld [vmem:[#allocation147_spill] sm:$0xff] }
 0x2c4   : > { %1572 = vst [vmem:[#allocation1] ss:$4 sm:$0xff] %v1477_v63  ;;  %3177 = vmatmul.msk.f32.gmra.mxu0 %vm1645_vm11, %v1561_v46  ;;  %v1347_v30 = vsel %vm1333_vm8, %v1316_v26, %v4542_v7  ;;  %v3304_v46 = vld [vmem:[%s3442_s7 + $0x78] sm:$0xff]  ;;  %v1350_v28 = vsel %vm1333_vm8, %v1319_v39, %v4554_v34 }
 0x2c5   : > { %1573 = vst [vmem:[#allocation1 + $0x1] ss:$4 sm:$0xff] %v1478_v29  ;;  %v1117_v44 = vpop.permute.xlu1 %1116  ;;  %v1194_v8 = vsel %vm1178_vm3, %v3304_v46, %v6588_v57  ;;  %v1378_v58 = vsel %vm1364_vm10, %v1347_v30, %v4733_v18  ;;  %v3305_v18 = vld [vmem:[%s3442_s7 + $0x70] sm:$0xf]  ;;  %v1381_v2 = vsel %vm1364_vm10, %v1350_v28, %v4774_v49  ;;  %v3308_v49 = vld [vmem:[%s3442_s7 + $0x88] sm:$0xf] }
 0x2c6   : > { %1574 = vst [vmem:[#allocation1 + $0x2] ss:$4 sm:$0xff] %v1479_v0  ;;  %v1225_v21 = vsel %vm1209_vm4, %v1194_v8, %v6589_v10  ;;  %v1409_v24 = vsel %vm1395_vm9, %v1378_v58, %v4837_v56  ;;  %v1193_v45 = vsel %vm1178_vm3, %v3305_v18, %v6591_v11  ;;  %v4979_v29 = vpop.permute.xlu2 %1126  ;;  %v6600_v46 = vld [vmem:[#allocation35_spill] sm:$0xff]  ;;  %v6601_v57 = vld [vmem:[#allocation117_spill] sm:$0xff] }
 0x2c7   : > { %1575 = vst [vmem:[#allocation1 + $0x3] ss:$4 sm:$0xff] %v1407_v40  ;;  %v1119_v14 = vpop.permute.xlu0 %1118  ;;  %v1256_v7 = vsel %vm1240_vm5, %v1225_v21, %v6590_v42  ;;  %v1485_v41 = vrot.slane %v1409_v24, 6  ;;  %v1483_v17 = vrot.slane %v1409_v24, 2  ;;  %v1484_v0 = vrot.slane %v1409_v24, 4  ;;  %v6603_v42 = vld [vmem:[#allocation102_spill] sm:$0xff] }
 0x2c8   : > { %v1287_v15 = vsel %vm1271_vm6, %v1256_v7, %v4307_v3  ;;  %v1224_v3 = vsel %vm1209_vm4, %v1193_v45, %v6593_v9  ;;  %v6607_v9 = vld [vmem:[#allocation27_spill] sm:$0xff] }
 0x2c9   : > { %v1571_v48 = vld.sshfl [vmem:[#allocation1 + $0x20] sm:$0xff pattern:$0x73625140]  ;;  %v1318_v55 = vsel %vm1302_vm7, %v1287_v15, %v4436_v12  ;;  %v6595_v12 = vld [vmem:[#allocation99_spill] sm:$0xff]  ;;  %v6604_v15 = vld [vmem:[#allocation148_spill] sm:$0xff] }
 0x2ca   : > { %1576 = vst [vmem:[#allocation1 + $0x20] ss:$4 sm:$0xff] %v1408_v16  ;;  %v1349_v6 = vsel %vm1333_vm8, %v1318_v55, %v4556_v13  ;;  %v1255_v31 = vsel %vm1240_vm5, %v1224_v3, %v6595_v12  ;;  %v6597_v13 = vld [vmem:[#allocation123_spill] sm:$0xff] }
 0x2cb   : > { %1577 = vst [vmem:[#allocation1 + $0x21] ss:$4 sm:$0xff] %v1480_v4  ;;  %v1380_v62 = vsel %vm1364_vm10, %v1349_v6, %v4744_v1  ;;  %v1286_v59 = vsel %vm1271_vm6, %v1255_v31, %v6597_v13  ;;  %v6598_v4 = vld [vmem:[#allocation56_spill] sm:$0xff]  ;;  %v6608_v6 = vld [vmem:[#allocation85_spill] sm:$0xff] }
 0x2cc   : > { %1578 = vst [vmem:[#allocation1 + $0x22] ss:$4 sm:$0xff] %v1481_v50  ;;  %3178 = vmatmul.msk.f32.gmra.mxu0 %vm1645_vm11, %v1570_v20  ;;  %v1411_v16 = vsel %vm1395_vm9, %v1380_v62, %v1119_v14  ;;  %v1317_v1 = vsel %vm1302_vm7, %v1286_v59, %v4375_v47  ;;  %v6610_v62 = vld [vmem:[#allocation9_spill] sm:$0xff]  ;;  %v6612_v59 = vld [vmem:[#allocation135_spill] sm:$0xff] }
 0x2cd   : > { %1579 = vst [vmem:[#allocation1 + $0x23] ss:$4 sm:$0xff] %v1482_v54  ;;  %v4962_v56 = vpop.permute.xlu1 %1033  ;;  %v1348_v19 = vsel %vm1333_vm8, %v1317_v1, %v4504_v37  ;;  %v1486_v40 = vrot.slane %v1411_v16, 2  ;;  %v1487_v5 = vrot.slane %v1411_v16, 4  ;;  %v3307_v37 = vld [vmem:[%s3442_s7 + $0x90] sm:$0xff]  ;;  %v1488_v21 = vrot.slane %v1411_v16, 6 }
 0x2ce   : > { %v4971_v63 = vld.sshfl [vmem:[#allocation1] sm:$0xff pattern:$0x73625140]  ;;  %v1379_v43 = vsel %vm1364_vm10, %v1348_v19, %v4749_v22  ;;  %v1197_v14 = vsel %vm1178_vm3, %v3307_v37, %v6598_v4  ;;  %v6599_v22 = vld [vmem:[#allocation86_spill] sm:$0xff]  ;;  %v5023_v11 = vpop.permute.xlu2 %1041 }
 0x2cf   : > { %1585 = vst [vmem:[#allocation1 + $0x3] ss:$4 sm:$0xff] %v1485_v41  ;;  %v1121_v20 = vpop.permute.xlu0 %1120  ;;  %v1410_v26 = vsel %vm1395_vm9, %v1379_v43, %v1117_v44  ;;  %v1228_v50 = vsel %vm1209_vm4, %v1197_v14, %v6599_v22  ;;  %v1196_v44 = vsel %vm1178_vm3, %v3308_v49, %v6600_v46  ;;  %v3309_v41 = vld [vmem:[%s3442_s7 + $0x98] sm:$0xff]  ;;  %v6614_v19 = vld [vmem:[#allocation26_spill] sm:$0xff]  ;;  %v6616_v14 = vld [vmem:[#allocation59_spill] sm:$0xff] }
 0x2d0   : > { %1582 = vst [vmem:[#allocation1] ss:$4 sm:$0xff] %v1409_v24  ;;  %v1412_v34 = vsel %vm1395_vm9, %v1381_v2, %v1121_v20  ;;  %v1259_v8 = vsel %vm1240_vm5, %v1228_v50, %v6601_v57  ;;  %v1198_v27 = vsel %vm1178_vm3, %v3309_v41, %v6605_v53  ;;  %v6611_v20 = vld [vmem:[#allocation155_spill] sm:$0xff]  ;;  %v3311_v4 = vld [vmem:[%s3442_s7 + $0xa8] sm:$0xff]  ;;  %v6625_v41 = vld [vmem:[#allocation44_spill] sm:$0xff] }
 0x2d1   : > { %1583 = vst [vmem:[#allocation1 + $0x1] ss:$4 sm:$0xff] %v1483_v17  ;;  %v1290_v10 = vsel %vm1271_vm6, %v1259_v8, %v4319_v52  ;;  %v1489_v24 = vrot.slane %v1412_v34, 2  ;;  %v1490_v55 = vrot.slane %v1412_v34, 4  ;;  %v1229_v38 = vsel %vm1209_vm4, %v1198_v27, %v6608_v6  ;;  %v6617_v50 = vld [vmem:[#allocation58_spill] sm:$0xff]  ;;  %v6626_v27 = vld [vmem:[#allocation136_spill] sm:$0xff] }
 0x2d2   : > { %1584 = vst [vmem:[#allocation1 + $0x2] ss:$4 sm:$0xff] %v1484_v0  ;;  %v1321_v18 = vsel %vm1302_vm7, %v1290_v10, %v6604_v15  ;;  %v1260_v17 = vsel %vm1240_vm5, %v1229_v38, %v6610_v62  ;;  %v1491_v35 = vrot.slane %v1412_v34, 6  ;;  %v6628_v6 = vld [vmem:[#allocation143_spill] sm:$0xff] }
 0x2d3   : > { %v1352_v3 = vsel %vm1333_vm8, %v1321_v18, %v6607_v9  ;;  %v1291_v0 = vsel %vm1271_vm6, %v1260_v17, %v6612_v59  ;;  %v6623_v18 = vld [vmem:[#allocation12_spill] sm:$0xff] }
 0x2d4   : > { %v5000_v47 = vld.sshfl [vmem:[#allocation1 + $0x20] sm:$0xff pattern:$0x73625140]  ;;  %3179 = vmatmul.msk.f32.gmra.mxu0 %vm1645_vm11, %v1571_v48  ;;  %v6602_v48 = vld [vmem:[#allocation72_spill] sm:$0xff]  ;;  %v1383_v31 = vsel %vm1364_vm10, %v1352_v3, %v4902_v33  ;;  %v1322_v1 = vsel %vm1302_vm7, %v1291_v0, %v6613_v25 }
 0x2d5   : > { %1586 = vst [vmem:[#allocation1 + $0x20] ss:$4 sm:$0xff] %v1410_v26  ;;  %v1123_v30 = vpop.permute.xlu1 %1122  ;;  %v1227_v54 = vsel %vm1209_vm4, %v1196_v44, %v6602_v48  ;;  %v1353_v28 = vsel %vm1333_vm8, %v1322_v1, %v6614_v19  ;;  %v3310_v26 = vld [vmem:[%s3442_s7 + $0xa0] sm:$0xf]  ;;  %v6631_v17 = vld [vmem:[#allocation156_spill] sm:$0xff] }
 0x2d6   : > { %1587 = vst [vmem:[#allocation1 + $0x21] ss:$4 sm:$0xff] %v1411_v16  ;;  %v1258_v7 = vsel %vm1240_vm5, %v1227_v54, %v6603_v42  ;;  %v1384_v2 = vsel %vm1364_vm10, %v1353_v28, %v4884_v23  ;;  %v3312_v23 = vld [vmem:[%s3442_s7 + $0xb0] sm:$0xff]  ;;  %v6620_v54 = vld [vmem:[#allocation88_spill] sm:$0xff] }
 0x2d7   : > { %1588 = vst [vmem:[#allocation1 + $0x22] ss:$4 sm:$0xff] %v1486_v40  ;;  %v1125_v58 = vpop.permute.xlu0 %1124  ;;  %v1289_v52 = vsel %vm1271_vm6, %v1258_v7, %v6606_v36  ;;  %v1201_v49 = vsel %vm1178_vm3, %v3312_v23, %v6617_v50  ;;  %v6622_v7 = vld [vmem:[#allocation105_spill] sm:$0xff]  ;;  %v6636_v23 = vld [vmem:[#allocation92_spill] sm:$0xff] }
 0x2d8   : > { %1589 = vst [vmem:[#allocation1 + $0x23] ss:$4 sm:$0xff] %v1487_v5  ;;  %v1320_v12 = vsel %vm1302_vm7, %v1289_v52, %v6609_v32  ;;  %v1414_v13 = vsel %vm1395_vm9, %v1383_v31, %v1125_v58  ;;  %v6615_v5 = vld [vmem:[#allocation41_spill] sm:$0xff]  ;;  %v6619_v58 = vld [vmem:[#allocation75_spill] sm:$0xff]  ;;  %v1232_v10 = vsel %vm1209_vm4, %v1201_v49, %v6620_v54  ;;  %v6627_v52 = vld [vmem:[#allocation150_spill] sm:$0xff] }
 0x2d9   : > { %v1590_v45 = vld.sshfl [vmem:[#allocation1] sm:$0xff pattern:$0x73625140]  ;;  %v1351_v61 = vsel %vm1333_vm8, %v1320_v12, %v6611_v20  ;;  %v1492_v43 = vrot.slane %v1414_v13, 2  ;;  %v1199_v37 = vsel %vm1178_vm3, %v3310_v26, %v6615_v5  ;;  %v1493_v22 = vrot.slane %v1414_v13, 4  ;;  %v6641_v54 = vld [vmem:[#allocation144_spill] sm:$0xff] }
 0x2da   : > { %1592 = vst [vmem:[#allocation1] ss:$4 sm:$0xff] %v1488_v21  ;;  %3182 = vmatmul.msk.f32.vlgmr.msra.gmra.mxu2 %vm1645_vm11, %v1590_v45  ;;  %v1382_v33 = vsel %vm1364_vm10, %v1351_v61, %v4802_v51  ;;  %v1415_v51 = vsel %vm1395_vm9, %v1384_v2, %v4979_v29  ;;  %v6618_v29 = vld [vmem:[#allocation89_spill] sm:$0xff]  ;;  %v1494_v8 = vrot.slane %v1414_v13, 6  ;;  %v1230_v48 = vsel %vm1209_vm4, %v1199_v37, %v6619_v58  ;;  %v6632_v61 = vld [vmem:[#allocation32_spill] sm:$0xff]  ;;  %v6640_v58 = vld [vmem:[#allocation139_spill] sm:$0xff] }
 0x2db   : > { %1593 = vst [vmem:[#allocation1 + $0x1] ss:$4 sm:$0xff] %v1412_v34  ;;  %v1413_v39 = vsel %vm1395_vm9, %v1382_v33, %v1123_v30  ;;  %v1200_v34 = vsel %vm1178_vm3, %v3311_v4, %v6616_v14  ;;  %v1133_v30 = vpop.permute.xlu2 %1132  ;;  %v1495_v44 = vrot.slane %v1415_v51, 2  ;;  %v6621_v21 = vld [vmem:[#allocation13_spill] sm:$0xff]  ;;  %v1261_v15 = vsel %vm1240_vm5, %v1230_v48, %v6622_v7  ;;  %v3313_v2 = vld [vmem:[%s3442_s7 + $0xb8] sm:$0xf] }
 0x2dc   : > { %1594 = vst [vmem:[#allocation1 + $0x2] ss:$4 sm:$0xff] %v1489_v24  ;;  %3180 = vmatmul.msk.f32.gmra.mxu0 %vm1645_vm11, %v4971_v63  ;;  %v1231_v46 = vsel %vm1209_vm4, %v1200_v34, %v6618_v29  ;;  %v1263_v45 = vsel %vm1240_vm5, %v1232_v10, %v6623_v18  ;;  %v1292_v53 = vsel %vm1271_vm6, %v1261_v15, %v6625_v41  ;;  %v6629_v32 = vld [vmem:[#allocation149_spill] sm:$0xff]  ;;  %v1496_v59 = vrot.slane %v1415_v51, 4  ;;  %v6634_v14 = vld [vmem:[#allocation62_spill] sm:$0xff]  ;;  %v6644_v18 = vld [vmem:[#allocation3_spill] sm:$0xff] }
 0x2dd   : > { %1595 = vst [vmem:[#allocation1 + $0x3] ss:$4 sm:$0xff] %v1490_v55  ;;  %v5050_v16 = vpop.permute.xlu1 %1039  ;;  %v1262_v24 = vsel %vm1240_vm5, %v1231_v46, %v6621_v21  ;;  %v6624_v55 = vld [vmem:[#allocation137_spill] sm:$0xff]  ;;  %v1294_v36 = vsel %vm1271_vm6, %v1263_v45, %v6626_v27  ;;  %v1323_v38 = vsel %vm1302_vm7, %v1292_v53, %v6628_v6  ;;  %v1497_v0 = vrot.slane %v1415_v51, 6  ;;  %v6638_v46 = vld [vmem:[#allocation118_spill] sm:$0xff]  ;;  %v6642_v21 = vld [vmem:[#allocation152_spill] sm:$0xff] }
 0x2de   : > { %v1325_v12 = vsel %vm1302_vm7, %v1294_v36, %v6629_v32  ;;  %v6630_v31 = vld [vmem:[#allocation33_spill] sm:$0xff]  ;;  %v1354_v20 = vsel %vm1333_vm8, %v1323_v38, %v6631_v17  ;;  %v3315_v6 = vld [vmem:[%s3442_s7 + $0xc8] sm:$0xff]  ;;  %v6647_v17 = vld [vmem:[#allocation91_spill] sm:$0xff] }
 0x2df   : > { %v1591_v63 = vld.sshfl [vmem:[#allocation1 + $0x20] sm:$0xff pattern:$0x73625140]  ;;  %v1038_v40 = vpop.permute.xlu0 %1037  ;;  %v1385_v33 = vsel %vm1364_vm10, %v1354_v20, %v4962_v56 }
 0x2e0   : > { %1596 = vst [vmem:[#allocation1 + $0x20] ss:$4 sm:$0xff] %v1491_v35  ;;  %v1356_v35 = vsel %vm1333_vm8, %v1325_v12, %v6632_v61  ;;  %v3314_v4 = vld [vmem:[%s3442_s7 + $0xc0] sm:$0xff] }
 0x2e1   : > { %1597 = vst [vmem:[#allocation1 + $0x21] ss:$4 sm:$0xff] %v1413_v39  ;;  %v1387_v1 = vsel %vm1364_vm10, %v1356_v35, %v1038_v40  ;;  %v6633_v40 = vld [vmem:[#allocation46_spill] sm:$0xff]  ;;  %v1203_v34 = vsel %vm1178_vm3, %v3314_v4, %v6634_v14  ;;  %v6637_v49 = vld [vmem:[#allocation109_spill] sm:$0xff]  ;;  %v6648_v35 = vld [vmem:[#allocation95_spill] sm:$0xff] }
 0x2e2   : > { %1598 = vst [vmem:[#allocation1 + $0x22] ss:$4 sm:$0xff] %v1414_v13  ;;  %3183 = vmatmul.msk.f32.gmra.mxu2 %vm1645_vm11, %v1591_v63  ;;  %v1234_v50 = vsel %vm1209_vm4, %v1203_v34, %v6636_v23  ;;  %v6645_v38 = vld [vmem:[#allocation61_spill] sm:$0xff]  ;;  %v6656_v4 = vld [vmem:[#allocation7_spill] sm:$0xff] }
 0x2e3   : > { %1599 = vst [vmem:[#allocation1 + $0x23] ss:$4 sm:$0xff] %v1492_v43  ;;  %v1135_v28 = vpop.permute.xlu2 %1134  ;;  %v1204_v32 = vsel %vm1178_vm3, %v3315_v6, %v6645_v38  ;;  %v6665_v6 = vld [vmem:[#allocation153_spill] sm:$0xff] }
 0x2e4   : > { %v1600_v57 = vld.sshfl [vmem:[#allocation1] sm:$0xff pattern:$0x73625140]  ;;  %3181 = vmatmul.msk.f32.gmra.mxu0 %vm1645_vm11, %v5000_v47  ;;  %v1293_v47 = vsel %vm1271_vm6, %v1262_v24, %v6624_v55  ;;  %v1235_v20 = vsel %vm1209_vm4, %v1204_v32, %v6647_v17 }
 0x2e5   : > { %1604 = vst [vmem:[#allocation1 + $0x2] ss:$4 sm:$0xff] %v1415_v51  ;;  %v1131_v42 = vpop.permute.xlu1 %1130  ;;  %v1324_v9 = vsel %vm1302_vm7, %v1293_v47, %v6627_v52  ;;  %v1202_v51 = vsel %vm1178_vm3, %v3313_v2, %v6633_v40  ;;  %v6654_v40 = vld [vmem:[#allocation154_spill] sm:$0xff]  ;;  %v6666_v32 = vld [vmem:[#allocation145_spill] sm:$0xff] }
 0x2e6   : > { %1605 = vst [vmem:[#allocation1 + $0x3] ss:$4 sm:$0xff] %v1495_v44  ;;  %v1355_v62 = vsel %vm1333_vm8, %v1324_v9, %v6630_v31  ;;  %v1265_v44 = vsel %vm1240_vm5, %v1234_v50, %v6638_v46  ;;  %v3316_v31 = vld [vmem:[%s3442_s7 + $0xd8] sm:$0xff] }
 0x2e7   : > { %1602 = vst [vmem:[#allocation1] ss:$4 sm:$0xff] %v1493_v22  ;;  %v1129_v3 = vpop.permute.xlu0 %1128  ;;  %v1386_v13 = vsel %vm1364_vm10, %v1355_v62, %v4933_v60  ;;  %v1418_v60 = vsel %vm1395_vm9, %v1387_v1, %v1133_v30  ;;  %v6635_v22 = vld [vmem:[#allocation78_spill] sm:$0xff]  ;;  %v1296_v48 = vsel %vm1271_vm6, %v1265_v44, %v6640_v58  ;;  %v6646_v62 = vld [vmem:[#allocation65_spill] sm:$0xff]  ;;  %v6650_v1 = vld [vmem:[#allocation119_spill] sm:$0xff] }
 0x2e8   : > { %1603 = vst [vmem:[#allocation1 + $0x1] ss:$4 sm:$0xff] %v1494_v8  ;;  %v1417_v39 = vsel %vm1395_vm9, %v1386_v13, %v1131_v42  ;;  %v1416_v19 = vsel %vm1395_vm9, %v1385_v33, %v1129_v3  ;;  %v1233_v30 = vsel %vm1209_vm4, %v1202_v51, %v6635_v22  ;;  %v1327_v24 = vsel %vm1302_vm7, %v1296_v48, %v6642_v21  ;;  %v6643_v42 = vld [vmem:[#allocation20_spill] sm:$0xff]  ;;  %v6659_v21 = vld [vmem:[#allocation94_spill] sm:$0xff] }
 0x2e9   : > { %v1498_v63 = vrot.slane %v1417_v39, 2  ;;  %v1499_v56 = vrot.slane %v1417_v39, 4  ;;  %v1500_v5 = vrot.slane %v1417_v39, 6  ;;  %v1264_v29 = vsel %vm1240_vm5, %v1233_v30, %v6637_v49  ;;  %v6657_v46 = vld [vmem:[#allocation64_spill] sm:$0xff] }
 0x2ea   : > { %v1601_v25 = vld.sshfl [vmem:[#allocation1 + $0x20] sm:$0xff pattern:$0x73625140]  ;;  %3184 = vmatmul.msk.f32.gmra.mxu2 %vm1645_vm11, %v1600_v57  ;;  %v6639_v57 = vld [vmem:[#allocation50_spill] sm:$0xff]  ;;  %v1501_v15 = vrot.slane %v1418_v60, 2  ;;  %v1358_v45 = vsel %vm1333_vm8, %v1327_v24, %v6644_v18  ;;  %v1502_v47 = vrot.slane %v1418_v60, 4 }
 0x2eb   : > { %1606 = vst [vmem:[#allocation1 + $0x20] ss:$4 sm:$0xff] %v1496_v59  ;;  %v1295_v8 = vsel %vm1271_vm6, %v1264_v29, %v6639_v57  ;;  %v1389_v53 = vsel %vm1364_vm10, %v1358_v45, %v5023_v11  ;;  %v1503_v27 = vrot.slane %v1418_v60, 6  ;;  %v5145_v52 = vpop.permute.xlu2 %1049  ;;  %v1206_v11 = vsel %vm1178_vm3, %v3316_v31, %v6646_v62  ;;  %v6649_v59 = vld [vmem:[#allocation17_spill] sm:$0xff] }
 0x2ec   : > { %1607 = vst [vmem:[#allocation1 + $0x21] ss:$4 sm:$0xff] %v1497_v0  ;;  %v1326_v10 = vsel %vm1302_vm7, %v1295_v8, %v6641_v54  ;;  %v1237_v13 = vsel %vm1209_vm4, %v1206_v11, %v6648_v35  ;;  %v1266_v0 = vsel %vm1240_vm5, %v1235_v20, %v6649_v59  ;;  %v3317_v29 = vld [vmem:[%s3442_s7 + $0xe0] sm:$0xff]  ;;  %v3318_v54 = vld [vmem:[%s3442_s7 + $0xd0] sm:$0xf]  ;;  %v6668_v11 = vld [vmem:[#allocation14_spill] sm:$0xff] }
 0x2ed   : > { %1609 = vst [vmem:[#allocation1 + $0x23] ss:$4 sm:$0xff] %v1417_v39  ;;  %v5112_v43 = vpop.permute.xlu1 %1045  ;;  %v1357_v7 = vsel %vm1333_vm8, %v1326_v10, %v6643_v42  ;;  %v1268_v39 = vsel %vm1240_vm5, %v1237_v13, %v6650_v1  ;;  %v1207_v44 = vsel %vm1178_vm3, %v3317_v29, %v6657_v46  ;;  %v6658_v10 = vld [vmem:[#allocation51_spill] sm:$0xff]  ;;  %v6661_v18 = vld [vmem:[#allocation21_spill] sm:$0xff]  ;;  %v6669_v1 = vld [vmem:[#allocation54_spill] sm:$0xff] }
 0x2ee   : > { %1608 = vst [vmem:[#allocation1 + $0x22] ss:$4 sm:$0xff] %v1416_v19  ;;  %v1388_v55 = vsel %vm1364_vm10, %v1357_v7, %v5050_v16  ;;  %v6651_v19 = vld [vmem:[#allocation138_spill] sm:$0xff]  ;;  %v1238_v24 = vsel %vm1209_vm4, %v1207_v44, %v6659_v21  ;;  %v6660_v7 = vld [vmem:[#allocation81_spill] sm:$0xff] }
 0x2ef   : > { %v1610_v26 = vld.sshfl [vmem:[#allocation1] sm:$0xff pattern:$0x73625140]  ;;  %v1044_v37 = vpop.permute.xlu0 %1043  ;;  %v1419_v16 = vsel %vm1395_vm9, %v1388_v55, %v1135_v28  ;;  %v1297_v28 = vsel %vm1271_vm6, %v1266_v0, %v6651_v19  ;;  %v1269_v45 = vsel %vm1240_vm5, %v1238_v24, %v6661_v18 }
 0x2f0   : > { %1615 = vst [vmem:[#allocation1 + $0x3] ss:$4 sm:$0xff] %v1418_v60  ;;  %v6652_v60 = vld [vmem:[#allocation141_spill] sm:$0xff] }
 0x2f1   : > { %1612 = vst [vmem:[#allocation1] ss:$4 sm:$0xff] %v1498_v63  ;;  %v1299_v63 = vsel %vm1271_vm6, %v1268_v39, %v6652_v60  ;;  %v6671_v60 = vld [vmem:[#allocation8_spill] sm:$0xff] }
 0x2f2   : > { %1613 = vst [vmem:[#allocation1 + $0x1] ss:$4 sm:$0xff] %v1499_v56  ;;  %3185 = vmatmul.msk.f32.gmra.mxu2 %vm1645_vm11, %v1601_v25  ;;  %v6653_v56 = vld [vmem:[#allocation151_spill] sm:$0xff]  ;;  %v1330_v51 = vsel %vm1302_vm7, %v1299_v63, %v6654_v40 }
 0x2f3   : > { %1614 = vst [vmem:[#allocation1 + $0x2] ss:$4 sm:$0xff] %v1500_v5  ;;  %v1328_v2 = vsel %vm1302_vm7, %v1297_v28, %v6653_v56  ;;  %v1361_v14 = vsel %vm1333_vm8, %v1330_v51, %v6656_v4  ;;  %v1143_v23 = vpop.permute.xlu2 %1142  ;;  %v6670_v28 = vld [vmem:[#allocation84_spill] sm:$0xff]  ;;  %v6673_v4 = vld [vmem:[#allocation146_spill] sm:$0xff] }
 0x2f5   : > { %v1611_v41 = vld.sshfl [vmem:[#allocation1 + $0x20] sm:$0xff pattern:$0x73625140] }
 0x2f6   : > { %1616 = vst [vmem:[#allocation1 + $0x20] ss:$4 sm:$0xff] %v1501_v15  ;;  %v1137_v36 = vpop.permute.xlu1 %1136 }
 0x2f7   : > { %1617 = vst [vmem:[#allocation1 + $0x21] ss:$4 sm:$0xff] %v1502_v47  ;;  %v1420_v9 = vsel %vm1395_vm9, %v1389_v53, %v1137_v36  ;;  %v1048_v3 = vpop.permute.xlu0 %1047  ;;  %v6662_v47 = vld [vmem:[#allocation114_spill] sm:$0xff] }
 0x2f8   : > { %1618 = vst [vmem:[#allocation1 + $0x22] ss:$4 sm:$0xff] %v1503_v27  ;;  %v1504_v12 = vrot.slane %v1420_v9, 2  ;;  %v1505_v61 = vrot.slane %v1420_v9, 4  ;;  %v1506_v25 = vrot.slane %v1420_v9, 6  ;;  %v1392_v30 = vsel %vm1364_vm10, %v1361_v14, %v1048_v3  ;;  %v6663_v27 = vld [vmem:[#allocation140_spill] sm:$0xff] }
 0x2f9   : > { %1619 = vst [vmem:[#allocation1 + $0x23] ss:$4 sm:$0xff] %v1419_v16  ;;  %v1423_v55 = vsel %vm1395_vm9, %v1392_v30, %v1143_v23  ;;  %v1300_v36 = vsel %vm1271_vm6, %v1269_v45, %v6663_v27 }
 0x2fa   : > { %v5161_v33 = vld.sshfl [vmem:[#allocation1] sm:$0xff pattern:$0x73625140]  ;;  %3186 = vmatmul.msk.f32.gmra.mxu2 %vm1645_vm11, %v1610_v26  ;;  %v6655_v26 = vld [vmem:[#allocation4_spill] sm:$0xff]  ;;  %v1331_v38 = vsel %vm1302_vm7, %v1300_v36, %v6665_v6  ;;  %v1510_v62 = vrot.slane %v1423_v55, 2  ;;  %v1512_v56 = vrot.slane %v1423_v55, 6 }
 0x2fb   : > { %1622 = vst [vmem:[#allocation1] ss:$4 sm:$0xff] %v1420_v9  ;;  %v1359_v5 = vsel %vm1333_vm8, %v1328_v2, %v6655_v26  ;;  %v6664_v9 = vld [vmem:[#allocation133_spill] sm:$0xff]  ;;  %v6672_v2 = vld [vmem:[#allocation134_spill] sm:$0xff]  ;;  %v1147_v23 = vpop.permute.xlu2 %1146 }
 0x2fc   : > { %1623 = vst [vmem:[#allocation1 + $0x1] ss:$4 sm:$0xff] %v1504_v12  ;;  %v1390_v34 = vsel %vm1364_vm10, %v1359_v5, %v1044_v37  ;;  %v1205_v37 = vsel %vm1178_vm3, %v3318_v54, %v6658_v10 }
 0x2fd   : > { %1624 = vst [vmem:[#allocation1 + $0x2] ss:$4 sm:$0xff] %v1505_v61  ;;  %v1236_v15 = vsel %vm1209_vm4, %v1205_v37, %v6660_v7  ;;  %v1511_v61 = vrot.slane %v1423_v55, 4 }
 0x2fe   : > { %1625 = vst [vmem:[#allocation1 + $0x3] ss:$4 sm:$0xff] %v1506_v25  ;;  %v1139_v22 = vpop.permute.xlu1 %1138  ;;  %v1267_v53 = vsel %vm1240_vm5, %v1236_v15, %v6662_v47  ;;  %v3319_v25 = vld [vmem:[%s3442_s7 + $0xe8] sm:$0xf]  ;;  %v5250_v15 = vstv %s3196_s14 }
 0x2ff   : > { %v1421_v50 = vsel %vm1395_vm9, %v1390_v34, %v1139_v22  ;;  %v1052_v49 = vpop.permute.xlu0 %1051  ;;  %v1298_v3 = vsel %vm1271_vm6, %v1267_v53, %v6664_v9  ;;  %v1208_v39 = vsel %vm1178_vm3, %v3319_v25, %v6669_v1  ;;  %v5233_v34 = vld [vmem:[%s6238_s2] ss:$0 sm:$0xff]  ;;  %v6674_v22 = vld [vmem:[#allocation22_spill] sm:$0xff]  ;;  %vm1914_vm12 = vcmp.ge.s32.totalorder %v5250_v15, 0 }
 0x300   : > { %v5184_v57 = vld.sshfl [vmem:[#allocation1 + $0x20] sm:$0xff pattern:$0x73625140]  ;;  %v1507_v8 = vrot.slane %v1421_v50, 2  ;;  %v1508_v58 = vrot.slane %v1421_v50, 4  ;;  %v1509_v48 = vrot.slane %v1421_v50, 6  ;;  %v1713_v42 = vpop.f32.mrf.mxu0  ;;  %v1329_v16 = vsel %vm1302_vm7, %v1298_v3, %v6666_v32 }
 0x301   : > { %1626 = vst [vmem:[#allocation1 + $0x20] ss:$4 sm:$0xff] %v1421_v50  ;;  %v1360_v17 = vsel %vm1333_vm8, %v1329_v16, %v6668_v11  ;;  %vm1924_vm13 = vcmp.lt.s32.totalorder %v5250_v15, 16 }
 0x302   : > { %3187 = vmatmul.msk.f32.gmra.mxu2 %vm1645_vm11, %v1611_v41  ;;  %1627 = vst [vmem:[#allocation1 + $0x21] ss:$4 sm:$0xff] %v1507_v8  ;;  %v6667_v41 = vld [vmem:[#allocation28_spill] sm:$0xff]  ;;  %v1391_v13 = vsel %vm1364_vm10, %v1360_v17, %v5112_v43  ;;  %v1714_v8 = vadd.f32 %v5233_v34, %v1713_v42  ;;  %vm5258_vm15 = vmand %vm1914_vm12, %vm1924_vm13 }
 0x303   : > { %1628 = vst [vmem:[#allocation1 + $0x22] ss:$4 sm:$0xff] %v1508_v58  ;;  %v1362_v12 = vsel %vm1333_vm8, %v1331_v38, %v6667_v41 }
 0x304   : > { %1629 = vst [vmem:[#allocation1 + $0x23] ss:$4 sm:$0xff] %v1509_v48  ;;  %v1393_v20 = vsel %vm1364_vm10, %v1362_v12, %v5145_v52  ;;  %v1239_v52 = vsel %vm1209_vm4, %v1208_v39, %v6670_v28  ;;  %v1782_v48 = vmax.f32 %v1714_v8, 0.0 }
 0x305   : > { %v1630_v31 = vld.sshfl [vmem:[#allocation1] sm:$0xff pattern:$0x73625140]  ;;  %v1270_v63 = vsel %vm1240_vm5, %v1239_v52, %v6671_v60 }
 0x306   : > { %1633 = vst [vmem:[#allocation1 + $0x1] ss:$4 sm:$0xff] %v1423_v55  ;;  %v1145_v35 = vpop.permute.xlu1 %1144  ;;  %v1301_v40 = vsel %vm1271_vm6, %v1270_v63, %v6672_v2  ;;  %v1828_v7 = vrot.slane %v1782_v48, 2  ;;  %v1830_v18 = vrot.slane %v1782_v48, 6 }
 0x307   : > { %1634 = vst [vmem:[#allocation1 + $0x2] ss:$4 sm:$0xff] %v1510_v62  ;;  %v1424_v59 = vsel %vm1395_vm9, %v1393_v20, %v1145_v35  ;;  %v1141_v0 = vpop.permute.xlu0 %1140  ;;  %v1332_v14 = vsel %vm1302_vm7, %v1301_v40, %v6673_v4 }
 0x308   : > { %1635 = vst [vmem:[#allocation1 + $0x3] ss:$4 sm:$0xff] %v1511_v61  ;;  %v1422_v19 = vsel %vm1395_vm9, %v1391_v13, %v1141_v0  ;;  %v1513_v43 = vrot.slane %v1424_v59, 2  ;;  %v1514_v26 = vrot.slane %v1424_v59, 4  ;;  %v1716_v5 = vpop.f32.mrf.mxu0  ;;  %v1363_v30 = vsel %vm1333_vm8, %v1332_v14, %v6674_v22 }
 0x309   : > { %1632 = vst [vmem:[#allocation1] ss:$4 sm:$0xff] %v1422_v19  ;;  %v1717_v50 = vadd.f32 %v5233_v34, %v1716_v5  ;;  %v1515_v29 = vrot.slane %v1424_v59, 6  ;;  %v1898_v0 = vadd.s32 1, %v5250_v15 }
 0x30a   : > { %3188 = vmatmul.msk.f32.gmra.mxu2 %vm1645_vm11, %v5161_v33  ;;  %v1394_v33 = vsel %vm1364_vm10, %v1363_v30, %v1052_v49  ;;  %v1907_v49 = vlaneseq }
 0x30b   : > { %v1631_v51 = vld.sshfl [vmem:[#allocation1 + $0x20] sm:$0xff pattern:$0x73625140]  ;;  %v1425_v44 = vsel %vm1395_vm9, %v1394_v33, %v1147_v23  ;;  %v1783_v58 = vmax.f32 %v1717_v50, 0.0  ;;  %vm1915_vm7 = vcmp.ge.s32.totalorder %v1898_v0, 0  ;;  %vm1925_vm10 = vcmp.lt.s32.totalorder %v1898_v0, 16 }
 0x30c   : > { %1636 = vst [vmem:[#allocation1 + $0x20] ss:$4 sm:$0xff] %v1512_v56  ;;  %v1908_v24 = vshrl.u32 %v1907_v49, 7 }
 0x30d   : > { %1637 = vst [vmem:[#allocation1 + $0x21] ss:$4 sm:$0xff] %v1424_v59  ;;  %v1831_v10 = vrot.slane %v1783_v58, 2  ;;  %v1832_v37 = vrot.slane %v1783_v58, 4  ;;  %v1833_v21 = vrot.slane %v1783_v58, 6 }
 0x30e   : > { %1638 = vst [vmem:[#allocation1 + $0x22] ss:$4 sm:$0xff] %v1513_v43  ;;  %v5252_v45 = vadd.s32 4294967295, %v1908_v24  ;;  %v1910_v9 = vadd.s32 16, %v1908_v24 }
 0x30f   : > { %1639 = vst [vmem:[#allocation1 + $0x23] ss:$4 sm:$0xff] %v1514_v26 }
 0x310   : > { %v1640_v46 = vld.sshfl [vmem:[#allocation1] sm:$0xff pattern:$0x73625140]  ;;  %vm1944_vm14 = vcmp.ge.s32.totalorder %v5252_v45, 0  ;;  %v5278_v12 = vadd.s32 4294967295, %v1910_v9 }
 0x311   : > { %1642 = vst [vmem:[#allocation1] ss:$4 sm:$0xff] %v1515_v29  ;;  %3192 = vmatmul.msk.f32.vlgmr.msra.gmra.mxu3 %vm1645_vm11, %v1640_v46  ;;  %vm1947_vm2 = vmand %vm5258_vm15, %vm1944_vm14 }
 0x312   : > { %1643 = vst [vmem:[#allocation1 + $0x1] ss:$4 sm:$0xff] %v1425_v44  ;;  %3189 = vmatmul.msk.f32.gmra.mxu2 %vm1645_vm11, %v5184_v57  ;;  %v1829_v57 = vrot.slane %v1782_v48, 4  ;;  %vm1979_vm3 = vcmp.lt.s32.totalorder %v5278_v12, 16 }
 0x313   : > { %6677 = vst [vmem:[#allocation2_spill] sm:$0xff] %v5278_v12  ;;  %vm1982_vm5 = vmand %vm5258_vm15, %vm1979_vm3 }
 0x316   : > { %v1641_v54 = vld.sshfl [vmem:[#allocation1 + $0x20] sm:$0xff pattern:$0x73625140] }
 0x317   : > { %2078 = vst [vmem:[#allocation1 + $0x20] ss:$4 sm:$0xff] %v1783_v58 }
 0x318   : > { %2080 = vst [vmem:[#allocation1 + $0x21] ss:$4 sm:$0xff] %v1831_v10 }
 0x319   : > { %2082 = vst [vmem:[#allocation1 + $0x22] ss:$4 sm:$0xff] %v1832_v37  ;;  %v1644_v42 = vld.sshfl [vmem:[#allocation1] sm:$0xff pattern:$0x73625140]  ;;  %3193 = vmatmul.msk.f32.gmra.mxu3 %vm1645_vm11, %v1641_v54 }
 0x31a   : > { %2084 = vst [vmem:[#allocation1 + $0x23] ss:$4 sm:$0xff] %v1833_v21  ;;  %3190 = vmatmul.msk.f32.gmra.mxu2 %vm1645_vm11, %v1630_v31 }
 0x31b   : > { %2070 = vst [vmem:[#allocation1] ss:$4 sm:$0xff] %v1782_v48  ;;  %v1899_v48 = vadd.s32 2, %v5250_v15 }
 0x31c   : > { %2072 = vst [vmem:[#allocation1 + $0x1] ss:$4 sm:$0xff] %v1828_v7 }
 0x31d   : > { %2074 = vst [vmem:[#allocation1 + $0x2] ss:$4 sm:$0xff] %v1829_v57 }
 0x31e   : > { %2076 = vst [vmem:[#allocation1 + $0x3] ss:$4 sm:$0xff] %v1830_v18 }
 0x321   : > { %v2086_v55 = vld.sshfl [vmem:[#allocation1 + $0x20] sm:$0xff pattern:$0x73625140]  ;;  %3194 = vmatmul.msk.f32.gmra.mxu3 %vm1645_vm11, %v1644_v42 }
 0x322   : > { %3191 = vmatmul.msk.f32.gmra.mxu2 %vm1645_vm11, %v1631_v51  ;;  %v5269_v53 = vsel %vm5258_vm15, %v2086_v55, 0.0  ;;  %vm5293_vm11 = vmand %vm1915_vm7, %vm1925_vm10  ;;  %vm1916_vm15 = vcmp.ge.s32.totalorder %v1899_v48, 0 }
 0x323   : > { %v2282_v6 = vrot.slane %v5269_v53, 1  ;;  %vm1950_vm12 = vmand %vm5293_vm11, %vm1944_vm14 }
 0x324   : > { %vm1985_vm13 = vmand %vm5293_vm11, %vm1979_vm3 }
 0x325   : > { %v2085_v27 = vld.sshfl [vmem:[#allocation1] sm:$0xff pattern:$0x73625140] }
 0x326   : > { %v5271_v36 = vsel %vm1947_vm2, %v2085_v27, 0.0  ;;  %vm1926_vm2 = vcmp.lt.s32.totalorder %v1899_v48, 16 }
 0x327   : > { %v2281_v3 = vrot.slane %v5271_v36, 1  ;;  %v1719_v38 = vpop.f32.mrf.mxu0 }
 0x328   : > { %v1720_v32 = vadd.f32 %v5233_v34, %v1719_v38 }
 0x329   : > { %v2283_v16 = vsel %vm330_vm0, %v2281_v3, %v2282_v6 }
 0x32a   : > { %2321 = vrot.lane.b32.xlu0 %v2283_v16, %s3361_s9  ;;  %v1784_v41 = vmax.f32 %v1720_v32, 0.0 }
 0x32c   : > { %v1834_v31 = vrot.slane %v1784_v41, 2  ;;  %v1835_v62 = vrot.slane %v1784_v41, 4  ;;  %v1836_v11 = vrot.slane %v1784_v41, 6  ;;  %2087 = vst [vmem:[#allocation1] ss:$4 sm:$0xff] %v1784_v41 }
 0x32e   : > { %2089 = vst [vmem:[#allocation1 + $0x20] ss:$4 sm:$0xff] %v1834_v31 }
 0x32f   : > { %2090 = vst [vmem:[#allocation1 + $0x21] ss:$4 sm:$0xff] %v1835_v62 }
 0x330   : > { %2091 = vst [vmem:[#allocation1 + $0x22] ss:$4 sm:$0xff] %v1836_v11 }
 0x331   : > { %v1722_v17 = vpop.f32.mrf.mxu0 }
 0x332   : > { %v1723_v20 = vadd.f32 %v5233_v34, %v1722_v17 }
 0x333   : > { %v2088_v61 = vld.sshfl [vmem:[#allocation1] sm:$0xff pattern:$0x73625140] }
 0x334   : > { %v1785_v35 = vmax.f32 %v1723_v20, 0.0  ;;  %v5286_v13 = vsel %vm1982_vm5, %v2088_v61, 0.0  ;;  %vm1936_vm5 = vmand %vm1916_vm15, %vm1926_vm2  ;;  %v1900_v61 = vadd.s32 3, %v5250_v15 }
 0x335   : > { %v2284_v59 = vrot.slane %v5286_v13, 1  ;;  %vm1953_vm7 = vmand %vm1936_vm5, %vm1944_vm14 }
 0x336   : > { %v1837_v25 = vrot.slane %v1785_v35, 2  ;;  %v1838_v1 = vrot.slane %v1785_v35, 4  ;;  %v1839_v39 = vrot.slane %v1785_v35, 6  ;;  %2092 = vst [vmem:[#allocation1 + $0x23] ss:$4 sm:$0xff] %v1785_v35  ;;  %vm1988_vm10 = vmand %vm1936_vm5, %vm1979_vm3 }
 0x337   : > { %v2285_v19 = vsel %vm330_vm0, %v2282_v6, %v2284_v59 }
 0x338   : > { %2094 = vst [vmem:[#allocation1] ss:$4 sm:$0xff] %v1837_v25  ;;  %2323 = vrot.lane.b32.xlu1 %v2285_v19, %s3361_s9 }
 0x339   : > { %2095 = vst [vmem:[#allocation1 + $0x1] ss:$4 sm:$0xff] %v1838_v1  ;;  %v1725_v28 = vpop.f32.mrf.mxu0 }
 0x33a   : > { %2096 = vst [vmem:[#allocation1 + $0x2] ss:$4 sm:$0xff] %v1839_v39  ;;  %v1726_v52 = vadd.f32 %v5233_v34, %v1725_v28 }
 0x33c   : > { %v1786_v60 = vmax.f32 %v1726_v52, 0.0 }
 0x33d   : > { %v2093_v43 = vld.sshfl [vmem:[#allocation1 + $0x20] sm:$0xff pattern:$0x73625140] }
 0x33e   : > { %v1840_v56 = vrot.slane %v1786_v60, 2  ;;  %2097 = vst [vmem:[#allocation1 + $0x3] ss:$4 sm:$0xff] %v1786_v60  ;;  %v5302_v51 = vsel %vm1950_vm12, %v2093_v43, 0.0  ;;  %v1841_v26 = vrot.slane %v1786_v60, 4  ;;  %v1842_v4 = vrot.slane %v1786_v60, 6 }
 0x33f   : > { %v2286_v22 = vrot.slane %v5302_v51, 1  ;;  %vm1927_vm12 = vcmp.lt.s32.totalorder %v1900_v61, 16 }
 0x340   : > { %2098 = vst [vmem:[#allocation1 + $0x20] ss:$4 sm:$0xff] %v1840_v56 }
 0x341   : > { %v1728_v2 = vpop.f32.mrf.mxu0 }
 0x342   : > { %v1729_v40 = vadd.f32 %v5233_v34, %v1728_v2 }
 0x344   : > { %v1787_v5 = vmax.f32 %v1729_v40, 0.0 }
 0x345   : > { %v2099_v14 = vld.sshfl [vmem:[#allocation1] sm:$0xff pattern:$0x73625140] }
 0x346   : > { %2101 = vst [vmem:[#allocation1] ss:$4 sm:$0xff] %v1841_v26  ;;  %v1843_v30 = vrot.slane %v1787_v5, 2  ;;  %v1844_v33 = vrot.slane %v1787_v5, 4  ;;  %v1845_v23 = vrot.slane %v1787_v5, 6  ;;  %v5311_v50 = vsel %vm5293_vm11, %v2099_v14, 0.0 }
 0x347   : > { %v2100_v29 = vld.sshfl [vmem:[#allocation1 + $0x20] sm:$0xff pattern:$0x73625140]  ;;  %2102 = vst [vmem:[#allocation1 + $0x1] ss:$4 sm:$0xff] %v1842_v4  ;;  %v2287_v46 = vrot.slane %v5311_v50, 1 }
 0x348   : > { %2103 = vst [vmem:[#allocation1 + $0x2] ss:$4 sm:$0xff] %v1787_v5  ;;  %v5314_v44 = vsel %vm1985_vm13, %v2100_v29, 0.0  ;;  %vm1917_vm11 = vcmp.ge.s32.totalorder %v1900_v61, 0 }
 0x349   : > { %2104 = vst [vmem:[#allocation1 + $0x3] ss:$4 sm:$0xff] %v1843_v30  ;;  %v1731_v8 = vpop.f32.mrf.mxu0  ;;  %v5317_v58 = vsel %vm330_vm0, %v2286_v22, %v2287_v46  ;;  %v2289_v49 = vrot.slane %v5314_v44, 1  ;;  %vm1937_vm13 = vmand %vm1917_vm11, %vm1927_vm12  ;;  %v1901_v22 = vadd.s32 4, %v5250_v15 }
 0x34a   : > { %2105 = vst [vmem:[#allocation1 + $0x20] ss:$4 sm:$0xff] %v1844_v33  ;;  %v1732_v54 = vadd.f32 %v5233_v34, %v1731_v8  ;;  %2325 = vrot.lane.b32.xlu2 %v5317_v58, %s3361_s9  ;;  %vm1956_vm15 = vmand %vm1937_vm13, %vm1944_vm14 }
 0x34b   : > { %2106 = vst [vmem:[#allocation1 + $0x21] ss:$4 sm:$0xff] %v1845_v23  ;;  %v5325_v10 = vsel %vm330_vm0, %v2287_v46, %v2289_v49  ;;  %vm1991_vm2 = vmand %vm1937_vm13, %vm1979_vm3 }
 0x34c   : > { %v1788_v37 = vmax.f32 %v1732_v54, 0.0  ;;  %2327 = vrot.lane.b32.xlu0 %v5325_v10, %s3361_s9 }
 0x34e   : > { %v1846_v21 = vrot.slane %v1788_v37, 2  ;;  %v1847_v24 = vrot.slane %v1788_v37, 4  ;;  %2107 = vst [vmem:[#allocation1 + $0x22] ss:$4 sm:$0xff] %v1788_v37  ;;  %v1848_v55 = vrot.slane %v1788_v37, 6 }
 0x350   : > { %v2109_v42 = vld.sshfl [vmem:[#allocation1] sm:$0xff pattern:$0x73625140]  ;;  %2108 = vst [vmem:[#allocation1 + $0x23] ss:$4 sm:$0xff] %v1846_v21 }
 0x351   : > { %2111 = vst [vmem:[#allocation1] ss:$4 sm:$0xff] %v1847_v24  ;;  %v1734_v7 = vpop.f32.mrf.mxu0  ;;  %v5332_v27 = vsel %vm1953_vm7, %v2109_v42, 0.0  ;;  %vm1928_vm7 = vcmp.lt.s32.totalorder %v1901_v22, 16 }
 0x352   : > { %v1735_v57 = vadd.f32 %v5233_v34, %v1734_v7  ;;  %v2291_v41 = vrot.slane %v5332_v27, 1 }
 0x354   : > { %v1789_v18 = vmax.f32 %v1735_v57, 0.0 }
 0x356   : > { %v1849_v47 = vrot.slane %v1789_v18, 2  ;;  %v1850_v3 = vrot.slane %v1789_v18, 4  ;;  %v1851_v6 = vrot.slane %v1789_v18, 6 }
 0x357   : > { %v2110_v9 = vld.sshfl [vmem:[#allocation1 + $0x20] sm:$0xff pattern:$0x73625140] }
 0x358   : > { %v2112_v38 = vld.sshfl [vmem:[#allocation1] sm:$0xff pattern:$0x73625140]  ;;  %2113 = vst [vmem:[#allocation1 + $0x20] ss:$4 sm:$0xff] %v1848_v55  ;;  %v5336_v32 = vsel %vm1936_vm5, %v2110_v9, 0.0 }
 0x359   : > { %2114 = vst [vmem:[#allocation1 + $0x21] ss:$4 sm:$0xff] %v1789_v18  ;;  %v1737_v16 = vpop.f32.mrf.mxu0  ;;  %v2292_v31 = vrot.slane %v5336_v32, 1  ;;  %v5340_v62 = vsel %vm1988_vm10, %v2112_v38, 0.0  ;;  %vm1918_vm5 = vcmp.ge.s32.totalorder %v1901_v22, 0 }
 0x35a   : > { %2115 = vst [vmem:[#allocation1 + $0x22] ss:$4 sm:$0xff] %v1849_v47  ;;  %v1738_v11 = vadd.f32 %v5233_v34, %v1737_v16  ;;  %v2294_v17 = vrot.slane %v5340_v62, 1  ;;  %vm5383_vm10 = vmand %vm1918_vm5, %vm1928_vm7 }
 0x35b   : > { %2116 = vst [vmem:[#allocation1 + $0x23] ss:$4 sm:$0xff] %v1850_v3  ;;  %v5345_v20 = vsel %vm330_vm0, %v2291_v41, %v2292_v31  ;;  %vm1959_vm11 = vmand %vm5383_vm10, %vm1944_vm14 }
 0x35c   : > { %2118 = vst [vmem:[#allocation1] ss:$4 sm:$0xff] %v1851_v6  ;;  %v1790_v35 = vmax.f32 %v1738_v11, 0.0  ;;  %2329 = vrot.lane.b32.xlu1 %v5345_v20, %s3361_s9  ;;  %v5351_v59 = vsel %vm330_vm0, %v2292_v31, %v2294_v17  ;;  %vm1994_vm12 = vmand %vm5383_vm10, %vm1979_vm3 }
 0x35d   : > { %v1743_v0 = vpop.f32.mrf.mxu2  ;;  %2331 = vrot.lane.b32.xlu2 %v5351_v59, %s3361_s9 }
 0x35e   : > { %v1852_v25 = vrot.slane %v1790_v35, 2  ;;  %v1853_v1 = vrot.slane %v1790_v35, 4  ;;  %2119 = vst [vmem:[#allocation1 + $0x1] ss:$4 sm:$0xff] %v1790_v35  ;;  %v1854_v39 = vrot.slane %v1790_v35, 6  ;;  %v1744_v52 = vadd.f32 %v5233_v34, %v1743_v0 }
 0x35f   : > { %v1902_v0 = vadd.s32 5, %v5250_v15 }
 0x360   : > { %2120 = vst [vmem:[#allocation1 + $0x2] ss:$4 sm:$0xff] %v1852_v25  ;;  %v1792_v56 = vmax.f32 %v1744_v52, 0.0 }
 0x361   : > { %2121 = vst [vmem:[#allocation1 + $0x3] ss:$4 sm:$0xff] %v1853_v1  ;;  %v1740_v19 = vpop.f32.mrf.mxu0 }
 0x362   : > { %v2117_v28 = vld.sshfl [vmem:[#allocation1 + $0x20] sm:$0xff pattern:$0x73625140]  ;;  %v1741_v60 = vadd.f32 %v5233_v34, %v1740_v19  ;;  %v1858_v5 = vrot.slane %v1792_v56, 2  ;;  %v1859_v4 = vrot.slane %v1792_v56, 4  ;;  %v1860_v46 = vrot.slane %v1792_v56, 6 }
 0x363   : > { %2122 = vst [vmem:[#allocation1 + $0x20] ss:$4 sm:$0xff] %v1854_v39  ;;  %v5361_v40 = vsel %vm1956_vm15, %v2117_v28, 0.0  ;;  %vm1929_vm15 = vcmp.lt.s32.totalorder %v1902_v0, 16 }
 0x364   : > { %v1791_v43 = vmax.f32 %v1741_v60, 0.0  ;;  %v2296_v29 = vrot.slane %v5361_v40, 1 }
 0x365   : > { %v1746_v63 = vpop.f32.mrf.mxu2 }
 0x366   : > { %v1855_v30 = vrot.slane %v1791_v43, 2  ;;  %v1747_v8 = vadd.f32 %v5233_v34, %v1746_v63  ;;  %v1856_v49 = vrot.slane %v1791_v43, 4  ;;  %v1857_v54 = vrot.slane %v1791_v43, 6 }
 0x368   : > { %v2123_v2 = vld.sshfl [vmem:[#allocation1] sm:$0xff pattern:$0x73625140]  ;;  %v1793_v42 = vmax.f32 %v1747_v8, 0.0 }
 0x369   : > { %v5363_v26 = vsel %vm1937_vm13, %v2123_v2, 0.0  ;;  %2125 = vst [vmem:[#allocation1] ss:$4 sm:$0xff] %v1791_v43  ;;  %vm1919_vm13 = vcmp.ge.s32.totalorder %v1902_v0, 0 }
 0x36a   : > { %v2124_v14 = vld.sshfl [vmem:[#allocation1 + $0x20] sm:$0xff pattern:$0x73625140]  ;;  %v2297_v23 = vrot.slane %v5363_v26, 1  ;;  %2126 = vst [vmem:[#allocation1 + $0x1] ss:$4 sm:$0xff] %v1855_v30 }
 0x36b   : > { %2129 = vst [vmem:[#allocation1 + $0x20] ss:$4 sm:$0xff] %v1792_v56  ;;  %v5366_v33 = vsel %vm1991_vm2, %v2124_v14, 0.0  ;;  %v1861_v18 = vrot.slane %v1793_v42, 2  ;;  %v1862_v55 = vrot.slane %v1793_v42, 4  ;;  %v1863_v3 = vrot.slane %v1793_v42, 6  ;;  %vm5416_vm2 = vmand %vm1919_vm13, %vm1929_vm15 }
 0x36c   : > { %2130 = vst [vmem:[#allocation1 + $0x21] ss:$4 sm:$0xff] %v1858_v5  ;;  %v2299_v48 = vrot.slane %v5366_v33, 1  ;;  %v5373_v21 = vsel %vm330_vm0, %v2296_v29, %v2297_v23  ;;  %vm1962_vm5 = vmand %vm5416_vm2, %vm1944_vm14 }
 0x36d   : > { %2131 = vst [vmem:[#allocation1 + $0x22] ss:$4 sm:$0xff] %v1859_v4  ;;  %v1749_v37 = vpop.f32.mrf.mxu2  ;;  %2333 = vrot.lane.b32.xlu0 %v5373_v21, %s3361_s9  ;;  %vm1997_vm7 = vmand %vm5416_vm2, %vm1979_vm3 }
 0x36e   : > { %2132 = vst [vmem:[#allocation1 + $0x23] ss:$4 sm:$0xff] %v1860_v46  ;;  %v5376_v24 = vsel %vm330_vm0, %v2297_v23, %v2299_v48  ;;  %v1750_v7 = vadd.f32 %v5233_v34, %v1749_v37 }
 0x36f   : > { %2335 = vrot.lane.b32.xlu1 %v5376_v24, %s3361_s9  ;;  %2127 = vst [vmem:[#allocation1 + $0x2] ss:$4 sm:$0xff] %v1856_v49  ;;  %v1903_v49 = vadd.s32 6, %v5250_v15 }
 0x370   : > { %2128 = vst [vmem:[#allocation1 + $0x3] ss:$4 sm:$0xff] %v1857_v54  ;;  %v1794_v38 = vmax.f32 %v1750_v7, 0.0 }
 0x372   : > { %v1864_v25 = vrot.slane %v1794_v38, 2  ;;  %v1865_v39 = vrot.slane %v1794_v38, 4  ;;  %v1866_v28 = vrot.slane %v1794_v38, 6 }
 0x375   : > { %v1752_v47 = vpop.f32.mrf.mxu2  ;;  %v2134_v9 = vld.sshfl [vmem:[#allocation1 + $0x20] sm:$0xff pattern:$0x73625140] }
 0x376   : > { %v5393_v6 = vsel %vm5383_vm10, %v2134_v9, 0.0  ;;  %2137 = vst [vmem:[#allocation1 + $0x20] ss:$4 sm:$0xff] %v1861_v18  ;;  %v1753_v17 = vadd.f32 %v5233_v34, %v1752_v47  ;;  %vm1920_vm10 = vcmp.ge.s32.totalorder %v1903_v49, 0 }
 0x377   : > { %2138 = vst [vmem:[#allocation1 + $0x21] ss:$4 sm:$0xff] %v1862_v55  ;;  %v2133_v16 = vld.sshfl [vmem:[#allocation1] sm:$0xff pattern:$0x73625140]  ;;  %v2302_v41 = vrot.slane %v5393_v6, 1 }
 0x378   : > { %2139 = vst [vmem:[#allocation1 + $0x22] ss:$4 sm:$0xff] %v1863_v3  ;;  %v5396_v31 = vsel %vm1959_vm11, %v2133_v16, 0.0  ;;  %v1795_v1 = vmax.f32 %v1753_v17, 0.0  ;;  %vm1930_vm11 = vcmp.lt.s32.totalorder %v1903_v49, 16 }
 0x379   : > { %2135 = vst [vmem:[#allocation1] ss:$4 sm:$0xff] %v1793_v42  ;;  %v2301_v11 = vrot.slane %v5396_v31, 1 }
 0x37a   : > { %2140 = vst [vmem:[#allocation1 + $0x23] ss:$4 sm:$0xff] %v1794_v38  ;;  %v1867_v56 = vrot.slane %v1795_v1, 2  ;;  %v1868_v30 = vrot.slane %v1795_v1, 4  ;;  %v1869_v29 = vrot.slane %v1795_v1, 6 }
 0x37b   : > { %v5401_v61 = vsel %vm330_vm0, %v2301_v11, %v2302_v41  ;;  %v2369_v11 = vrot.slane %v5271_v36, 2 }
 0x37c   : > { %2337 = vrot.lane.b32.xlu2 %v5401_v61, %s3361_s9 }
 0x37d   : > { %v1755_v35 = vpop.f32.mrf.mxu2 }
 0x37e   : > { %v1756_v5 = vadd.f32 %v5233_v34, %v1755_v35 }
 0x380   : > { %v2136_v19 = vld.sshfl [vmem:[#allocation1] sm:$0xff pattern:$0x73625140]  ;;  %v1796_v22 = vmax.f32 %v1756_v5, 0.0  ;;  %v1904_v5 = vadd.s32 7, %v5250_v15 }
 0x381   : > { %v5410_v52 = vsel %vm1994_vm12, %v2136_v19, 0.0  ;;  %2142 = vst [vmem:[#allocation1] ss:$4 sm:$0xff] %v1864_v25  ;;  %v2141_v63 = vld.sshfl [vmem:[#allocation1 + $0x20] sm:$0xff pattern:$0x73625140]  ;;  %vm5455_vm12 = vmand %vm1920_vm10, %vm1930_vm11 }
 0x382   : > { %v2304_v60 = vrot.slane %v5410_v52, 1  ;;  %2143 = vst [vmem:[#allocation1 + $0x1] ss:$4 sm:$0xff] %v1865_v39  ;;  %v5432_v23 = vsel %vm1962_vm5, %v2141_v63, 0.0  ;;  %v1870_v37 = vrot.slane %v1796_v22, 2  ;;  %v1871_v55 = vrot.slane %v1796_v22, 4  ;;  %vm1965_vm13 = vmand %vm5455_vm12, %vm1944_vm14 }
 0x383   : > { %2144 = vst [vmem:[#allocation1 + $0x2] ss:$4 sm:$0xff] %v1866_v28  ;;  %v2306_v57 = vrot.slane %v5432_v23, 1  ;;  %v1872_v9 = vrot.slane %v1796_v22, 6  ;;  %vm2000_vm15 = vmand %vm5455_vm12, %vm1979_vm3  ;;  %vm1931_vm5 = vcmp.lt.s32.totalorder %v1904_v5, 16 }
 0x384   : > { %v5414_v43 = vsel %vm330_vm0, %v2302_v41, %v2304_v60  ;;  %2145 = vst [vmem:[#allocation1 + $0x3] ss:$4 sm:$0xff] %v1795_v1 }
 0x385   : > { %2339 = vrot.lane.b32.xlu0 %v5414_v43, %s3361_s9  ;;  %v1758_v4 = vpop.f32.mrf.mxu2  ;;  %2146 = vst [vmem:[#allocation1 + $0x20] ss:$4 sm:$0xff] %v1867_v56 }
 0x386   : > { %v1759_v14 = vadd.f32 %v5233_v34, %v1758_v4 }
 0x388   : > { %v1797_v46 = vmax.f32 %v1759_v14, 0.0 }
 0x38a   : > { %v1873_v3 = vrot.slane %v1797_v46, 2  ;;  %v1874_v17 = vrot.slane %v1797_v46, 4  ;;  %v1875_v39 = vrot.slane %v1797_v46, 6 }
 0x38b   : > { %v2147_v8 = vld.sshfl [vmem:[#allocation1] sm:$0xff pattern:$0x73625140] }
 0x38c   : > { %v2148_v48 = vld.sshfl [vmem:[#allocation1 + $0x20] sm:$0xff pattern:$0x73625140]  ;;  %v5437_v54 = vsel %vm5416_vm2, %v2147_v8, 0.0  ;;  %2149 = vst [vmem:[#allocation1] ss:$4 sm:$0xff] %v1868_v30 }
 0x38d   : > { %v5439_v42 = vsel %vm1997_vm7, %v2148_v48, 0.0  ;;  %v2307_v7 = vrot.slane %v5437_v54, 1  ;;  %2150 = vst [vmem:[#allocation1 + $0x1] ss:$4 sm:$0xff] %v1869_v29  ;;  %v1761_v18 = vpop.f32.mrf.mxu2  ;;  %vm1921_vm2 = vcmp.ge.s32.totalorder %v1904_v5, 0 }
 0x38e   : > { %v2309_v47 = vrot.slane %v5439_v42, 1  ;;  %2151 = vst [vmem:[#allocation1 + $0x2] ss:$4 sm:$0xff] %v1796_v22  ;;  %v1762_v41 = vadd.f32 %v5233_v34, %v1761_v18  ;;  %vm5489_vm7 = vmand %vm1921_vm2, %vm1931_vm5 }
 0x38f   : > { %2152 = vst [vmem:[#allocation1 + $0x3] ss:$4 sm:$0xff] %v1870_v37  ;;  %v5445_v38 = vsel %vm330_vm0, %v2306_v57, %v2307_v7  ;;  %vm1968_vm10 = vmand %vm5489_vm7, %vm1944_vm14 }
 0x390   : > { %6684 = vst [vmem:[#allocation38_spill] sm:$0xff] %v5445_v38  ;;  %v5448_v16 = vsel %vm330_vm0, %v2307_v7, %v2309_v47  ;;  %2341 = vrot.lane.b32.xlu1 %v5445_v38, %s3361_s9  ;;  %v1798_v35 = vmax.f32 %v1762_v41, 0.0  ;;  %vm2003_vm11 = vmand %vm5489_vm7, %vm1979_vm3 }
 0x391   : > { %6685 = vst [vmem:[#allocation34_spill] sm:$0xff] %v5448_v16  ;;  %2343 = vrot.lane.b32.xlu2 %v5448_v16, %s3361_s9 }
 0x392   : > { %2153 = vst [vmem:[#allocation1 + $0x20] ss:$4 sm:$0xff] %v1871_v55  ;;  %v1876_v19 = vrot.slane %v1798_v35, 2  ;;  %v1877_v63 = vrot.slane %v1798_v35, 4  ;;  %v1878_v22 = vrot.slane %v1798_v35, 6 }
 0x393   : > { %2154 = vst [vmem:[#allocation1 + $0x21] ss:$4 sm:$0xff] %v1872_v9 }
 0x394   : > { %2155 = vst [vmem:[#allocation1 + $0x22] ss:$4 sm:$0xff] %v1797_v46  ;;  %v1773_v9 = vpop.f32.mrf.mxu3 }
 0x395   : > { %2156 = vst [vmem:[#allocation1 + $0x23] ss:$4 sm:$0xff] %v1873_v3  ;;  %v1764_v0 = vpop.f32.mrf.mxu2 }
 0x396   : > { %v1765_v25 = vadd.f32 %v5233_v34, %v1764_v0  ;;  %v2157_v1 = vld.sshfl [vmem:[#allocation1] sm:$0xff pattern:$0x73625140] }
 0x397   : > { %2159 = vst [vmem:[#allocation1] ss:$4 sm:$0xff] %v1874_v17  ;;  %v5464_v60 = vsel %vm1965_vm13, %v2157_v1, 0.0 }
 0x398   : > { %v1799_v28 = vmax.f32 %v1765_v25, 0.0  ;;  %v2311_v4 = vrot.slane %v5464_v60, 1  ;;  %v2370_v25 = vrot.slane %v5269_v53, 2 }
 0x39a   : > { %v1879_v30 = vrot.slane %v1799_v28, 2  ;;  %v1880_v46 = vrot.slane %v1799_v28, 4  ;;  %v1881_v57 = vrot.slane %v1799_v28, 6 }
 0x39c   : > { %v2158_v56 = vld.sshfl [vmem:[#allocation1 + $0x20] sm:$0xff pattern:$0x73625140] }
 0x39d   : > { %v5468_v2 = vsel %vm5455_vm12, %v2158_v56, 0.0  ;;  %2161 = vst [vmem:[#allocation1 + $0x20] ss:$4 sm:$0xff] %v1875_v39  ;;  %v1767_v29 = vpop.f32.mrf.mxu2 }
 0x39e   : > { %v2312_v14 = vrot.slane %v5468_v2, 1  ;;  %2162 = vst [vmem:[#allocation1 + $0x21] ss:$4 sm:$0xff] %v1798_v35  ;;  %v2160_v49 = vld.sshfl [vmem:[#allocation1] sm:$0xff pattern:$0x73625140]  ;;  %v1768_v37 = vadd.f32 %v5233_v34, %v1767_v29  ;;  %v1776_v29 = vpop.f32.mrf.mxu3 }
 0x39f   : > { %2163 = vst [vmem:[#allocation1 + $0x22] ss:$4 sm:$0xff] %v1876_v19  ;;  %v5482_v48 = vsel %vm2000_vm15, %v2160_v49, 0.0 }
 0x3a0   : > { %v5478_v8 = vsel %vm330_vm0, %v2311_v4, %v2312_v14  ;;  %2164 = vst [vmem:[#allocation1 + $0x23] ss:$4 sm:$0xff] %v1877_v63  ;;  %v2314_v7 = vrot.slane %v5482_v48, 1  ;;  %v1800_v47 = vmax.f32 %v1768_v37, 0.0  ;;  %v2371_v63 = vsel %vm471_vm1, %v2369_v11, %v2370_v25 }
 0x3a1   : > { %2345 = vrot.lane.b32.xlu0 %v5478_v8, %s3361_s9  ;;  %2166 = vst [vmem:[#allocation1] ss:$4 sm:$0xff] %v1878_v22 }
 0x3a2   : > { %2167 = vst [vmem:[#allocation1 + $0x1] ss:$4 sm:$0xff] %v1799_v28  ;;  %v5487_v18 = vsel %vm330_vm0, %v2312_v14, %v2314_v7  ;;  %v1882_v35 = vrot.slane %v1800_v47, 2  ;;  %v1883_v0 = vrot.slane %v1800_v47, 4  ;;  %v1884_v19 = vrot.slane %v1800_v47, 6 }
 0x3a3   : > { %2168 = vst [vmem:[#allocation1 + $0x2] ss:$4 sm:$0xff] %v1879_v30  ;;  %2347 = vrot.lane.b32.xlu1 %v5487_v18, %s3361_s9  ;;  %v2377_v7 = vrot.slane %v5314_v44, 2  ;;  %v1905_v44 = vadd.s32 8, %v5250_v15 }
 0x3a4   : > { %2169 = vst [vmem:[#allocation1 + $0x3] ss:$4 sm:$0xff] %v1880_v46 }
 0x3a5   : > { %v1770_v3 = vpop.f32.mrf.mxu2  ;;  %vm1922_vm12 = vcmp.ge.s32.totalorder %v1905_v44, 0  ;;  %vm1932_vm13 = vcmp.lt.s32.totalorder %v1905_v44, 16  ;;  %v2382_v44 = vrot.slane %v5340_v62, 2  ;;  %v2387_v62 = vrot.slane %v5366_v33, 2 }
 0x3a6   : > { %v1771_v17 = vadd.f32 %v5233_v34, %v1770_v3  ;;  %vm5553_vm15 = vmand %vm1922_vm12, %vm1932_vm13  ;;  %v2400_v33 = vrot.slane %v5468_v2, 2  ;;  %vm2916_vm12 = vcmask 588800  }
 0x3a7   : > { %v2165_v41 = vld.sshfl [vmem:[#allocation1 + $0x20] sm:$0xff pattern:$0x73625140]  ;;  %vm2006_vm2 = vmand %vm5553_vm15, %vm1979_vm3 }
 0x3a8   : > { %2170 = vst [vmem:[#allocation1 + $0x20] ss:$4 sm:$0xff] %v1881_v57  ;;  %v1801_v1 = vmax.f32 %v1771_v17, 0.0  ;;  %v5502_v39 = vsel %vm1968_vm10, %v2165_v41, 0.0  ;;  %v1774_v57 = vadd.f32 %v5233_v34, %v1773_v9  ;;  %v2372_v41 = vrot.slane %v5286_v13, 2  ;;  %vm1971_vm5 = vmand %vm5553_vm15, %vm1944_vm14 }
 0x3a9   : > { %v2316_v14 = vrot.slane %v5502_v39, 1  ;;  %v1777_v17 = vadd.f32 %v5233_v34, %v1776_v29  ;;  %v2385_v13 = vrot.slane %v5363_v26, 2  ;;  %vm2869_vm10 = vcmask 457728  }
 0x3aa   : > { %v1885_v5 = vrot.slane %v1801_v1, 2  ;;  %v1886_v22 = vrot.slane %v1801_v1, 4  ;;  %v1887_v30 = vrot.slane %v1801_v1, 6  ;;  %v1802_v9 = vmax.f32 %v1774_v57, 0.0 }
 0x3ab   : > { %v2171_v28 = vld.sshfl [vmem:[#allocation1] sm:$0xff pattern:$0x73625140]  ;;  %2409 = vrot.lane.b32.xlu1 %v2371_v63, %s3363_s11  ;;  %v2374_v63 = vrot.slane %v5302_v51, 2 }
 0x3ac   : > { %v5507_v56 = vsel %vm5489_vm7, %v2171_v28, 0.0  ;;  %2173 = vst [vmem:[#allocation1] ss:$4 sm:$0xff] %v1800_v47  ;;  %v2375_v47 = vrot.slane %v5311_v50, 2  ;;  %v1779_v28 = vpop.f32.mrf.mxu3  ;;  %vm2852_vm7 = vcmask 392192  }
 0x3ad   : > { %v2317_v4 = vrot.slane %v5507_v56, 1  ;;  %2174 = vst [vmem:[#allocation1 + $0x1] ss:$4 sm:$0xff] %v1882_v35 }
 0x3ae   : > { %2175 = vst [vmem:[#allocation1 + $0x2] ss:$4 sm:$0xff] %v1883_v0  ;;  %v5534_v11 = vsel %vm471_vm1, %v2375_v47, %v2377_v7  ;;  %v2373_v0 = vsel %vm471_vm1, %v2370_v25, %v2372_v41  ;;  %v5550_v25 = vsel %vm471_vm1, %v2374_v63, %v2375_v47 }
 0x3af   : > { %v2172_v46 = vld.sshfl [vmem:[#allocation1 + $0x20] sm:$0xff pattern:$0x73625140]  ;;  %2176 = vst [vmem:[#allocation1 + $0x3] ss:$4 sm:$0xff] %v1884_v19  ;;  %v5517_v49 = vsel %vm330_vm0, %v2316_v14, %v2317_v4  ;;  %v1803_v19 = vmax.f32 %v1777_v17, 0.0 }
 0x3b0   : > { %v5519_v37 = vsel %vm2003_vm11, %v2172_v46, 0.0  ;;  %2177 = vst [vmem:[#allocation1 + $0x20] ss:$4 sm:$0xff] %v1801_v1  ;;  %2349 = vrot.lane.b32.xlu2 %v5517_v49, %s3361_s9  ;;  %v1888_v1 = vrot.slane %v1802_v9, 2  ;;  %v1780_v46 = vadd.f32 %v5233_v34, %v1779_v28  ;;  %v2390_v28 = vrot.slane %v5393_v6, 2 }
 0x3b1   : > { %v2319_v55 = vrot.slane %v5519_v37, 1  ;;  %2178 = vst [vmem:[#allocation1 + $0x21] ss:$4 sm:$0xff] %v1885_v5  ;;  %v1889_v5 = vrot.slane %v1802_v9, 4  ;;  %v1891_v57 = vrot.slane %v1803_v19, 2  ;;  %v1892_v34 = vrot.slane %v1803_v19, 4 }
 0x3b2   : > { %2179 = vst [vmem:[#allocation1 + $0x22] ss:$4 sm:$0xff] %v1886_v22  ;;  %v1890_v22 = vrot.slane %v1802_v9, 6  ;;  %v1893_v41 = vrot.slane %v1803_v19, 6  ;;  %vm2886_vm11 = vcmask 523264  }
 0x3b3   : > { %v5528_v3 = vsel %vm330_vm0, %v2317_v4, %v2319_v55  ;;  %2180 = vst [vmem:[#allocation1 + $0x23] ss:$4 sm:$0xff] %v1887_v30  ;;  %2415 = vrot.lane.b32.xlu1 %v5534_v11, %s3363_s11  ;;  %v2384_v4 = vrot.slane %v5361_v40, 2  ;;  %v2380_v30 = vrot.slane %v5336_v32, 2  ;;  %v2379_v55 = vrot.slane %v5332_v27, 2 }
 0x3b4   : > { %2351 = vrot.lane.b32.xlu0 %v5528_v3, %s3361_s9  ;;  %s3369_s9 = smov 64  }
 0x3b5   : > { %v5561_v7 = vsel %vm471_vm1, %v2384_v4, %v2385_v13  ;;  %v2389_v4 = vrot.slane %v5396_v31, 2 }
 0x3b6   : > { %v5540_v35 = vld.sshfl [vmem:[#allocation1] sm:$0xff pattern:$0x73625140] }
 0x3b7   : > { %2183 = vst [vmem:[#allocation1] ss:$4 sm:$0xff] %v1802_v9  ;;  %v5572_v9 = vsel %vm471_vm1, %v2379_v55, %v2380_v30 }
 0x3b8   : > { %2411 = vrot.lane.b32.xlu2 %v2373_v0, %s3363_s11  ;;  %v1804_v0 = vmax.f32 %v1780_v46, 0.0  ;;  %v5602_v46 = vsel %vm471_vm1, %v2389_v4, %v2390_v28  ;;  %v2324_v4 = vpop.permute.xlu1 %2323 }
 0x3ba   : > { %v5547_v14 = vld.sshfl [vmem:[#allocation1 + $0x20] sm:$0xff pattern:$0x73625140]  ;;  %v1894_v63 = vrot.slane %v1804_v0, 2 }
 0x3bb   : > { %2185 = vst [vmem:[#allocation1 + $0x20] ss:$4 sm:$0xff] %v1888_v1  ;;  %2421 = vrot.lane.b32.xlu1 %v5561_v7, %s3363_s11  ;;  %v2392_v1 = vrot.slane %v5410_v52, 2 }
 0x3bc   : > { %2413 = vrot.lane.b32.xlu0 %v5550_v25, %s3363_s11  ;;  %2186 = vst [vmem:[#allocation1 + $0x21] ss:$4 sm:$0xff] %v1889_v5 }
 0x3bd   : > { %2187 = vst [vmem:[#allocation1 + $0x22] ss:$4 sm:$0xff] %v1890_v22  ;;  %v5587_v5 = vsel %vm471_vm1, %v2390_v28, %v2392_v1  ;;  %v5595_v22 = vsel %vm471_vm1, %v2385_v13, %v2387_v62  ;;  %v2394_v13 = vrot.slane %v5432_v23, 2  ;;  %v2402_v1 = vrot.slane %v5482_v48, 2  ;;  %v5653_v48 = vpop.permute.xlu2 %2325 }
 0x3be   : > { %2188 = vst [vmem:[#allocation1 + $0x23] ss:$4 sm:$0xff] %v1803_v19  ;;  %v2184_v47 = vld.sshfl [vmem:[#allocation1] sm:$0xff pattern:$0x73625140]  ;;  %v5581_v19 = vsel %vm471_vm1, %v2380_v30, %v2382_v44  ;;  %v2399_v30 = vrot.slane %v5464_v60, 2 }
 0x3bf   : > { %v5574_v17 = vsel %vm2006_vm2, %v2184_v47, 0.0  ;;  %2190 = vst [vmem:[#allocation1] ss:$4 sm:$0xff] %v1891_v57  ;;  %v2395_v57 = vrot.slane %v5437_v54, 2  ;;  %v2407_v44 = vrot.slane %v5519_v37, 2  ;;  %v5633_v28 = vsel %vm471_vm1, %v2400_v33, %v2402_v1 }
 0x3c0   : > { %2417 = vrot.lane.b32.xlu2 %v5572_v9, %s3363_s11  ;;  %2191 = vst [vmem:[#allocation1 + $0x1] ss:$4 sm:$0xff] %v1892_v34  ;;  %v5608_v55 = vsel %vm471_vm1, %v2399_v30, %v2400_v33  ;;  %v2397_v34 = vrot.slane %v5439_v42, 2  ;;  %v2404_v37 = vrot.slane %v5502_v39, 2  ;;  %v5678_v30 = vsel %vm1971_vm5, %v5540_v35, 0.0 }
 0x3c1   : > { %2192 = vst [vmem:[#allocation1 + $0x2] ss:$4 sm:$0xff] %v1893_v41  ;;  %v5615_v47 = vsel %vm471_vm1, %v2394_v13, %v2395_v57  ;;  %v2405_v41 = vrot.slane %v5507_v56, 2 }
 0x3c2   : > { %2193 = vst [vmem:[#allocation1 + $0x3] ss:$4 sm:$0xff] %v1804_v0  ;;  %v5622_v0 = vsel %vm471_vm1, %v2395_v57, %v2397_v34  ;;  %v2322_v57 = vpop.permute.xlu0 %2321 }
 0x3c3   : > { %2427 = vrot.lane.b32.xlu1 %v5587_v5, %s3363_s11  ;;  %6692 = vst [vmem:[#allocation113_spill] sm:$0xff] %v5615_v47  ;;  %v5628_v42 = vsel %vm471_vm1, %v2405_v41, %v2407_v44  ;;  %v5639_v62 = vsel %vm471_vm1, %v2404_v37, %v2405_v41  ;;  %v5693_v44 = vsel %vm5553_vm15, %v5547_v14, 0.0  ;;  %v2772_v14 = vsel %vm1209_vm4, %v5269_v53, %v2324_v4 }
 0x3c4   : > { %2419 = vrot.lane.b32.xlu0 %v5581_v19, %s3363_s11 }
 0x3c5   : > { %v5591_v52 = vld.sshfl [vmem:[#allocation1 + $0x20] sm:$0xff pattern:$0x73625140] }
 0x3c6   : > { %2194 = vst [vmem:[#allocation1 + $0x20] ss:$4 sm:$0xff] %v1894_v63  ;;  %v5661_v63 = vpop.permute.xlu2 %2331 }
 0x3c8   : > { %2423 = vrot.lane.b32.xlu2 %v5595_v22, %s3363_s11 }
 0x3ca   : > { %v2328_v41 = vpop.permute.xlu0 %2327 }
 0x3cb   : > { %2433 = vrot.lane.b32.xlu1 %v5608_v55, %s3363_s11 }
 0x3cc   : > { %2425 = vrot.lane.b32.xlu0 %v5602_v46, %s3363_s11 }
 0x3ce   : > { %v2330_v13 = vpop.permute.xlu1 %2329 }
 0x3cf   : > { %v2775_v38 = vsel %vm1209_vm4, %v5332_v27, %v2330_v13 }
 0x3d0   : > { %2429 = vrot.lane.b32.xlu2 %v5615_v47, %s3363_s11 }
 0x3d3   : > { %2439 = vrot.lane.b32.xlu1 %v5628_v42, %s3363_s11 }
 0x3d4   : > { %2431 = vrot.lane.b32.xlu0 %v5622_v0, %s3363_s11 }
 0x3d6   : > { %v5673_v33 = vpop.permute.xlu2 %2337 }
 0x3d8   : > { %2435 = vrot.lane.b32.xlu2 %v5633_v28, %s3363_s11 }
 0x3db   : > { %2463 = vrot.lane.b32.xlu1 %v5332_v27, %s3365_s13 }
 0x3dc   : > { %2437 = vrot.lane.b32.xlu0 %v5639_v62, %s3363_s11  ;;  %s3370_s11 = smov 48  }
 0x3e0   : > { %2459 = vrot.lane.b32.xlu2 %v5302_v51, %s3365_s13 }
 0x3e1   : > { %v2336_v35 = vpop.permute.xlu1 %2335 }
 0x3e3   : > { %2469 = vrot.lane.b32.xlu1 %v5363_v26, %s3365_s13 }
 0x3e4   : > { %2461 = vrot.lane.b32.xlu0 %v5311_v50, %s3365_s13 }
 0x3e8   : > { %2465 = vrot.lane.b32.xlu2 %v5336_v32, %s3365_s13 }
 0x3eb   : > { %2475 = vrot.lane.b32.xlu1 %v5432_v23, %s3365_s13  ;;  %v5684_v34 = vpop.permute.xlu2 %2343 }
 0x3ec   : > { %2467 = vrot.lane.b32.xlu0 %v5361_v40, %s3365_s13 }
 0x3f0   : > { %2471 = vrot.lane.b32.xlu2 %v5396_v31, %s3365_s13 }
 0x3f3   : > { %2481 = vrot.lane.b32.xlu1 %v5468_v2, %s3365_s13 }
 0x3f4   : > { %2473 = vrot.lane.b32.xlu0 %v5393_v6, %s3365_s13 }
 0x3f8   : > { %2477 = vrot.lane.b32.xlu2 %v5437_v54, %s3365_s13 }
 0x3fb   : > { %2487 = vrot.lane.b32.xlu1 %v5678_v30, %s3365_s13 }
 0x3fc   : > { %2479 = vrot.lane.b32.xlu0 %v5464_v60, %s3365_s13 }
 0x400   : > { %2483 = vrot.lane.b32.xlu2 %v5502_v39, %s3365_s13 }
 0x402   : > { %v2342_v37 = vpop.permute.xlu1 %2341 }
 0x403   : > { %2566 = vrot.lane.b32.xlu1 %v5550_v25, %s3368_s18  ;;  %v2334_v25 = vpop.permute.xlu0 %2333 }
 0x404   : > { %2485 = vrot.lane.b32.xlu0 %v5507_v56, %s3365_s13 }
 0x408   : > { %2489 = vrot.lane.b32.xlu2 %v5693_v44, %s3365_s13  ;;  %s3371_s13 = smov 56  }
 0x40a   : > { %v5697_v1 = vpop.permute.xlu2 %2349 }
 0x40b   : > { %2723 = vrot.lane.b32.xlu1 %v5572_v9, %s3369_s9 }
 0x40c   : > { %2513 = vrot.lane.b32.xlu0 %v5317_v58, %s3367_s15  ;;  %v2340_v58 = vpop.permute.xlu0 %2339 }
 0x410   : > { %2616 = vrot.lane.b32.xlu2 %v5332_v27, %s3370_s11  ;;  %v2778_v27 = vsel %vm1209_vm4, %v5363_v26, %v2336_v35  ;;  %v2781_v35 = vsel %vm1209_vm4, %v5432_v23, %v2342_v37 }
 0x412   : > { %v2412_v29 = vpop.permute.xlu2 %2411 }
 0x413   : > { %v5708_v12 = vsel %vm1271_vm6, %v2772_v14, %v2412_v29  ;;  %2531 = vrot.lane.b32.xlu1 %v5448_v16, %s3367_s15  ;;  %v2771_v29 = vsel %vm1209_vm4, %v5271_v36, %v2322_v57 }
 0x414   : > { %2670 = vrot.lane.b32.xlu0 %v5345_v20, %s3371_s13  ;;  %v2346_v14 = vpop.permute.xlu0 %2345 }
 0x415   : > { %v2348_v47 = vpop.permute.xlu1 %2347 }
 0x418   : > { %2515 = vrot.lane.b32.xlu2 %v5325_v10, %s3367_s15 }
 0x41a   : > { %v2418_v53 = vpop.permute.xlu2 %2417 }
 0x41b   : > { %v5719_v4 = vsel %vm1271_vm6, %v2775_v38, %v2418_v53  ;;  %2672 = vrot.lane.b32.xlu1 %v5351_v59, %s3371_s13 }
 0x41c   : > { %2568 = vrot.lane.b32.xlu0 %v5534_v11, %s3368_s18 }
 0x41d   : > { %v2410_v16 = vpop.permute.xlu1 %2409 }
 0x41e   : > { %v5728_v10 = vsel %vm1271_vm6, %v2771_v29, %v2410_v16  ;;  %v2774_v16 = vsel %vm1209_vm4, %v5311_v50, %v2328_v41  ;;  %v2773_v50 = vsel %vm1209_vm4, %v5302_v51, %v5653_v48  ;;  %v2776_v51 = vsel %vm1209_vm4, %v5336_v32, %v5661_v63 }
 0x420   : > { %2618 = vrot.lane.b32.xlu2 %v5336_v32, %s3370_s11  ;;  %v2779_v32 = vsel %vm1209_vm4, %v5396_v31, %v5673_v33  ;;  %v2782_v33 = vsel %vm1209_vm4, %v5437_v54, %v5684_v34  ;;  %v2785_v34 = vsel %vm1209_vm4, %v5502_v39, %v5697_v1 }
 0x422   : > { %v2424_v38 = vpop.permute.xlu2 %2423 }
 0x423   : > { %v5735_v11 = vsel %vm1271_vm6, %v2778_v27, %v2424_v38  ;;  %2688 = vrot.lane.b32.xlu1 %v5487_v18, %s3371_s13  ;;  %v2777_v27 = vsel %vm1209_vm4, %v5361_v40, %v2334_v25  ;;  %v2780_v25 = vsel %vm1209_vm4, %v5393_v6, %v2340_v58  ;;  %v2783_v58 = vsel %vm1209_vm4, %v5464_v60, %v2346_v14 }
 0x424   : > { %2584 = vrot.lane.b32.xlu0 %v5622_v0, %s3368_s18 }
 0x425   : > { %v2416_v57 = vpop.permute.xlu1 %2415 }
 0x426   : > { %v2352_v36 = vpop.permute.xlu0 %2351  ;;  %v2790_v13 = vsel %vm1271_vm6, %v2774_v16, %v2416_v57  ;;  %v2784_v57 = vsel %vm1209_vm4, %v5468_v2, %v2348_v47 }
 0x428   : > { %2634 = vrot.lane.b32.xlu2 %v5468_v2, %s3370_s11 }
 0x42a   : > { %v2430_v53 = vpop.permute.xlu2 %2429 }
 0x42b   : > { %v5749_v29 = vsel %vm1271_vm6, %v2781_v35, %v2430_v53  ;;  %2570 = vrot.lane.b32.xlu1 %v5572_v9, %s3368_s18 }
 0x42c   : > { %2725 = vrot.lane.b32.xlu0 %v5581_v19, %s3369_s9 }
 0x42d   : > { %v2422_v38 = vpop.permute.xlu1 %2421 }
 0x42e   : > { %v2414_v41 = vpop.permute.xlu0 %2413  ;;  %v2793_v16 = vsel %vm1271_vm6, %v2777_v27, %v2422_v38 }
 0x42f   : > { %v2789_v37 = vsel %vm1271_vm6, %v2773_v50, %v2414_v41 }
 0x430   : > { %2741 = vrot.lane.b32.xlu2 %v5633_v28, %s3369_s9 }
 0x432   : > { %v2436_v9 = vpop.permute.xlu2 %2435 }
 0x433   : > { %v5767_v35 = vsel %vm1271_vm6, %v2784_v57, %v2436_v9  ;;  %2586 = vrot.lane.b32.xlu1 %v5608_v55, %s3368_s18  ;;  %v2786_v57 = vsel %vm1209_vm4, %v5507_v56, %v2352_v36 }
 0x434   : > { %2517 = vrot.lane.b32.xlu0 %v5345_v20, %s3367_s15 }
 0x435   : > { %v2428_v47 = vpop.permute.xlu1 %2427 }
 0x436   : > { %v2420_v48 = vpop.permute.xlu0 %2419  ;;  %v5780_v53 = vsel %vm1271_vm6, %v2780_v25, %v2428_v47 }
 0x437   : > { %v2792_v2 = vsel %vm1271_vm6, %v2776_v51, %v2420_v48 }
 0x438   : > { %2533 = vrot.lane.b32.xlu2 %v5478_v8, %s3367_s15 }
 0x43a   : > { %v5784_v20 = vpop.permute.xlu2 %2459 }
 0x43b   : > { %2727 = vrot.lane.b32.xlu1 %v5561_v7, %s3369_s9 }
 0x43c   : > { %2620 = vrot.lane.b32.xlu0 %v5361_v40, %s3370_s11 }
 0x43d   : > { %v2434_v41 = vpop.permute.xlu1 %2433 }
 0x43e   : > { %v2426_v63 = vpop.permute.xlu0 %2425  ;;  %v2799_v27 = vsel %vm1271_vm6, %v2783_v58, %v2434_v41 }
 0x43f   : > { %v2795_v50 = vsel %vm1271_vm6, %v2779_v32, %v2426_v63 }
 0x440   : > { %2674 = vrot.lane.b32.xlu2 %v5373_v21, %s3371_s13 }
 0x442   : > { %v2466_v40 = vpop.permute.xlu2 %2465 }
 0x443   : > { %v5800_v38 = vsel %vm1333_vm8, %v2790_v13, %v2466_v40  ;;  %2519 = vrot.lane.b32.xlu1 %v5351_v59, %s3367_s15 }
 0x444   : > { %2636 = vrot.lane.b32.xlu0 %v5502_v39, %s3370_s11 }
 0x445   : > { %v2440_v51 = vpop.permute.xlu1 %2439 }
 0x446   : > { %v2432_v14 = vpop.permute.xlu0 %2431  ;;  %v2802_v13 = vsel %vm1271_vm6, %v2786_v57, %v2440_v51 }
 0x447   : > { %v5812_v9 = vsel %vm1271_vm6, %v2782_v33, %v2432_v14  ;;  %v2906_v33 = vld [vmem:[%s6239_s3 + $0x18] sm:$0xff] }
 0x448   : > { %2690 = vrot.lane.b32.xlu2 %v5517_v49, %s3371_s13 }
 0x44a   : > { %v2472_v48 = vpop.permute.xlu2 %2471 }
 0x44b   : > { %v5818_v59 = vsel %vm1333_vm8, %v2793_v16, %v2472_v48  ;;  %2622 = vrot.lane.b32.xlu1 %v5363_v26, %s3370_s11 }
 0x44c   : > { %2743 = vrot.lane.b32.xlu0 %v5639_v62, %s3369_s9 }
 0x44d   : > { %v2464_v47 = vpop.permute.xlu1 %2463 }
 0x44e   : > { %v2438_v36 = vpop.permute.xlu0 %2437  ;;  %v5831_v32 = vsel %vm1333_vm8, %v2789_v37, %v2464_v47  ;;  %v2911_v37 = vld [vmem:[%s6239_s3 + $0x40] sm:$0xff] }
 0x44f   : > { %v5828_v25 = vsel %vm1271_vm6, %v2785_v34, %v2438_v36  ;;  %2972 = vmatpush.msra.mxu1 %v2911_v37  ;;  %3225 = vmatpush.msrb.mxu3 %v2911_v37  ;;  %v2903_v34 = vld [vmem:[%s6239_s3] sm:$0xff]  ;;  %vm2835_vm6 = vcmask 326656  }
 0x450   : > { %2572 = vrot.lane.b32.xlu2 %v5581_v19, %s3368_s18  ;;  %v2910_v19 = vld [vmem:[%s6239_s3 + $0x38] sm:$0xff] }
 0x451   : > { %2973 = vmatpush.msra.mxu1 %v2910_v19  ;;  %3226 = vmatpush.msrb.mxu3 %v2910_v19 }
 0x452   : > { %v5835_v16 = vpop.permute.xlu2 %2477 }
 0x453   : > { %2638 = vrot.lane.b32.xlu1 %v5507_v56, %s3370_s11 }
 0x454   : > { %2535 = vrot.lane.b32.xlu0 %v5487_v18, %s3367_s15 }
 0x455   : > { %v2470_v1 = vpop.permute.xlu1 %2469 }
 0x456   : > { %v2462_v26 = vpop.permute.xlu0 %2461  ;;  %v5852_v63 = vsel %vm1333_vm8, %v2792_v2, %v2470_v1 }
 0x457   : > { %v5843_v39 = vsel %vm1333_vm8, %v5708_v12, %v2462_v26  ;;  %v2909_v12 = vld [vmem:[%s6239_s3 + $0x30] sm:$0xff] }
 0x458   : > { %2588 = vrot.lane.b32.xlu2 %v5633_v28, %s3368_s18  ;;  %2974 = vmatpush.msra.mxu1 %v2909_v12  ;;  %v2908_v28 = vld [vmem:[%s6239_s3 + $0x28] sm:$0xff] }
 0x459   : > { %3227 = vmatpush.msrb.mxu3 %v2909_v12  ;;  %v2562_v12 = vrot.slane %v5693_v44, 2 }
 0x45a   : > { %v2484_v18 = vpop.permute.xlu2 %2483  ;;  %2975 = vmatpush.msra.mxu1 %v2908_v28 }
 0x45b   : > { %v5860_v56 = vsel %vm1333_vm8, %v2799_v27, %v2484_v18  ;;  %2745 = vrot.lane.b32.xlu1 %v5628_v42, %s3369_s9  ;;  %v2907_v27 = vld [vmem:[%s6239_s3 + $0x20] sm:$0xff]  ;;  %3228 = vmatpush.msrb.mxu3 %v2908_v28 }
 0x45c   : > { %2676 = vrot.lane.b32.xlu0 %v5376_v24, %s3371_s13  ;;  %2976 = vmatpush.msra.mxu1 %v2907_v27 }
 0x45d   : > { %v2476_v41 = vpop.permute.xlu1 %2475  ;;  %3229 = vmatpush.msrb.mxu3 %v2907_v27 }
 0x45e   : > { %v2468_v2 = vpop.permute.xlu0 %2467  ;;  %v5877_v40 = vsel %vm1333_vm8, %v2795_v50, %v2476_v41  ;;  %2977 = vmatpush.msra.mxu1 %v2906_v33  ;;  %v2904_v50 = vld [vmem:[%s6239_s3 + $0x8] sm:$0xff] }
 0x45f   : > { %v5871_v58 = vsel %vm1333_vm8, %v5719_v4, %v2468_v2  ;;  %v2905_v4 = vld [vmem:[%s6239_s3 + $0x10] sm:$0xff]  ;;  %3230 = vmatpush.msrb.mxu3 %v2906_v33 }
 0x460   : > { %2729 = vrot.lane.b32.xlu2 %v5595_v22, %s3369_s9  ;;  %2978 = vmatpush.msra.mxu1 %v2905_v4 }
 0x461   : > { %3231 = vmatpush.msrb.mxu3 %v2905_v4 }
 0x462   : > { %v2490_v14 = vpop.permute.xlu2 %2489  ;;  %2979 = vmatpush.msra.mxu1 %v2904_v50 }
 0x463   : > { %v5888_v57 = vsel %vm1333_vm8, %v2802_v13, %v2490_v14  ;;  %2537 = vrot.lane.b32.xlu1 %v5517_v49, %s3367_s15  ;;  %3232 = vmatpush.msrb.mxu3 %v2904_v50 }
 0x464   : > { %2692 = vrot.lane.b32.xlu0 %v5528_v3, %s3371_s13  ;;  %2980 = vmatpush.msra.mxu1 %v2903_v34 }
 0x465   : > { %v2482_v13 = vpop.permute.xlu1 %2481  ;;  %3233 = vmatpush.msrb.mxu3 %v2903_v34  ;;  %v1906_v34 = vadd.s32 9, %v5250_v15 }
 0x466   : > { %v2474_v51 = vpop.permute.xlu0 %2473  ;;  %v5906_v36 = vsel %vm1333_vm8, %v5812_v9, %v2482_v13  ;;  %v2509_v9 = vrot.slane %v5693_v44, 1 }
 0x467   : > { %v5899_v48 = vsel %vm1333_vm8, %v5735_v11, %v2474_v51  ;;  %v2511_v51 = vrot.slane %v5574_v17, 1  ;;  %vm1933_vm13 = vcmp.lt.s32.totalorder %v1906_v34, 16 }
 0x468   : > { %2521 = vrot.lane.b32.xlu2 %v5373_v21, %s3367_s15 }
 0x46a   : > { %v2617_v49 = vpop.permute.xlu2 %2616 }
 0x46b   : > { %2678 = vrot.lane.b32.xlu1 %v5401_v61, %s3371_s13 }
 0x46c   : > { %2574 = vrot.lane.b32.xlu0 %v5561_v7, %s3368_s18  ;;  %v2508_v7 = vrot.slane %v5678_v30, 1 }
 0x46d   : > { %v2488_v26 = vpop.permute.xlu1 %2487 }
 0x46e   : > { %v2480_v11 = vpop.permute.xlu0 %2479  ;;  %v5921_v21 = vsel %vm1333_vm8, %v5828_v25, %v2488_v26  ;;  %v5929_v37 = vsel %vm330_vm0, %v2508_v7, %v2509_v9  ;;  %v2512_v7 = vsel %vm330_vm0, %v2509_v9, %v2511_v51 }
 0x46f   : > { %v5916_v47 = vsel %vm1333_vm8, %v5749_v29, %v2480_v11 }
 0x470   : > { %2624 = vrot.lane.b32.xlu2 %v5396_v31, %s3370_s11 }
 0x472   : > { %v2516_v1 = vpop.permute.xlu2 %2515 }
 0x473   : > { %2694 = vrot.lane.b32.xlu1 %v5929_v37, %s3371_s13 }
 0x474   : > { %2590 = vrot.lane.b32.xlu0 %v5639_v62, %s3368_s18  ;;  %v2561_v62 = vrot.slane %v5678_v30, 2 }
 0x475   : > { %v2567_v19 = vpop.permute.xlu1 %2566 }
 0x476   : > { %v2486_v29 = vpop.permute.xlu0 %2485  ;;  %v5949_v2 = vsel %vm471_vm1, %v2561_v62, %v2562_v12  ;;  %v2195_v62 = vld.sshfl [vmem:[#allocation1] sm:$0xff pattern:$0x73625140] }
 0x477   : > { %v5935_v25 = vsel %vm1333_vm8, %v5767_v35, %v2486_v29  ;;  %v2803_v35 = vsel %vm1333_vm8, %v5728_v10, %v5784_v20 }
 0x478   : > { %2640 = vrot.lane.b32.xlu2 %v5678_v30, %s3370_s11 }
 0x47a   : > { %v2619_v31 = vpop.permute.xlu2 %2618 }
 0x47b   : > { %2576 = vrot.lane.b32.xlu1 %v5595_v22, %s3368_s18 }
 0x47c   : > { %2731 = vrot.lane.b32.xlu0 %v5602_v46, %s3369_s9 }
 0x47d   : > { %v2724_v28 = vpop.permute.xlu1 %2723 }
 0x47e   : > { %v2514_v18 = vpop.permute.xlu0 %2513 }
 0x47f   : > { %v2819_v41 = vsel %vm1395_vm9, %v2803_v35, %v2514_v18 }
 0x480   : > { %2747 = vrot.lane.b32.xlu2 %v5949_v2, %s3369_s9  ;;  %v2836_v30 = vsel %vm2835_vm6, %v2819_v41, %v2567_v19 }
 0x481   : > { %v2853_v10 = vsel %vm2852_vm7, %v2836_v30, %v2617_v49  ;;  %v2820_v49 = vsel %vm1395_vm9, %v5843_v39, %v2516_v1 }
 0x482   : > { %v2635_v27 = vpop.permute.xlu2 %2634 }
 0x483   : > { %2592 = vrot.lane.b32.xlu1 %v5628_v42, %s3368_s18 }
 0x484   : > { %2523 = vrot.lane.b32.xlu0 %v5376_v24, %s3367_s15 }
 0x485   : > { %v2532_v33 = vpop.permute.xlu1 %2531 }
 0x486   : > { %v2671_v22 = vpop.permute.xlu0 %2670 }
 0x487   : > { %v2870_v20 = vsel %vm2869_vm10, %v2853_v10, %v2671_v22 }
 0x488   : > { %v2887_v4 = vsel %vm2886_vm11, %v2870_v20, %v2724_v28  ;;  %2539 = vrot.lane.b32.xlu2 %v5528_v3, %s3367_s15  ;;  %v2812_v3 = vsel %vm1333_vm8, %v5780_v53, %v5835_v16  ;;  %vm1923_vm8 = vcmp.ge.s32.totalorder %v1906_v34, 0 }
 0x489   : > { %3197 = vmatmul.msk.f32.vlgmr.msra.gmra.mxu1 %vm2916_vm12, %v2887_v4  ;;  %vm6003_vm15 = vmand %vm1923_vm8, %vm1933_vm13 }
 0x48a   : > { %v2742_v24 = vpop.permute.xlu2 %2741  ;;  %vm1974_vm2 = vmand %vm6003_vm15, %vm1944_vm14  ;;  %v6021_v35 = vsel %vm6003_vm15, %v2195_v62, 0.0 }
 0x48b   : > { %2733 = vrot.lane.b32.xlu1 %v5587_v5, %s3369_s9  ;;  %v2254_v18 = vsel %vm1974_vm2, %v5591_v52, 0.0  ;;  %v2719_v45 = vrot.slane %v6021_v35, 2  ;;  %v6695_v52 = vld [vmem:[#allocation38_spill] sm:$0xff]  ;;  %v2666_v4 = vrot.slane %v6021_v35, 1  ;;  %vm2009_vm14 = vmand %vm6003_vm15, %vm1979_vm3 }
 0x48c   : > { %2626 = vrot.lane.b32.xlu0 %v5393_v6, %s3370_s11  ;;  %v2828_v6 = vsel %vm1395_vm9, %v2812_v3, %v2532_v33  ;;  %v2718_v41 = vrot.slane %v2254_v18, 2  ;;  %v2665_v20 = vrot.slane %v2254_v18, 1 }
 0x48d   : > { %v2673_v14 = vpop.permute.xlu1 %2672 }
 0x48e   : > { %v2569_v42 = vpop.permute.xlu0 %2568  ;;  %v2720_v30 = vsel %vm471_vm1, %v2718_v41, %v2719_v45  ;;  %v2667_v51 = vsel %vm330_vm0, %v2665_v20, %v2666_v4 }
 0x48f   : > { %v2837_v53 = vsel %vm2835_vm6, %v2820_v49, %v2569_v42 }
 0x490   : > { %2680 = vrot.lane.b32.xlu2 %v5414_v43, %s3371_s13  ;;  %v2854_v39 = vsel %vm2852_vm7, %v2837_v53, %v2619_v31 }
 0x492   : > { %v5971_v50 = vpop.permute.xlu2 %2533 }
 0x493   : > { %2525 = vrot.lane.b32.xlu1 %v5401_v61, %s3367_s15 }
 0x494   : > { %2642 = vrot.lane.b32.xlu0 %v5693_v44, %s3370_s11  ;;  %v2564_v44 = vrot.slane %v5574_v17, 2  ;;  %v2871_v17 = vsel %vm2869_vm10, %v2854_v39, %v2673_v14 }
 0x495   : > { %v2689_v26 = vpop.permute.xlu1 %2688 }
 0x496   : > { %v2585_v13 = vpop.permute.xlu0 %2584  ;;  %v5995_v1 = vsel %vm471_vm1, %v2562_v12, %v2564_v44 }
 0x497   : > { %v2845_v11 = vsel %vm2835_vm6, %v2828_v6, %v2585_v13  ;;  %v2829_v13 = vsel %vm1395_vm9, %v5916_v47, %v5971_v50 }
 0x498   : > { %v2862_v16 = vsel %vm2852_vm7, %v2845_v11, %v2635_v27  ;;  %2696 = vrot.lane.b32.xlu2 %v2512_v7, %s3371_s13 }
 0x499   : > { %v2879_v61 = vsel %vm2869_vm10, %v2862_v16, %v2689_v26  ;;  %v2196_v26 = vld.sshfl [vmem:[#allocation1 + $0x20] sm:$0xff pattern:$0x73625140] }
 0x49a   : > { %v2896_v15 = vsel %vm2886_vm11, %v2879_v61, %v2742_v24  ;;  %v2675_v29 = vpop.permute.xlu2 %2674 }
 0x49b   : > { %3206 = vmatmul.msk.f32.vlgmr.msrb.gmra.mxu3 %vm2916_vm12, %v2896_v15  ;;  %2628 = vrot.lane.b32.xlu1 %v5432_v23, %s3370_s11 }
 0x49c   : > { %2749 = vrot.lane.b32.xlu0 %v5995_v1, %s3369_s9 }
 0x49d   : > { %v2571_v12 = vpop.permute.xlu1 %2570 }
 0x49e   : > { %v2726_v9 = vpop.permute.xlu0 %2725 }
 0x49f   : > { %v2888_v31 = vsel %vm2886_vm11, %v2871_v17, %v2726_v9 }
 0x4a0   : > { %3198 = vmatmul.msk.f32.gmra.mxu1 %vm2916_vm12, %v2888_v31  ;;  %2578 = vrot.lane.b32.xlu2 %v5602_v46, %s3368_s18 }
 0x4a2   : > { %v2691_v23 = vpop.permute.xlu2 %2690 }
 0x4a3   : > { %2644 = vrot.lane.b32.xlu1 %v2254_v18, %s3370_s11 }
 0x4a4   : > { %2541 = vrot.lane.b32.xlu0 %v5929_v37, %s3367_s15 }
 0x4a5   : > { %v2587_v46 = vpop.permute.xlu1 %2586 }
 0x4a6   : > { %v2518_v28 = vpop.permute.xlu0 %2517  ;;  %v2846_v49 = vsel %vm2835_vm6, %v2829_v13, %v2587_v46 }
 0x4a7   : > { %v2821_v37 = vsel %vm1395_vm9, %v5831_v32, %v2518_v28  ;;  %v6696_v32 = vld [vmem:[#allocation113_spill] sm:$0xff] }
 0x4a8   : > { %2594 = vrot.lane.b32.xlu2 %v5949_v2, %s3368_s18  ;;  %v2838_v10 = vsel %vm2835_vm6, %v2821_v37, %v2571_v12 }
 0x4aa   : > { %v2573_v27 = vpop.permute.xlu2 %2572 }
 0x4ab   : > { %2751 = vrot.lane.b32.xlu1 %v2720_v30, %s3369_s9 }
 0x4ac   : > { %2682 = vrot.lane.b32.xlu0 %v6695_v52, %s3371_s13 }
 0x4ad   : > { %v2728_v2 = vpop.permute.xlu1 %2727 }
 0x4ae   : > { %v2621_v22 = vpop.permute.xlu0 %2620 }
 0x4af   : > { %v2855_v33 = vsel %vm2852_vm7, %v2838_v10, %v2621_v22 }
 0x4b0   : > { %v2872_v24 = vsel %vm2869_vm10, %v2855_v33, %v2675_v29  ;;  %2735 = vrot.lane.b32.xlu2 %v6696_v32, %s3369_s9 }
 0x4b1   : > { %v2889_v42 = vsel %vm2886_vm11, %v2872_v24, %v2728_v2 }
 0x4b2   : > { %3199 = vmatmul.msk.f32.gmra.mxu1 %vm2916_vm12, %v2889_v42  ;;  %v2589_v14 = vpop.permute.xlu2 %2588 }
 0x4b3   : > { %2543 = vrot.lane.b32.xlu1 %v2512_v7, %s3367_s15  ;;  %v2256_v7 = vsel %vm2009_vm14, %v2196_v26, 0.0 }
 0x4b4   : > { %2698 = vrot.lane.b32.xlu0 %v2667_v51, %s3371_s13  ;;  %v2668_v61 = vrot.slane %v2256_v7, 1  ;;  %v2721_v19 = vrot.slane %v2256_v7, 2 }
 0x4b5   : > { %v2520_v6 = vpop.permute.xlu1 %2519 }
 0x4b6   : > { %v2637_v3 = vpop.permute.xlu0 %2636  ;;  %v2822_v17 = vsel %vm1395_vm9, %v5800_v38, %v2520_v6  ;;  %v2722_v62 = vsel %vm471_vm1, %v2719_v45, %v2721_v19 }
 0x4b7   : > { %v2863_v44 = vsel %vm2852_vm7, %v2846_v49, %v2637_v3 }
 0x4b8   : > { %2527 = vrot.lane.b32.xlu2 %v5414_v43, %s3367_s15  ;;  %v6698_v43 = vld [vmem:[#allocation34_spill] sm:$0xff]  ;;  %v2880_v47 = vsel %vm2869_vm10, %v2863_v44, %v2691_v23 }
 0x4ba   : > { %v2730_v11 = vpop.permute.xlu2 %2729 }
 0x4bb   : > { %2684 = vrot.lane.b32.xlu1 %v6698_v43, %s3371_s13 }
 0x4bc   : > { %2580 = vrot.lane.b32.xlu0 %v5587_v5, %s3368_s18  ;;  %v2669_v5 = vsel %vm330_vm0, %v2666_v4, %v2668_v61 }
 0x4bd   : > { %v2623_v16 = vpop.permute.xlu1 %2622 }
 0x4be   : > { %v2744_v53 = vpop.permute.xlu0 %2743 }
 0x4bf   : > { %v2897_v50 = vsel %vm2886_vm11, %v2880_v47, %v2744_v53 }
 0x4c0   : > { %3207 = vmatmul.msk.f32.gmra.mxu3 %vm2916_vm12, %v2897_v50  ;;  %2630 = vrot.lane.b32.xlu2 %v5437_v54, %s3370_s11  ;;  %v2839_v54 = vsel %vm2835_vm6, %v2822_v17, %v2573_v27 }
 0x4c2   : > { %v2522_v15 = vpop.permute.xlu2 %2521 }
 0x4c3   : > { %2700 = vrot.lane.b32.xlu1 %v2669_v5, %s3371_s13  ;;  %v2823_v10 = vsel %vm1395_vm9, %v5871_v58, %v2522_v15 }
 0x4c4   : > { %2596 = vrot.lane.b32.xlu0 %v5995_v1, %s3368_s18  ;;  %v2856_v1 = vsel %vm2852_vm7, %v2839_v54, %v2623_v16 }
 0x4c5   : > { %v2639_v39 = vpop.permute.xlu1 %2638 }
 0x4c6   : > { %v2536_v29 = vpop.permute.xlu0 %2535 }
 0x4c7   : > { %v2830_v38 = vsel %vm1395_vm9, %v5906_v36, %v2536_v29 }
 0x4c8   : > { %2646 = vrot.lane.b32.xlu2 %v6021_v35, %s3370_s11  ;;  %v2847_v35 = vsel %vm2835_vm6, %v2830_v38, %v2589_v14 }
 0x4c9   : > { %v2864_v28 = vsel %vm2852_vm7, %v2847_v35, %v2639_v39 }
 0x4ca   : > { %v2625_v9 = vpop.permute.xlu2 %2624 }
 0x4cb   : > { %2582 = vrot.lane.b32.xlu1 %v6696_v32, %s3368_s18  ;;  %s3169_s18 = sshll.u32 %s6710_s19, 5 }
 0x4cc   : > { %2737 = vrot.lane.b32.xlu0 %v5622_v0, %s3369_s9 }
 0x4cd   : > { %v2746_v23 = vpop.permute.xlu1 %2745 }
 0x4ce   : > { %v2677_v31 = vpop.permute.xlu0 %2676 }
 0x4cf   : > { %v2873_v12 = vsel %vm2869_vm10, %v2856_v1, %v2677_v31 }
 0x4d0   : > { %v2890_v18 = vsel %vm2886_vm11, %v2873_v12, %v2730_v11  ;;  %2753 = vrot.lane.b32.xlu2 %v2722_v62, %s3369_s9 }
 0x4d1   : > { %3200 = vmatmul.msk.f32.gmra.mxu1 %vm2916_vm12, %v2890_v18 }
 0x4d2   : > { %v2641_v0 = vpop.permute.xlu2 %2640 }
 0x4d3   : > { %2739 = vrot.lane.b32.xlu1 %v5608_v55, %s3369_s9 }
 0x4d4   : > { %2529 = vrot.lane.b32.xlu0 %v6695_v52, %s3367_s15  ;;  %s3168_s15 = sshll.u32 %s6712_s12, 1 }
 0x4d5   : > { %v2538_v41 = vpop.permute.xlu1 %2537  ;;  %s260_s9 = sadd.s32 %s3169_s18, %s3168_s15 }
 0x4d6   : > { %v2693_v46 = vpop.permute.xlu0 %2692  ;;  %v2831_v30 = vsel %vm1395_vm9, %v5860_v56, %v2538_v41  ;;  %s3170_s28 = sshll.u32 %s260_s9, 3 }
 0x4d7   : > { %v2881_v36 = vsel %vm2869_vm10, %v2864_v28, %v2693_v46  ;;  %s6130_s29 = scalar_lea.vmem %s6241_s5, %s3170_s28 }
 0x4d8   : > { %v2898_v45 = vsel %vm2886_vm11, %v2881_v36, %v2746_v23  ;;  %2632 = vrot.lane.b32.xlu2 %v5464_v60, %s3370_s11 }
 0x4d9   : > { %3208 = vmatmul.msk.f32.gmra.mxu3 %vm2916_vm12, %v2898_v45 }
 0x4da   : > { %v2748_v27 = vpop.permute.xlu2 %2747 }
 0x4dc   : > { %2686 = vrot.lane.b32.xlu0 %v5478_v8, %s3371_s13 }
 0x4dd   : > { %v2679_v52 = vpop.permute.xlu1 %2678 }
 0x4de   : > { %v2575_v37 = vpop.permute.xlu0 %2574 }
 0x4df   : > { %v2840_v33 = vsel %vm2835_vm6, %v2823_v10, %v2575_v37 }
 0x4e0   : > { %v2857_v56 = vsel %vm2852_vm7, %v2840_v33, %v2625_v9 }
 0x4e1   : > { %v2874_v58 = vsel %vm2869_vm10, %v2857_v56, %v2679_v52 }
 0x4e2   : > { %v2540_v55 = vpop.permute.xlu2 %2539 }
 0x4e3   : > { %v2832_v15 = vsel %vm1395_vm9, %v5935_v25, %v2540_v55 }
 0x4e5   : > { %v2695_v60 = vpop.permute.xlu1 %2694 }
 0x4e6   : > { %v2591_v22 = vpop.permute.xlu0 %2590 }
 0x4e7   : > { %v2848_v20 = vsel %vm2835_vm6, %v2831_v30, %v2591_v22 }
 0x4e8   : > { %v2865_v2 = vsel %vm2852_vm7, %v2848_v20, %v2641_v0 }
 0x4e9   : > { %v2882_v8 = vsel %vm2869_vm10, %v2865_v2, %v2695_v60 }
 0x4ea   : > { %v2899_v4 = vsel %vm2886_vm11, %v2882_v8, %v2748_v27  ;;  %v2681_v24 = vpop.permute.xlu2 %2680 }
 0x4eb   : > { %3209 = vmatmul.msk.f32.gmra.mxu3 %vm2916_vm12, %v2899_v4 }
 0x4ed   : > { %v2577_v14 = vpop.permute.xlu1 %2576 }
 0x4ee   : > { %v2732_v32 = vpop.permute.xlu0 %2731 }
 0x4ef   : > { %v2891_v42 = vsel %vm2886_vm11, %v2874_v58, %v2732_v32 }
 0x4f0   : > { %3201 = vmatmul.msk.f32.gmra.mxu1 %vm2916_vm12, %v2891_v42 }
 0x4f2   : > { %v2697_v51 = vpop.permute.xlu2 %2696 }
 0x4f5   : > { %v2593_v6 = vpop.permute.xlu1 %2592 }
 0x4f6   : > { %v2524_v3 = vpop.permute.xlu0 %2523  ;;  %v2849_v29 = vsel %vm2835_vm6, %v2832_v15, %v2593_v6 }
 0x4f7   : > { %v2824_v13 = vsel %vm1395_vm9, %v5852_v63, %v2524_v3  ;;  %v6124_v63 = vld [vmem:[%s6240_s4] ss:$0 sm:$0xff] }
 0x4f8   : > { %v2841_v11 = vsel %vm2835_vm6, %v2824_v13, %v2577_v14 }
 0x4fa   : > { %v2579_v34 = vpop.permute.xlu2 %2578 }
 0x4fd   : > { %v2734_v44 = vpop.permute.xlu1 %2733 }
 0x4fe   : > { %v2627_v49 = vpop.permute.xlu0 %2626 }
 0x4ff   : > { %v2858_v26 = vsel %vm2852_vm7, %v2841_v11, %v2627_v49 }
 0x500   : > { %v2875_v43 = vsel %vm2869_vm10, %v2858_v26, %v2681_v24 }
 0x501   : > { %v2892_v7 = vsel %vm2886_vm11, %v2875_v43, %v2734_v44 }
 0x502   : > { %3202 = vmatmul.msk.f32.gmra.mxu1 %vm2916_vm12, %v2892_v7  ;;  %v2595_v53 = vpop.permute.xlu2 %2594 }
 0x505   : > { %v2526_v61 = vpop.permute.xlu1 %2525 }
 0x506   : > { %v2643_v47 = vpop.permute.xlu0 %2642  ;;  %v2982_v50 = vpop.f32.mrf.mxu1  ;;  %v2825_v25 = vsel %vm1395_vm9, %v5818_v59, %v2526_v61 }
 0x507   : > { %v2983_v16 = vadd.f32 %v6124_v63, %v2982_v50  ;;  %v2866_v39 = vsel %vm2852_vm7, %v2849_v29, %v2643_v47  ;;  %v2842_v62 = vsel %vm2835_vm6, %v2825_v25, %v2579_v34 }
 0x508   : > { %v2883_v9 = vsel %vm2869_vm10, %v2866_v39, %v2697_v51 }
 0x509   : > { %v3030_v5 = vmax.f32 %v2983_v16, 0.0 }
 0x50a   : > { %v2736_v1 = vpop.permute.xlu2 %2735 }
 0x50b   : > { %3046 = vst.msk [vmem:[%s6130_s29] sm:$0xff] %vm1209_vm4, %v3030_v5 }
 0x50d   : > { %v2629_v54 = vpop.permute.xlu1 %2628 }
 0x50e   : > { %v2750_v17 = vpop.permute.xlu0 %2749  ;;  %v2859_v18 = vsel %vm2852_vm7, %v2842_v62, %v2629_v54 }
 0x50f   : > { %v2900_v19 = vsel %vm2886_vm11, %v2883_v9, %v2750_v17 }
 0x510   : > { %3210 = vmatmul.msk.f32.gmra.mxu3 %vm2916_vm12, %v2900_v19 }
 0x512   : > { %v2528_v23 = vpop.permute.xlu2 %2527 }
 0x513   : > { %v2826_v32 = vsel %vm1395_vm9, %v5899_v48, %v2528_v23 }
 0x515   : > { %v2645_v12 = vpop.permute.xlu1 %2644 }
 0x516   : > { %v2542_v31 = vpop.permute.xlu0 %2541 }
 0x517   : > { %v2833_v59 = vsel %vm1395_vm9, %v5921_v21, %v2542_v31 }
 0x518   : > { %v2850_v52 = vsel %vm2835_vm6, %v2833_v59, %v2595_v53 }
 0x519   : > { %v2867_v30 = vsel %vm2852_vm7, %v2850_v52, %v2645_v12 }
 0x51a   : > { %v2631_v55 = vpop.permute.xlu2 %2630 }
 0x51d   : > { %v2985_v38 = vpop.f32.mrf.mxu1  ;;  %v2752_v41 = vpop.permute.xlu1 %2751 }
 0x51e   : > { %v2986_v0 = vadd.f32 %v6124_v63, %v2985_v38  ;;  %v2683_v35 = vpop.permute.xlu0 %2682  ;;  %v3009_v28 = vpop.f32.mrf.mxu3 }
 0x51f   : > { %v2876_v46 = vsel %vm2869_vm10, %v2859_v18, %v2683_v35  ;;  %v3010_v36 = vadd.f32 %v6124_v63, %v3009_v28 }
 0x520   : > { %v3031_v45 = vmax.f32 %v2986_v0, 0.0  ;;  %v2893_v27 = vsel %vm2886_vm11, %v2876_v46, %v2736_v1 }
 0x521   : > { %v3039_v37 = vmax.f32 %v3010_v36, 0.0  ;;  %3203 = vmatmul.msk.f32.gmra.mxu1 %vm2916_vm12, %v2893_v27 }
 0x522   : > { %3047 = vst.msk [vmem:[%s6130_s29 + $0x8] sm:$0xff] %vm1209_vm4, %v3031_v45  ;;  %v2647_v60 = vpop.permute.xlu2 %2646 }
 0x523   : > { %3055 = vst.msk [vmem:[%s6130_s29 + $0x48] sm:$0xff] %vm1209_vm4, %v3039_v37 }
 0x525   : > { %v2544_v21 = vpop.permute.xlu1 %2543 }
 0x526   : > { %v2699_v22 = vpop.permute.xlu0 %2698  ;;  %v2834_v56 = vsel %vm1395_vm9, %v5888_v57, %v2544_v21 }
 0x527   : > { %v2884_v10 = vsel %vm2869_vm10, %v2867_v30, %v2699_v22 }
 0x528   : > { %v2901_v20 = vsel %vm2886_vm11, %v2884_v10, %v2752_v41 }
 0x529   : > { %3211 = vmatmul.msk.f32.gmra.mxu3 %vm2916_vm12, %v2901_v20 }
 0x52a   : > { %v2754_v6 = vpop.permute.xlu2 %2753 }
 0x52d   : > { %v2685_v8 = vpop.permute.xlu1 %2684 }
 0x52e   : > { %v2581_v33 = vpop.permute.xlu0 %2580 }
 0x52f   : > { %v2988_v2 = vpop.f32.mrf.mxu1  ;;  %v2843_v51 = vsel %vm2835_vm6, %v2826_v32, %v2581_v33 }
 0x530   : > { %v2989_v4 = vadd.f32 %v6124_v63, %v2988_v2  ;;  %v2860_v49 = vsel %vm2852_vm7, %v2843_v51, %v2631_v55 }
 0x531   : > { %v2877_v57 = vsel %vm2869_vm10, %v2860_v49, %v2685_v8 }
 0x532   : > { %v3032_v24 = vmax.f32 %v2989_v4, 0.0  ;;  %v2633_v16 = vpop.permute.xlu2 %2632 }
 0x534   : > { %3048 = vst.msk [vmem:[%s6130_s29 + $0x10] sm:$0xff] %vm1209_vm4, %v3032_v24 }
 0x535   : > { %v2701_v14 = vpop.permute.xlu1 %2700 }
 0x536   : > { %v2597_v58 = vpop.permute.xlu0 %2596 }
 0x537   : > { %v2851_v42 = vsel %vm2835_vm6, %v2834_v56, %v2597_v58 }
 0x538   : > { %v2868_v3 = vsel %vm2852_vm7, %v2851_v42, %v2647_v60 }
 0x539   : > { %v2885_v13 = vsel %vm2869_vm10, %v2868_v3, %v2701_v14 }
 0x53a   : > { %v2902_v34 = vsel %vm2886_vm11, %v2885_v13, %v2754_v6 }
 0x53b   : > { %3212 = vmatmul.msk.f32.gmra.mxu3 %vm2916_vm12, %v2902_v34 }
 0x53d   : > { %v2583_v43 = vpop.permute.xlu1 %2582 }
 0x53e   : > { %v2738_v48 = vpop.permute.xlu0 %2737 }
 0x53f   : > { %v2894_v11 = vsel %vm2886_vm11, %v2877_v57, %v2738_v48 }
 0x540   : > { %3204 = vmatmul.msk.f32.gmra.mxu1 %vm2916_vm12, %v2894_v11 }
 0x543   : > { %v3012_v26 = vpop.f32.mrf.mxu3 }
 0x544   : > { %v3013_v44 = vadd.f32 %v6124_v63, %v3012_v26 }
 0x545   : > { %v2740_v29 = vpop.permute.xlu1 %2739 }
 0x546   : > { %v3040_v7 = vmax.f32 %v3013_v44, 0.0  ;;  %v2530_v53 = vpop.permute.xlu0 %2529 }
 0x547   : > { %v2827_v47 = vsel %vm1395_vm9, %v5877_v40, %v2530_v53 }
 0x548   : > { %3056 = vst.msk [vmem:[%s6130_s29 + $0x50] sm:$0xff] %vm1209_vm4, %v3040_v7  ;;  %v2844_v50 = vsel %vm2835_vm6, %v2827_v47, %v2583_v43 }
 0x549   : > { %v2861_v5 = vsel %vm2852_vm7, %v2844_v50, %v2633_v16 }
 0x54e   : > { %v2991_v61 = vpop.f32.mrf.mxu1  ;;  %v2687_v15 = vpop.permute.xlu0 %2686 }
 0x54f   : > { %v2992_v39 = vadd.f32 %v6124_v63, %v2991_v61  ;;  %v2878_v17 = vsel %vm2869_vm10, %v2861_v5, %v2687_v15 }
 0x550   : > { %v2895_v9 = vsel %vm2886_vm11, %v2878_v17, %v2740_v29 }
 0x551   : > { %v3033_v19 = vmax.f32 %v2992_v39, 0.0  ;;  %3205 = vmatmul.msk.f32.gmra.mxu1 %vm2916_vm12, %v2895_v9 }
 0x553   : > { %3049 = vst.msk [vmem:[%s6130_s29 + $0x18] sm:$0xff] %vm1209_vm4, %v3033_v19 }
 0x55c   : > { %v3015_v40 = vpop.f32.mrf.mxu3 }
 0x55d   : > { %v3016_v54 = vadd.f32 %v6124_v63, %v3015_v40 }
 0x55f   : > { %v3041_v1 = vmax.f32 %v3016_v54, 0.0 }
 0x561   : > { %3057 = vst.msk [vmem:[%s6130_s29 + $0x58] sm:$0xff] %vm1209_vm4, %v3041_v1 }
 0x56d   : > { %v2994_v31 = vpop.f32.mrf.mxu1 }
 0x56e   : > { %v2995_v12 = vadd.f32 %v6124_v63, %v2994_v31  ;;  %v3018_v25 = vpop.f32.mrf.mxu3 }
 0x56f   : > { %v3019_v23 = vadd.f32 %v6124_v63, %v3018_v25 }
 0x570   : > { %v3034_v62 = vmax.f32 %v2995_v12, 0.0 }
 0x571   : > { %v3042_v38 = vmax.f32 %v3019_v23, 0.0 }
 0x572   : > { %3050 = vst.msk [vmem:[%s6130_s29 + $0x20] sm:$0xff] %vm1209_vm4, %v3034_v62 }
 0x573   : > { %3058 = vst.msk [vmem:[%s6130_s29 + $0x60] sm:$0xff] %vm1209_vm4, %v3042_v38 }
 0x57f   : > { %v2997_v18 = vpop.f32.mrf.mxu1 }
 0x580   : > { %v2998_v0 = vadd.f32 %v6124_v63, %v2997_v18 }
 0x582   : > { %v3035_v35 = vmax.f32 %v2998_v0, 0.0 }
 0x584   : > { %3051 = vst.msk [vmem:[%s6130_s29 + $0x28] sm:$0xff] %vm1209_vm4, %v3035_v35 }
 0x593   : > { %v3021_v28 = vpop.f32.mrf.mxu3 }
 0x594   : > { %v3022_v46 = vadd.f32 %v6124_v63, %v3021_v28 }
 0x596   : > { %v3043_v36 = vmax.f32 %v3022_v46, 0.0 }
 0x598   : > { %3059 = vst.msk [vmem:[%s6130_s29 + $0x68] sm:$0xff] %vm1209_vm4, %v3043_v36 }
 0x59e   : > { %v3000_v41 = vpop.f32.mrf.mxu1 }
 0x59f   : > { %v3001_v59 = vadd.f32 %v6124_v63, %v3000_v41 }
 0x5a1   : > { %v3036_v45 = vmax.f32 %v3001_v59, 0.0 }
 0x5a3   : > { %3052 = vst.msk [vmem:[%s6130_s29 + $0x30] sm:$0xff] %vm1209_vm4, %v3036_v45 }
 0x5ac   : > { %v3024_v27 = vpop.f32.mrf.mxu3 }
 0x5ad   : > { %v3025_v37 = vadd.f32 %v6124_v63, %v3024_v27 }
 0x5af   : > { %v3044_v52 = vmax.f32 %v3025_v37, 0.0 }
 0x5b1   : > { %3060 = vst.msk [vmem:[%s6130_s29 + $0x70] sm:$0xff] %vm1209_vm4, %v3044_v52 }
 0x5bd   : > { %v3003_v55 = vpop.f32.mrf.mxu1 }
 0x5be   : > { %v3004_v30 = vadd.f32 %v6124_v63, %v3003_v55  ;;  %v3027_v22 = vpop.f32.mrf.mxu3 }
 0x5bf   : > { %v3028_v10 = vadd.f32 %v6124_v63, %v3027_v22 }
 0x5c0   : > { %v3037_v21 = vmax.f32 %v3004_v30, 0.0 }
 0x5c1   : > { %v3045_v20 = vmax.f32 %v3028_v10, 0.0 }
 0x5c2   : > { %3053 = vst.msk [vmem:[%s6130_s29 + $0x38] sm:$0xff] %vm1209_vm4, %v3037_v21 }
 0x5c3   : > { %3061 = vst.msk [vmem:[%s6130_s29 + $0x78] sm:$0xff] %vm1209_vm4, %v3045_v20 }
 0x5ce   : > { %v3006_v60 = vpop.f32.mrf.mxu1 }
 0x5cf   : > { %v3007_v33 = vadd.f32 %v6124_v63, %v3006_v60 }
 0x5d1   : > { %v3038_v2 = vmax.f32 %v3007_v33, 0.0 }
 0x5d3   : > { %3054 = vst.msk [vmem:[%s6130_s29 + $0x40] sm:$0xff] %vm1209_vm4, %v3038_v2 }
 0x5d4 PF: > { %s15_s22 = sadd.s32 1, %s3358_s22   ;;  %s6699_s18 = smov %s3350_s20 }
 0x5d5   : > { %p12_p8 = scmp.ge.s32.totalorder %s15_s22, 6   ;;  %s6700_s19 = smov %s3354_s21 }
 0x5d6   : > { %s6701_s20 = smov %s6704_s23  ;;  %s6702_s21 = smov %s6708_s24 }
 0x5d7   :  { %14 = sbr.rel (!%p12_p8) target bundleno = 3 (0x3), region = 84 }

</bundles_post_ra>
